<compile_context>
chip_gen: v7x
topology: tpu7x:2x2x1
jax: 0.10.0
libtpu: 0.0.40
codegen_flags: <defaults>
</compile_context>

<pallas_src>
import jax
import jax.numpy as jnp
from jax.experimental import pallas as pl
from jax.experimental.pallas import tpu as pltpu

HIDDEN = 256   # hidden_size (matches the PyTorch module spec)
VOCAB = 64     # input_size (embedding vocab), small for the example
SEQ_LEN = 8    # example sequence length


def encoder_gru_kernel(tok_ids_ref,                      # SMEM: (T,) int32 (scalar prefetch)
                       emb_ref,                          # VMEM: (V, 1, H) f32
                       w_ih_ref, w_hh_ref,               # VMEM: (H, 3H) bf16 each
                       b_ih_ref, b_hh_ref,               # VMEM: (1, 3H) f32 each
                       h0_ref,                           # VMEM: (1, H) f32
                       out_ref,                          # VMEM block: (T, H) f32
                       x_scratch,                        # VMEM scratch: (T, H) f32
                       gi_scratch):                      # VMEM scratch: (T, 3H) f32
    """Whole-sequence GRU: batched input projection + unrolled recurrence."""
    T = out_ref.shape[0]
    H = h0_ref.shape[-1]

    # ---- Pre-pass (off the serial dependence chain) ------------------------
    # Gather all T embedding rows.  Leading-axis dynamic index on the
    # VMEM-resident (V, 1, H) table -> (1, H) per token (no sublane relayout).
    for t in range(T):                                   # T static -> unrolled
        x_scratch[pl.ds(t, 1), :] = emb_ref[tok_ids_ref[t]]

    # One (T,H)x(H,3H) bf16 GEMM for every step's input projection, with b_ih
    # folded in.  This removes half the MXU work (and the bias add) from the
    # per-step serial path and uses T MXU rows instead of 1.
    gi_scratch[...] = jnp.dot(
        x_scratch[...].astype(jnp.bfloat16), w_ih_ref[...],
        preferred_element_type=jnp.float32) + b_ih_ref[...]

    # Hoisted loop invariants (JAX does not CSE broadcasts inside loops).
    w_hh = w_hh_ref[...]                                 # bf16 (H, 3H)
    b_hh = b_hh_ref[...]                                 # f32  (1, 3H)

    # ---- Serial recurrence: one MXU GEMV + EUP/VPU gate math per step ------
    def step(t, h):
        gi = gi_scratch[pl.ds(t, 1), :]                  # (1, 3H) precomputed
        gh = jnp.dot(h.astype(jnp.bfloat16), w_hh,
                     preferred_element_type=jnp.float32) + b_hh
        # PyTorch gate ordering: reset | update | new.  H=256 -> 128-lane
        # aligned slices, so gate extraction is free vreg selection.
        r = jax.nn.sigmoid(gi[:, 0:H] + gh[:, 0:H])
        z = jax.nn.sigmoid(gi[:, H:2 * H] + gh[:, H:2 * H])
        n = jnp.tanh(gi[:, 2 * H:3 * H] + r * gh[:, 2 * H:3 * H])
        h_new = (1.0 - z) * n + z * h
        out_ref[pl.ds(t, 1), :] = h_new                  # row write, stays in VMEM
        return h_new

    jax.lax.fori_loop(0, T, step, h0_ref[...], unroll=True)


def encoder_gru_pallas(token_ids, h0, emb_3d, w_ih_bf16, w_hh_bf16,
                       b_ih_2d, b_hh_2d):
    """Run the full sequence recurrence in one pallas_call (single grid step).

    token_ids: (T,) int32; h0: (1, H) f32.
    Returns per-step GRU outputs of shape (T, H); final hidden == out[-1].
    """
    seq_len = token_ids.shape[0]
    hidden = h0.shape[-1]
    vocab = emb_3d.shape[0]

    grid_spec = pltpu.PrefetchScalarGridSpec(
        num_scalar_prefetch=1,
        grid=(1,),
        in_specs=[
            # Constant index_maps: each array DMA'd once, VMEM-resident.
            # TODO(synk): for realistic vocab sizes, keep the table in HBM and
            # gather rows with a scalar-prefetch-driven pl.Element BlockSpec
            # instead of a (V,1,H) resident copy (v7x VMEM headroom).
            pl.BlockSpec((vocab, 1, hidden), lambda i, toks: (0, 0, 0)),
            pl.BlockSpec((hidden, 3 * hidden), lambda i, toks: (0, 0)),
            pl.BlockSpec((hidden, 3 * hidden), lambda i, toks: (0, 0)),
            pl.BlockSpec((1, 3 * hidden), lambda i, toks: (0, 0)),
            pl.BlockSpec((1, 3 * hidden), lambda i, toks: (0, 0)),
            pl.BlockSpec((1, hidden), lambda i, toks: (0, 0)),
        ],
        # Whole (T, H) output is one lane-dense block: single writeback DMA.
        out_specs=pl.BlockSpec((seq_len, hidden), lambda i, toks: (0, 0)),
        scratch_shapes=[
            pltpu.VMEM((seq_len, hidden), jnp.float32),       # gathered embeddings
            pltpu.VMEM((seq_len, 3 * hidden), jnp.float32),   # precomputed gi
        ],
    )
    # TODO(synk): when batching multiple sequences/beams, add a leading
    # "parallel" batch grid axis so v7x's 2 TensorCores both get work.
    return pl.pallas_call(
        encoder_gru_kernel,
        out_shape=jax.ShapeDtypeStruct((seq_len, hidden), jnp.float32),
        grid_spec=grid_spec,
        compiler_params=pltpu.CompilerParams(
            dimension_semantics=("arbitrary",)),
    )(token_ids, emb_3d, w_ih_bf16, w_hh_bf16, b_ih_2d, b_hh_2d, h0)


class EncoderRNNPallas:
    """JAX/Pallas equivalent of the PyTorch EncoderRNN forward pass."""

    def __init__(self, input_size, hidden_size, key):
        self.input_size = input_size
        self.hidden_size = hidden_size
        k_emb, k_wih, k_whh, k_bih, k_bhh = jax.random.split(key, 5)
        # nn.Embedding: N(0, 1) init.
        self.embedding = jax.random.normal(
            k_emb, (input_size, hidden_size), dtype=jnp.float32)
        # nn.GRU: uniform(-1/sqrt(H), 1/sqrt(H)); PyTorch layout (3H, H) / (3H,).
        bound = 1.0 / (hidden_size ** 0.5)
        self.w_ih = jax.random.uniform(
            k_wih, (3 * hidden_size, hidden_size), jnp.float32, -bound, bound)
        self.w_hh = jax.random.uniform(
            k_whh, (3 * hidden_size, hidden_size), jnp.float32, -bound, bound)
        self.b_ih = jax.random.uniform(
            k_bih, (3 * hidden_size,), jnp.float32, -bound, bound)
        self.b_hh = jax.random.uniform(
            k_bhh, (3 * hidden_size,), jnp.float32, -bound, bound)
        # Kernel-friendly layouts (glue, computed once).
        self.emb_3d = self.embedding.reshape(input_size, 1, hidden_size)
        # MXU operands in bf16 (f32 accumulation in-kernel); elementwise stays f32.
        self.w_ih_bf16 = jnp.transpose(self.w_ih).astype(jnp.bfloat16)  # (H, 3H)
        self.w_hh_bf16 = jnp.transpose(self.w_hh).astype(jnp.bfloat16)  # (H, 3H)
        self.b_ih_2d = self.b_ih.reshape(1, 3 * hidden_size)
        self.b_hh_2d = self.b_hh.reshape(1, 3 * hidden_size)

    def init_hidden(self):
        return jnp.zeros((1, 1, self.hidden_size), dtype=jnp.float32)

    def __call__(self, token_ids, hidden):
        """token_ids: (T,) int, hidden: (1, 1, H).

        Returns (outputs (T, 1, H), final hidden (1, 1, H)) — identical to
        running the PyTorch per-token forward T times and stacking outputs.
        """
        h0 = hidden.reshape(1, self.hidden_size)
        # Clamp ids: a VMEM gather has no bounds check.
        toks = jnp.clip(token_ids.astype(jnp.int32), 0, self.input_size - 1)
        outs2d = encoder_gru_pallas(
            toks, h0, self.emb_3d, self.w_ih_bf16, self.w_hh_bf16,
            self.b_ih_2d, self.b_hh_2d)
        outs = outs2d.reshape(-1, 1, self.hidden_size)
        h_final = outs2d[-1].reshape(1, 1, self.hidden_size)
        return outs, h_final

    def step(self, token, hidden):
        """Single-token forward, mirroring EncoderRNN.forward(input, hidden)."""
        outs, h_final = self(jnp.reshape(token, (1,)), hidden)
        return outs.reshape(1, 1, self.hidden_size), h_final


def _reference_encode(token_ids, h0, emb, w_ih, w_hh, b_ih, b_hh):
    """Pure-JAX f32 reference matching torch.nn.GRU sequence semantics."""
    H = h0.shape[-1]
    h = h0
    outs = []
    for i in range(token_ids.shape[0]):
        x = emb[token_ids[i]].reshape(1, H)
        gi = x @ w_ih.T + b_ih
        gh = h @ w_hh.T + b_hh
        r = jax.nn.sigmoid(gi[:, :H] + gh[:, :H])
        z = jax.nn.sigmoid(gi[:, H:2 * H] + gh[:, H:2 * H])
        n = jnp.tanh(gi[:, 2 * H:] + r * gh[:, 2 * H:])
        h = (1.0 - z) * n + z * h
        outs.append(h)
    return jnp.stack(outs, axis=0), h  # (T, 1, H), (1, H)


if __name__ == "__main__":
    key = jax.random.PRNGKey(0)
    enc = EncoderRNNPallas(VOCAB, HIDDEN, key)

    token_ids = jax.random.randint(
        jax.random.PRNGKey(1), (SEQ_LEN,), 0, VOCAB, dtype=jnp.int32)
    hidden0 = enc.init_hidden()

    outputs, hidden = enc(token_ids, hidden0)
    outputs = jax.block_until_ready(outputs)
    hidden = jax.block_until_ready(hidden)

    assert outputs.shape == (SEQ_LEN, 1, HIDDEN)
    assert hidden.shape == (1, 1, HIDDEN)
    assert bool(jnp.all(jnp.isfinite(outputs)))

    # Pure-JAX f32 reference of the same math (kernel matmuls are bf16 on the
    # MXU with f32 accumulation, hence the relaxed tolerances).
    ref_outs, ref_h = _reference_encode(
        token_ids, hidden0.reshape(1, HIDDEN), enc.embedding,
        enc.w_ih, enc.w_hh, enc.b_ih.reshape(1, -1), enc.b_hh.reshape(1, -1))
    assert jnp.allclose(outputs, ref_outs, atol=5e-2, rtol=5e-2)
    assert jnp.allclose(hidden.reshape(1, HIDDEN), ref_h, atol=5e-2, rtol=5e-2)

    # Single-token path matches the original forward(input, hidden) contract.
    out1, h1 = enc.step(token_ids[0], hidden0)
    out1 = jax.block_until_ready(out1)
    assert out1.shape == (1, 1, HIDDEN) and h1.shape == (1, 1, HIDDEN)
    assert jnp.allclose(out1, ref_outs[:1], atol=5e-2, rtol=5e-2)
    assert jnp.allclose(h1.reshape(1, HIDDEN), ref_outs[0], atol=5e-2, rtol=5e-2)

    print("KERNEL_OK")
</pallas_src>

<mosaic_0001>
module attributes {stable_mosaic.version = 11 : i64} {
  func.func @encoder_gru_kernel(%arg0: i32, %arg1: memref<8xi32, #tpu.memory_space<smem>>, %arg2: memref<64x1x256xf32, #tpu.memory_space<vmem>>, %arg3: memref<256x768xbf16, #tpu.memory_space<vmem>>, %arg4: memref<256x768xbf16, #tpu.memory_space<vmem>>, %arg5: memref<1x768xf32, #tpu.memory_space<vmem>>, %arg6: memref<1x768xf32, #tpu.memory_space<vmem>>, %arg7: memref<1x256xf32, #tpu.memory_space<vmem>>, %arg8: memref<8x256xf32, #tpu.memory_space<vmem>>, %arg9: memref<8x256xf32, #tpu.memory_space<vmem>>, %arg10: memref<8x768xf32, #tpu.memory_space<vmem>>) attributes {dimension_semantics = [#tpu.dimension_semantics<arbitrary>], iteration_bounds = array<i64: 1>, scalar_prefetch = 1 : i64, scratch_operands = 2 : i64, tpu.core_type = #tpu.core_type<tc>, window_params = [{pipeline_mode = #tpu.pipeline_mode<synchronous>, transform_indices = @transform_0, window_bounds = array<i64: 64, 1, 256>}, {pipeline_mode = #tpu.pipeline_mode<synchronous>, transform_indices = @transform_1, window_bounds = array<i64: 256, 768>}, {pipeline_mode = #tpu.pipeline_mode<synchronous>, transform_indices = @transform_2, window_bounds = array<i64: 256, 768>}, {pipeline_mode = #tpu.pipeline_mode<synchronous>, transform_indices = @transform_3, window_bounds = array<i64: 1, 768>}, {pipeline_mode = #tpu.pipeline_mode<synchronous>, transform_indices = @transform_4, window_bounds = array<i64: 1, 768>}, {pipeline_mode = #tpu.pipeline_mode<synchronous>, transform_indices = @transform_5, window_bounds = array<i64: 1, 256>}, {pipeline_mode = #tpu.pipeline_mode<synchronous>, transform_indices = @transform_6, window_bounds = array<i64: 8, 256>}]} {
    %c0 = arith.constant 0 : index
    %0 = memref.load %arg1[%c0] : memref<8xi32, #tpu.memory_space<smem>>
    %1 = arith.index_cast %0 : i32 to index
    %c0_0 = arith.constant 0 : index
    %c0_1 = arith.constant 0 : index
    %2 = vector.load %arg2[%1, %c0_0, %c0_1] : memref<64x1x256xf32, #tpu.memory_space<vmem>>, vector<1x1x256xf32>
    %3 = vector.shape_cast %2 : vector<1x1x256xf32> to vector<1x256xf32>
    %c0_2 = arith.constant 0 : index
    %c0_3 = arith.constant 0 : index
    %4 = vector.load %arg9[%c0_2, %c0_3] : memref<8x256xf32, #tpu.memory_space<vmem>>, vector<1x256xf32>
    tpu.vector_store %arg9[%c0_2, %c0_3], %3 {strides = array<i32>} : memref<8x256xf32, #tpu.memory_space<vmem>>, vector<1x256xf32>,
    %c1 = arith.constant 1 : index
    %5 = memref.load %arg1[%c1] : memref<8xi32, #tpu.memory_space<smem>>
    %6 = arith.index_cast %5 : i32 to index
    %c0_4 = arith.constant 0 : index
    %c0_5 = arith.constant 0 : index
    %7 = vector.load %arg2[%6, %c0_4, %c0_5] : memref<64x1x256xf32, #tpu.memory_space<vmem>>, vector<1x1x256xf32>
    %8 = vector.shape_cast %7 : vector<1x1x256xf32> to vector<1x256xf32>
    %c1_6 = arith.constant 1 : index
    %c0_7 = arith.constant 0 : index
    %9 = vector.load %arg9[%c1_6, %c0_7] : memref<8x256xf32, #tpu.memory_space<vmem>>, vector<1x256xf32>
    tpu.vector_store %arg9[%c1_6, %c0_7], %8 {strides = array<i32>} : memref<8x256xf32, #tpu.memory_space<vmem>>, vector<1x256xf32>,
    %c2 = arith.constant 2 : index
    %10 = memref.load %arg1[%c2] : memref<8xi32, #tpu.memory_space<smem>>
    %11 = arith.index_cast %10 : i32 to index
    %c0_8 = arith.constant 0 : index
    %c0_9 = arith.constant 0 : index
    %12 = vector.load %arg2[%11, %c0_8, %c0_9] : memref<64x1x256xf32, #tpu.memory_space<vmem>>, vector<1x1x256xf32>
    %13 = vector.shape_cast %12 : vector<1x1x256xf32> to vector<1x256xf32>
    %c2_10 = arith.constant 2 : index
    %c0_11 = arith.constant 0 : index
    %14 = vector.load %arg9[%c2_10, %c0_11] : memref<8x256xf32, #tpu.memory_space<vmem>>, vector<1x256xf32>
    tpu.vector_store %arg9[%c2_10, %c0_11], %13 {strides = array<i32>} : memref<8x256xf32, #tpu.memory_space<vmem>>, vector<1x256xf32>,
    %c3 = arith.constant 3 : index
    %15 = memref.load %arg1[%c3] : memref<8xi32, #tpu.memory_space<smem>>
    %16 = arith.index_cast %15 : i32 to index
    %c0_12 = arith.constant 0 : index
    %c0_13 = arith.constant 0 : index
    %17 = vector.load %arg2[%16, %c0_12, %c0_13] : memref<64x1x256xf32, #tpu.memory_space<vmem>>, vector<1x1x256xf32>
    %18 = vector.shape_cast %17 : vector<1x1x256xf32> to vector<1x256xf32>
    %c3_14 = arith.constant 3 : index
    %c0_15 = arith.constant 0 : index
    %19 = vector.load %arg9[%c3_14, %c0_15] : memref<8x256xf32, #tpu.memory_space<vmem>>, vector<1x256xf32>
    tpu.vector_store %arg9[%c3_14, %c0_15], %18 {strides = array<i32>} : memref<8x256xf32, #tpu.memory_space<vmem>>, vector<1x256xf32>,
    %c4 = arith.constant 4 : index
    %20 = memref.load %arg1[%c4] : memref<8xi32, #tpu.memory_space<smem>>
    %21 = arith.index_cast %20 : i32 to index
    %c0_16 = arith.constant 0 : index
    %c0_17 = arith.constant 0 : index
    %22 = vector.load %arg2[%21, %c0_16, %c0_17] : memref<64x1x256xf32, #tpu.memory_space<vmem>>, vector<1x1x256xf32>
    %23 = vector.shape_cast %22 : vector<1x1x256xf32> to vector<1x256xf32>
    %c4_18 = arith.constant 4 : index
    %c0_19 = arith.constant 0 : index
    %24 = vector.load %arg9[%c4_18, %c0_19] : memref<8x256xf32, #tpu.memory_space<vmem>>, vector<1x256xf32>
    tpu.vector_store %arg9[%c4_18, %c0_19], %23 {strides = array<i32>} : memref<8x256xf32, #tpu.memory_space<vmem>>, vector<1x256xf32>,
    %c5 = arith.constant 5 : index
    %25 = memref.load %arg1[%c5] : memref<8xi32, #tpu.memory_space<smem>>
    %26 = arith.index_cast %25 : i32 to index
    %c0_20 = arith.constant 0 : index
    %c0_21 = arith.constant 0 : index
    %27 = vector.load %arg2[%26, %c0_20, %c0_21] : memref<64x1x256xf32, #tpu.memory_space<vmem>>, vector<1x1x256xf32>
    %28 = vector.shape_cast %27 : vector<1x1x256xf32> to vector<1x256xf32>
    %c5_22 = arith.constant 5 : index
    %c0_23 = arith.constant 0 : index
    %29 = vector.load %arg9[%c5_22, %c0_23] : memref<8x256xf32, #tpu.memory_space<vmem>>, vector<1x256xf32>
    tpu.vector_store %arg9[%c5_22, %c0_23], %28 {strides = array<i32>} : memref<8x256xf32, #tpu.memory_space<vmem>>, vector<1x256xf32>,
    %c6 = arith.constant 6 : index
    %30 = memref.load %arg1[%c6] : memref<8xi32, #tpu.memory_space<smem>>
    %31 = arith.index_cast %30 : i32 to index
    %c0_24 = arith.constant 0 : index
    %c0_25 = arith.constant 0 : index
    %32 = vector.load %arg2[%31, %c0_24, %c0_25] : memref<64x1x256xf32, #tpu.memory_space<vmem>>, vector<1x1x256xf32>
    %33 = vector.shape_cast %32 : vector<1x1x256xf32> to vector<1x256xf32>
    %c6_26 = arith.constant 6 : index
    %c0_27 = arith.constant 0 : index
    %34 = vector.load %arg9[%c6_26, %c0_27] : memref<8x256xf32, #tpu.memory_space<vmem>>, vector<1x256xf32>
    tpu.vector_store %arg9[%c6_26, %c0_27], %33 {strides = array<i32>} : memref<8x256xf32, #tpu.memory_space<vmem>>, vector<1x256xf32>,
    %c7 = arith.constant 7 : index
    %35 = memref.load %arg1[%c7] : memref<8xi32, #tpu.memory_space<smem>>
    %36 = arith.index_cast %35 : i32 to index
    %c0_28 = arith.constant 0 : index
    %c0_29 = arith.constant 0 : index
    %37 = vector.load %arg2[%36, %c0_28, %c0_29] : memref<64x1x256xf32, #tpu.memory_space<vmem>>, vector<1x1x256xf32>
    %38 = vector.shape_cast %37 : vector<1x1x256xf32> to vector<1x256xf32>
    %c7_30 = arith.constant 7 : index
    %c0_31 = arith.constant 0 : index
    %39 = vector.load %arg9[%c7_30, %c0_31] : memref<8x256xf32, #tpu.memory_space<vmem>>, vector<1x256xf32>
    tpu.vector_store %arg9[%c7_30, %c0_31], %38 {strides = array<i32>} : memref<8x256xf32, #tpu.memory_space<vmem>>, vector<1x256xf32>,
    %c0_32 = arith.constant 0 : index
    %c0_33 = arith.constant 0 : index
    %40 = vector.load %arg9[%c0_32, %c0_33] : memref<8x256xf32, #tpu.memory_space<vmem>>, vector<8x256xf32>
    %41 = arith.truncf %40 : vector<8x256xf32> to vector<8x256xbf16>
    %c0_34 = arith.constant 0 : index
    %c0_35 = arith.constant 0 : index
    %42 = vector.load %arg3[%c0_34, %c0_35] : memref<256x768xbf16, #tpu.memory_space<vmem>>, vector<256x768xbf16>
    %cst = arith.constant dense<0.000000e+00> : vector<8x768xf32>
    %43 = tpu.matmul %41, %42, %cst {dimension_numbers = #tpu.dot_dimension_numbers<[1], [0], [0], [1], [0, 0, 1, 1], [], []>} : vector<8x256xbf16>, vector<256x768xbf16>, vector<8x768xf32> -> vector<8x768xf32>
    %c0_36 = arith.constant 0 : index
    %c0_37 = arith.constant 0 : index
    %44 = vector.load %arg5[%c0_36, %c0_37] : memref<1x768xf32, #tpu.memory_space<vmem>>, vector<1x768xf32>
    %45 = vector.broadcast %44 : vector<1x768xf32> to vector<8x768xf32>
    %46 = arith.addf %43, %45 : vector<8x768xf32>
    %c0_38 = arith.constant 0 : index
    %c0_39 = arith.constant 0 : index
    %47 = vector.load %arg10[%c0_38, %c0_39] : memref<8x768xf32, #tpu.memory_space<vmem>>, vector<8x768xf32>
    tpu.vector_store %arg10[%c0_38, %c0_39], %46 {strides = array<i32>} : memref<8x768xf32, #tpu.memory_space<vmem>>, vector<8x768xf32>,
    %c0_40 = arith.constant 0 : index
    %c0_41 = arith.constant 0 : index
    %48 = vector.load %arg4[%c0_40, %c0_41] : memref<256x768xbf16, #tpu.memory_space<vmem>>, vector<256x768xbf16>
    %c0_42 = arith.constant 0 : index
    %c0_43 = arith.constant 0 : index
    %49 = vector.load %arg6[%c0_42, %c0_43] : memref<1x768xf32, #tpu.memory_space<vmem>>, vector<1x768xf32>
    %c0_44 = arith.constant 0 : index
    %c0_45 = arith.constant 0 : index
    %50 = vector.load %arg7[%c0_44, %c0_45] : memref<1x256xf32, #tpu.memory_space<vmem>>, vector<1x256xf32>
    %c0_i32 = arith.constant 0 : i32
    %51 = arith.index_cast %c0_i32 : i32 to index
    %c0_46 = arith.constant 0 : index
    %52 = vector.load %arg10[%51, %c0_46] : memref<8x768xf32, #tpu.memory_space<vmem>>, vector<1x768xf32>
    %53 = arith.truncf %50 : vector<1x256xf32> to vector<1x256xbf16>
    %cst_47 = arith.constant dense<0.000000e+00> : vector<1x768xf32>
    %54 = tpu.matmul %53, %48, %cst_47 {dimension_numbers = #tpu.dot_dimension_numbers<[1], [0], [0], [1], [0, 0, 1, 1], [], []>} : vector<1x256xbf16>, vector<256x768xbf16>, vector<1x768xf32> -> vector<1x768xf32>
    %55 = arith.addf %54, %49 : vector<1x768xf32>
    %56 = vector.extract_strided_slice %52 {offsets = [0, 0], sizes = [1, 256], strides = [1, 1]} : vector<1x768xf32> to vector<1x256xf32>
    %57 = vector.extract_strided_slice %55 {offsets = [0, 0], sizes = [1, 256], strides = [1, 1]} : vector<1x768xf32> to vector<1x256xf32>
    %58 = arith.addf %56, %57 : vector<1x256xf32>
    %59 = arith.negf %58 : vector<1x256xf32>
    %60 = math.exp %59 : vector<1x256xf32>
    %cst_48 = arith.constant 1.000000e+00 : f32
    %61 = vector.broadcast %cst_48 : f32 to vector<1x256xf32>
    %62 = arith.addf %61, %60 : vector<1x256xf32>
    %63 = arith.divf %61, %62 : vector<1x256xf32>
    %64 = vector.extract_strided_slice %52 {offsets = [0, 256], sizes = [1, 256], strides = [1, 1]} : vector<1x768xf32> to vector<1x256xf32>
    %65 = vector.extract_strided_slice %55 {offsets = [0, 256], sizes = [1, 256], strides = [1, 1]} : vector<1x768xf32> to vector<1x256xf32>
    %66 = arith.addf %64, %65 : vector<1x256xf32>
    %67 = arith.negf %66 : vector<1x256xf32>
    %68 = math.exp %67 : vector<1x256xf32>
    %cst_49 = arith.constant 1.000000e+00 : f32
    %69 = vector.broadcast %cst_49 : f32 to vector<1x256xf32>
    %70 = arith.addf %69, %68 : vector<1x256xf32>
    %71 = arith.divf %69, %70 : vector<1x256xf32>
    %72 = vector.extract_strided_slice %52 {offsets = [0, 512], sizes = [1, 256], strides = [1, 1]} : vector<1x768xf32> to vector<1x256xf32>
    %73 = vector.extract_strided_slice %55 {offsets = [0, 512], sizes = [1, 256], strides = [1, 1]} : vector<1x768xf32> to vector<1x256xf32>
    %74 = arith.mulf %63, %73 : vector<1x256xf32>
    %75 = arith.addf %72, %74 : vector<1x256xf32>
    %76 = math.tanh %75 : vector<1x256xf32>
    %cst_50 = arith.constant 1.000000e+00 : f32
    %77 = vector.broadcast %cst_50 : f32 to vector<1x256xf32>
    %78 = arith.subf %77, %71 : vector<1x256xf32>
    %79 = arith.mulf %78, %76 : vector<1x256xf32>
    %80 = arith.mulf %71, %50 : vector<1x256xf32>
    %81 = arith.addf %79, %80 : vector<1x256xf32>
    %82 = arith.index_cast %c0_i32 : i32 to index
    %c0_51 = arith.constant 0 : index
    %83 = vector.load %arg8[%82, %c0_51] : memref<8x256xf32, #tpu.memory_space<vmem>>, vector<1x256xf32>
    tpu.vector_store %arg8[%82, %c0_51], %81 {strides = array<i32>} : memref<8x256xf32, #tpu.memory_space<vmem>>, vector<1x256xf32>,
    %c1_i32 = arith.constant 1 : i32
    %84 = arith.index_cast %c1_i32 : i32 to index
    %c0_52 = arith.constant 0 : index
    %85 = vector.load %arg10[%84, %c0_52] : memref<8x768xf32, #tpu.memory_space<vmem>>, vector<1x768xf32>
    %86 = arith.truncf %81 : vector<1x256xf32> to vector<1x256xbf16>
    %cst_53 = arith.constant dense<0.000000e+00> : vector<1x768xf32>
    %87 = tpu.matmul %86, %48, %cst_53 {dimension_numbers = #tpu.dot_dimension_numbers<[1], [0], [0], [1], [0, 0, 1, 1], [], []>} : vector<1x256xbf16>, vector<256x768xbf16>, vector<1x768xf32> -> vector<1x768xf32>
    %88 = arith.addf %87, %49 : vector<1x768xf32>
    %89 = vector.extract_strided_slice %85 {offsets = [0, 0], sizes = [1, 256], strides = [1, 1]} : vector<1x768xf32> to vector<1x256xf32>
    %90 = vector.extract_strided_slice %88 {offsets = [0, 0], sizes = [1, 256], strides = [1, 1]} : vector<1x768xf32> to vector<1x256xf32>
    %91 = arith.addf %89, %90 : vector<1x256xf32>
    %92 = arith.negf %91 : vector<1x256xf32>
    %93 = math.exp %92 : vector<1x256xf32>
    %cst_54 = arith.constant 1.000000e+00 : f32
    %94 = vector.broadcast %cst_54 : f32 to vector<1x256xf32>
    %95 = arith.addf %94, %93 : vector<1x256xf32>
    %96 = arith.divf %94, %95 : vector<1x256xf32>
    %97 = vector.extract_strided_slice %85 {offsets = [0, 256], sizes = [1, 256], strides = [1, 1]} : vector<1x768xf32> to vector<1x256xf32>
    %98 = vector.extract_strided_slice %88 {offsets = [0, 256], sizes = [1, 256], strides = [1, 1]} : vector<1x768xf32> to vector<1x256xf32>
    %99 = arith.addf %97, %98 : vector<1x256xf32>
    %100 = arith.negf %99 : vector<1x256xf32>
    %101 = math.exp %100 : vector<1x256xf32>
    %cst_55 = arith.constant 1.000000e+00 : f32
    %102 = vector.broadcast %cst_55 : f32 to vector<1x256xf32>
    %103 = arith.addf %102, %101 : vector<1x256xf32>
    %104 = arith.divf %102, %103 : vector<1x256xf32>
    %105 = vector.extract_strided_slice %85 {offsets = [0, 512], sizes = [1, 256], strides = [1, 1]} : vector<1x768xf32> to vector<1x256xf32>
    %106 = vector.extract_strided_slice %88 {offsets = [0, 512], sizes = [1, 256], strides = [1, 1]} : vector<1x768xf32> to vector<1x256xf32>
    %107 = arith.mulf %96, %106 : vector<1x256xf32>
    %108 = arith.addf %105, %107 : vector<1x256xf32>
    %109 = math.tanh %108 : vector<1x256xf32>
    %cst_56 = arith.constant 1.000000e+00 : f32
    %110 = vector.broadcast %cst_56 : f32 to vector<1x256xf32>
    %111 = arith.subf %110, %104 : vector<1x256xf32>
    %112 = arith.mulf %111, %109 : vector<1x256xf32>
    %113 = arith.mulf %104, %81 : vector<1x256xf32>
    %114 = arith.addf %112, %113 : vector<1x256xf32>
    %115 = arith.index_cast %c1_i32 : i32 to index
    %c0_57 = arith.constant 0 : index
    %116 = vector.load %arg8[%115, %c0_57] : memref<8x256xf32, #tpu.memory_space<vmem>>, vector<1x256xf32>
    tpu.vector_store %arg8[%115, %c0_57], %114 {strides = array<i32>} : memref<8x256xf32, #tpu.memory_space<vmem>>, vector<1x256xf32>,
    %c2_i32 = arith.constant 2 : i32
    %117 = arith.index_cast %c2_i32 : i32 to index
    %c0_58 = arith.constant 0 : index
    %118 = vector.load %arg10[%117, %c0_58] : memref<8x768xf32, #tpu.memory_space<vmem>>, vector<1x768xf32>
    %119 = arith.truncf %114 : vector<1x256xf32> to vector<1x256xbf16>
    %cst_59 = arith.constant dense<0.000000e+00> : vector<1x768xf32>
    %120 = tpu.matmul %119, %48, %cst_59 {dimension_numbers = #tpu.dot_dimension_numbers<[1], [0], [0], [1], [0, 0, 1, 1], [], []>} : vector<1x256xbf16>, vector<256x768xbf16>, vector<1x768xf32> -> vector<1x768xf32>
    %121 = arith.addf %120, %49 : vector<1x768xf32>
    %122 = vector.extract_strided_slice %118 {offsets = [0, 0], sizes = [1, 256], strides = [1, 1]} : vector<1x768xf32> to vector<1x256xf32>
    %123 = vector.extract_strided_slice %121 {offsets = [0, 0], sizes = [1, 256], strides = [1, 1]} : vector<1x768xf32> to vector<1x256xf32>
    %124 = arith.addf %122, %123 : vector<1x256xf32>
    %125 = arith.negf %124 : vector<1x256xf32>
    %126 = math.exp %125 : vector<1x256xf32>
    %cst_60 = arith.constant 1.000000e+00 : f32
    %127 = vector.broadcast %cst_60 : f32 to vector<1x256xf32>
    %128 = arith.addf %127, %126 : vector<1x256xf32>
    %129 = arith.divf %127, %128 : vector<1x256xf32>
    %130 = vector.extract_strided_slice %118 {offsets = [0, 256], sizes = [1, 256], strides = [1, 1]} : vector<1x768xf32> to vector<1x256xf32>
    %131 = vector.extract_strided_slice %121 {offsets = [0, 256], sizes = [1, 256], strides = [1, 1]} : vector<1x768xf32> to vector<1x256xf32>
    %132 = arith.addf %130, %131 : vector<1x256xf32>
    %133 = arith.negf %132 : vector<1x256xf32>
    %134 = math.exp %133 : vector<1x256xf32>
    %cst_61 = arith.constant 1.000000e+00 : f32
    %135 = vector.broadcast %cst_61 : f32 to vector<1x256xf32>
    %136 = arith.addf %135, %134 : vector<1x256xf32>
    %137 = arith.divf %135, %136 : vector<1x256xf32>
    %138 = vector.extract_strided_slice %118 {offsets = [0, 512], sizes = [1, 256], strides = [1, 1]} : vector<1x768xf32> to vector<1x256xf32>
    %139 = vector.extract_strided_slice %121 {offsets = [0, 512], sizes = [1, 256], strides = [1, 1]} : vector<1x768xf32> to vector<1x256xf32>
    %140 = arith.mulf %129, %139 : vector<1x256xf32>
    %141 = arith.addf %138, %140 : vector<1x256xf32>
    %142 = math.tanh %141 : vector<1x256xf32>
    %cst_62 = arith.constant 1.000000e+00 : f32
    %143 = vector.broadcast %cst_62 : f32 to vector<1x256xf32>
    %144 = arith.subf %143, %137 : vector<1x256xf32>
    %145 = arith.mulf %144, %142 : vector<1x256xf32>
    %146 = arith.mulf %137, %114 : vector<1x256xf32>
    %147 = arith.addf %145, %146 : vector<1x256xf32>
    %148 = arith.index_cast %c2_i32 : i32 to index
    %c0_63 = arith.constant 0 : index
    %149 = vector.load %arg8[%148, %c0_63] : memref<8x256xf32, #tpu.memory_space<vmem>>, vector<1x256xf32>
    tpu.vector_store %arg8[%148, %c0_63], %147 {strides = array<i32>} : memref<8x256xf32, #tpu.memory_space<vmem>>, vector<1x256xf32>,
    %c3_i32 = arith.constant 3 : i32
    %150 = arith.index_cast %c3_i32 : i32 to index
    %c0_64 = arith.constant 0 : index
    %151 = vector.load %arg10[%150, %c0_64] : memref<8x768xf32, #tpu.memory_space<vmem>>, vector<1x768xf32>
    %152 = arith.truncf %147 : vector<1x256xf32> to vector<1x256xbf16>
    %cst_65 = arith.constant dense<0.000000e+00> : vector<1x768xf32>
    %153 = tpu.matmul %152, %48, %cst_65 {dimension_numbers = #tpu.dot_dimension_numbers<[1], [0], [0], [1], [0, 0, 1, 1], [], []>} : vector<1x256xbf16>, vector<256x768xbf16>, vector<1x768xf32> -> vector<1x768xf32>
    %154 = arith.addf %153, %49 : vector<1x768xf32>
    %155 = vector.extract_strided_slice %151 {offsets = [0, 0], sizes = [1, 256], strides = [1, 1]} : vector<1x768xf32> to vector<1x256xf32>
    %156 = vector.extract_strided_slice %154 {offsets = [0, 0], sizes = [1, 256], strides = [1, 1]} : vector<1x768xf32> to vector<1x256xf32>
    %157 = arith.addf %155, %156 : vector<1x256xf32>
    %158 = arith.negf %157 : vector<1x256xf32>
    %159 = math.exp %158 : vector<1x256xf32>
    %cst_66 = arith.constant 1.000000e+00 : f32
    %160 = vector.broadcast %cst_66 : f32 to vector<1x256xf32>
    %161 = arith.addf %160, %159 : vector<1x256xf32>
    %162 = arith.divf %160, %161 : vector<1x256xf32>
    %163 = vector.extract_strided_slice %151 {offsets = [0, 256], sizes = [1, 256], strides = [1, 1]} : vector<1x768xf32> to vector<1x256xf32>
    %164 = vector.extract_strided_slice %154 {offsets = [0, 256], sizes = [1, 256], strides = [1, 1]} : vector<1x768xf32> to vector<1x256xf32>
    %165 = arith.addf %163, %164 : vector<1x256xf32>
    %166 = arith.negf %165 : vector<1x256xf32>
    %167 = math.exp %166 : vector<1x256xf32>
    %cst_67 = arith.constant 1.000000e+00 : f32
    %168 = vector.broadcast %cst_67 : f32 to vector<1x256xf32>
    %169 = arith.addf %168, %167 : vector<1x256xf32>
    %170 = arith.divf %168, %169 : vector<1x256xf32>
    %171 = vector.extract_strided_slice %151 {offsets = [0, 512], sizes = [1, 256], strides = [1, 1]} : vector<1x768xf32> to vector<1x256xf32>
    %172 = vector.extract_strided_slice %154 {offsets = [0, 512], sizes = [1, 256], strides = [1, 1]} : vector<1x768xf32> to vector<1x256xf32>
    %173 = arith.mulf %162, %172 : vector<1x256xf32>
    %174 = arith.addf %171, %173 : vector<1x256xf32>
    %175 = math.tanh %174 : vector<1x256xf32>
    %cst_68 = arith.constant 1.000000e+00 : f32
    %176 = vector.broadcast %cst_68 : f32 to vector<1x256xf32>
    %177 = arith.subf %176, %170 : vector<1x256xf32>
    %178 = arith.mulf %177, %175 : vector<1x256xf32>
    %179 = arith.mulf %170, %147 : vector<1x256xf32>
    %180 = arith.addf %178, %179 : vector<1x256xf32>
    %181 = arith.index_cast %c3_i32 : i32 to index
    %c0_69 = arith.constant 0 : index
    %182 = vector.load %arg8[%181, %c0_69] : memref<8x256xf32, #tpu.memory_space<vmem>>, vector<1x256xf32>
    tpu.vector_store %arg8[%181, %c0_69], %180 {strides = array<i32>} : memref<8x256xf32, #tpu.memory_space<vmem>>, vector<1x256xf32>,
    %c4_i32 = arith.constant 4 : i32
    %183 = arith.index_cast %c4_i32 : i32 to index
    %c0_70 = arith.constant 0 : index
    %184 = vector.load %arg10[%183, %c0_70] : memref<8x768xf32, #tpu.memory_space<vmem>>, vector<1x768xf32>
    %185 = arith.truncf %180 : vector<1x256xf32> to vector<1x256xbf16>
    %cst_71 = arith.constant dense<0.000000e+00> : vector<1x768xf32>
    %186 = tpu.matmul %185, %48, %cst_71 {dimension_numbers = #tpu.dot_dimension_numbers<[1], [0], [0], [1], [0, 0, 1, 1], [], []>} : vector<1x256xbf16>, vector<256x768xbf16>, vector<1x768xf32> -> vector<1x768xf32>
    %187 = arith.addf %186, %49 : vector<1x768xf32>
    %188 = vector.extract_strided_slice %184 {offsets = [0, 0], sizes = [1, 256], strides = [1, 1]} : vector<1x768xf32> to vector<1x256xf32>
    %189 = vector.extract_strided_slice %187 {offsets = [0, 0], sizes = [1, 256], strides = [1, 1]} : vector<1x768xf32> to vector<1x256xf32>
    %190 = arith.addf %188, %189 : vector<1x256xf32>
    %191 = arith.negf %190 : vector<1x256xf32>
    %192 = math.exp %191 : vector<1x256xf32>
    %cst_72 = arith.constant 1.000000e+00 : f32
    %193 = vector.broadcast %cst_72 : f32 to vector<1x256xf32>
    %194 = arith.addf %193, %192 : vector<1x256xf32>
    %195 = arith.divf %193, %194 : vector<1x256xf32>
    %196 = vector.extract_strided_slice %184 {offsets = [0, 256], sizes = [1, 256], strides = [1, 1]} : vector<1x768xf32> to vector<1x256xf32>
    %197 = vector.extract_strided_slice %187 {offsets = [0, 256], sizes = [1, 256], strides = [1, 1]} : vector<1x768xf32> to vector<1x256xf32>
    %198 = arith.addf %196, %197 : vector<1x256xf32>
    %199 = arith.negf %198 : vector<1x256xf32>
    %200 = math.exp %199 : vector<1x256xf32>
    %cst_73 = arith.constant 1.000000e+00 : f32
    %201 = vector.broadcast %cst_73 : f32 to vector<1x256xf32>
    %202 = arith.addf %201, %200 : vector<1x256xf32>
    %203 = arith.divf %201, %202 : vector<1x256xf32>
    %204 = vector.extract_strided_slice %184 {offsets = [0, 512], sizes = [1, 256], strides = [1, 1]} : vector<1x768xf32> to vector<1x256xf32>
    %205 = vector.extract_strided_slice %187 {offsets = [0, 512], sizes = [1, 256], strides = [1, 1]} : vector<1x768xf32> to vector<1x256xf32>
    %206 = arith.mulf %195, %205 : vector<1x256xf32>
    %207 = arith.addf %204, %206 : vector<1x256xf32>
    %208 = math.tanh %207 : vector<1x256xf32>
    %cst_74 = arith.constant 1.000000e+00 : f32
    %209 = vector.broadcast %cst_74 : f32 to vector<1x256xf32>
    %210 = arith.subf %209, %203 : vector<1x256xf32>
    %211 = arith.mulf %210, %208 : vector<1x256xf32>
    %212 = arith.mulf %203, %180 : vector<1x256xf32>
    %213 = arith.addf %211, %212 : vector<1x256xf32>
    %214 = arith.index_cast %c4_i32 : i32 to index
    %c0_75 = arith.constant 0 : index
    %215 = vector.load %arg8[%214, %c0_75] : memref<8x256xf32, #tpu.memory_space<vmem>>, vector<1x256xf32>
    tpu.vector_store %arg8[%214, %c0_75], %213 {strides = array<i32>} : memref<8x256xf32, #tpu.memory_space<vmem>>, vector<1x256xf32>,
    %c5_i32 = arith.constant 5 : i32
    %216 = arith.index_cast %c5_i32 : i32 to index
    %c0_76 = arith.constant 0 : index
    %217 = vector.load %arg10[%216, %c0_76] : memref<8x768xf32, #tpu.memory_space<vmem>>, vector<1x768xf32>
    %218 = arith.truncf %213 : vector<1x256xf32> to vector<1x256xbf16>
    %cst_77 = arith.constant dense<0.000000e+00> : vector<1x768xf32>
    %219 = tpu.matmul %218, %48, %cst_77 {dimension_numbers = #tpu.dot_dimension_numbers<[1], [0], [0], [1], [0, 0, 1, 1], [], []>} : vector<1x256xbf16>, vector<256x768xbf16>, vector<1x768xf32> -> vector<1x768xf32>
    %220 = arith.addf %219, %49 : vector<1x768xf32>
    %221 = vector.extract_strided_slice %217 {offsets = [0, 0], sizes = [1, 256], strides = [1, 1]} : vector<1x768xf32> to vector<1x256xf32>
    %222 = vector.extract_strided_slice %220 {offsets = [0, 0], sizes = [1, 256], strides = [1, 1]} : vector<1x768xf32> to vector<1x256xf32>
    %223 = arith.addf %221, %222 : vector<1x256xf32>
    %224 = arith.negf %223 : vector<1x256xf32>
    %225 = math.exp %224 : vector<1x256xf32>
    %cst_78 = arith.constant 1.000000e+00 : f32
    %226 = vector.broadcast %cst_78 : f32 to vector<1x256xf32>
    %227 = arith.addf %226, %225 : vector<1x256xf32>
    %228 = arith.divf %226, %227 : vector<1x256xf32>
    %229 = vector.extract_strided_slice %217 {offsets = [0, 256], sizes = [1, 256], strides = [1, 1]} : vector<1x768xf32> to vector<1x256xf32>
    %230 = vector.extract_strided_slice %220 {offsets = [0, 256], sizes = [1, 256], strides = [1, 1]} : vector<1x768xf32> to vector<1x256xf32>
    %231 = arith.addf %229, %230 : vector<1x256xf32>
    %232 = arith.negf %231 : vector<1x256xf32>
    %233 = math.exp %232 : vector<1x256xf32>
    %cst_79 = arith.constant 1.000000e+00 : f32
    %234 = vector.broadcast %cst_79 : f32 to vector<1x256xf32>
    %235 = arith.addf %234, %233 : vector<1x256xf32>
    %236 = arith.divf %234, %235 : vector<1x256xf32>
    %237 = vector.extract_strided_slice %217 {offsets = [0, 512], sizes = [1, 256], strides = [1, 1]} : vector<1x768xf32> to vector<1x256xf32>
    %238 = vector.extract_strided_slice %220 {offsets = [0, 512], sizes = [1, 256], strides = [1, 1]} : vector<1x768xf32> to vector<1x256xf32>
    %239 = arith.mulf %228, %238 : vector<1x256xf32>
    %240 = arith.addf %237, %239 : vector<1x256xf32>
    %241 = math.tanh %240 : vector<1x256xf32>
    %cst_80 = arith.constant 1.000000e+00 : f32
    %242 = vector.broadcast %cst_80 : f32 to vector<1x256xf32>
    %243 = arith.subf %242, %236 : vector<1x256xf32>
    %244 = arith.mulf %243, %241 : vector<1x256xf32>
    %245 = arith.mulf %236, %213 : vector<1x256xf32>
    %246 = arith.addf %244, %245 : vector<1x256xf32>
    %247 = arith.index_cast %c5_i32 : i32 to index
    %c0_81 = arith.constant 0 : index
    %248 = vector.load %arg8[%247, %c0_81] : memref<8x256xf32, #tpu.memory_space<vmem>>, vector<1x256xf32>
    tpu.vector_store %arg8[%247, %c0_81], %246 {strides = array<i32>} : memref<8x256xf32, #tpu.memory_space<vmem>>, vector<1x256xf32>,
    %c6_i32 = arith.constant 6 : i32
    %249 = arith.index_cast %c6_i32 : i32 to index
    %c0_82 = arith.constant 0 : index
    %250 = vector.load %arg10[%249, %c0_82] : memref<8x768xf32, #tpu.memory_space<vmem>>, vector<1x768xf32>
    %251 = arith.truncf %246 : vector<1x256xf32> to vector<1x256xbf16>
    %cst_83 = arith.constant dense<0.000000e+00> : vector<1x768xf32>
    %252 = tpu.matmul %251, %48, %cst_83 {dimension_numbers = #tpu.dot_dimension_numbers<[1], [0], [0], [1], [0, 0, 1, 1], [], []>} : vector<1x256xbf16>, vector<256x768xbf16>, vector<1x768xf32> -> vector<1x768xf32>
    %253 = arith.addf %252, %49 : vector<1x768xf32>
    %254 = vector.extract_strided_slice %250 {offsets = [0, 0], sizes = [1, 256], strides = [1, 1]} : vector<1x768xf32> to vector<1x256xf32>
    %255 = vector.extract_strided_slice %253 {offsets = [0, 0], sizes = [1, 256], strides = [1, 1]} : vector<1x768xf32> to vector<1x256xf32>
    %256 = arith.addf %254, %255 : vector<1x256xf32>
    %257 = arith.negf %256 : vector<1x256xf32>
    %258 = math.exp %257 : vector<1x256xf32>
    %cst_84 = arith.constant 1.000000e+00 : f32
    %259 = vector.broadcast %cst_84 : f32 to vector<1x256xf32>
    %260 = arith.addf %259, %258 : vector<1x256xf32>
    %261 = arith.divf %259, %260 : vector<1x256xf32>
    %262 = vector.extract_strided_slice %250 {offsets = [0, 256], sizes = [1, 256], strides = [1, 1]} : vector<1x768xf32> to vector<1x256xf32>
    %263 = vector.extract_strided_slice %253 {offsets = [0, 256], sizes = [1, 256], strides = [1, 1]} : vector<1x768xf32> to vector<1x256xf32>
    %264 = arith.addf %262, %263 : vector<1x256xf32>
    %265 = arith.negf %264 : vector<1x256xf32>
    %266 = math.exp %265 : vector<1x256xf32>
    %cst_85 = arith.constant 1.000000e+00 : f32
    %267 = vector.broadcast %cst_85 : f32 to vector<1x256xf32>
    %268 = arith.addf %267, %266 : vector<1x256xf32>
    %269 = arith.divf %267, %268 : vector<1x256xf32>
    %270 = vector.extract_strided_slice %250 {offsets = [0, 512], sizes = [1, 256], strides = [1, 1]} : vector<1x768xf32> to vector<1x256xf32>
    %271 = vector.extract_strided_slice %253 {offsets = [0, 512], sizes = [1, 256], strides = [1, 1]} : vector<1x768xf32> to vector<1x256xf32>
    %272 = arith.mulf %261, %271 : vector<1x256xf32>
    %273 = arith.addf %270, %272 : vector<1x256xf32>
    %274 = math.tanh %273 : vector<1x256xf32>
    %cst_86 = arith.constant 1.000000e+00 : f32
    %275 = vector.broadcast %cst_86 : f32 to vector<1x256xf32>
    %276 = arith.subf %275, %269 : vector<1x256xf32>
    %277 = arith.mulf %276, %274 : vector<1x256xf32>
    %278 = arith.mulf %269, %246 : vector<1x256xf32>
    %279 = arith.addf %277, %278 : vector<1x256xf32>
    %280 = arith.index_cast %c6_i32 : i32 to index
    %c0_87 = arith.constant 0 : index
    %281 = vector.load %arg8[%280, %c0_87] : memref<8x256xf32, #tpu.memory_space<vmem>>, vector<1x256xf32>
    tpu.vector_store %arg8[%280, %c0_87], %279 {strides = array<i32>} : memref<8x256xf32, #tpu.memory_space<vmem>>, vector<1x256xf32>,
    %c7_i32 = arith.constant 7 : i32
    %282 = arith.index_cast %c7_i32 : i32 to index
    %c0_88 = arith.constant 0 : index
    %283 = vector.load %arg10[%282, %c0_88] : memref<8x768xf32, #tpu.memory_space<vmem>>, vector<1x768xf32>
    %284 = arith.truncf %279 : vector<1x256xf32> to vector<1x256xbf16>
    %cst_89 = arith.constant dense<0.000000e+00> : vector<1x768xf32>
    %285 = tpu.matmul %284, %48, %cst_89 {dimension_numbers = #tpu.dot_dimension_numbers<[1], [0], [0], [1], [0, 0, 1, 1], [], []>} : vector<1x256xbf16>, vector<256x768xbf16>, vector<1x768xf32> -> vector<1x768xf32>
    %286 = arith.addf %285, %49 : vector<1x768xf32>
    %287 = vector.extract_strided_slice %283 {offsets = [0, 0], sizes = [1, 256], strides = [1, 1]} : vector<1x768xf32> to vector<1x256xf32>
    %288 = vector.extract_strided_slice %286 {offsets = [0, 0], sizes = [1, 256], strides = [1, 1]} : vector<1x768xf32> to vector<1x256xf32>
    %289 = arith.addf %287, %288 : vector<1x256xf32>
    %290 = arith.negf %289 : vector<1x256xf32>
    %291 = math.exp %290 : vector<1x256xf32>
    %cst_90 = arith.constant 1.000000e+00 : f32
    %292 = vector.broadcast %cst_90 : f32 to vector<1x256xf32>
    %293 = arith.addf %292, %291 : vector<1x256xf32>
    %294 = arith.divf %292, %293 : vector<1x256xf32>
    %295 = vector.extract_strided_slice %283 {offsets = [0, 256], sizes = [1, 256], strides = [1, 1]} : vector<1x768xf32> to vector<1x256xf32>
    %296 = vector.extract_strided_slice %286 {offsets = [0, 256], sizes = [1, 256], strides = [1, 1]} : vector<1x768xf32> to vector<1x256xf32>
    %297 = arith.addf %295, %296 : vector<1x256xf32>
    %298 = arith.negf %297 : vector<1x256xf32>
    %299 = math.exp %298 : vector<1x256xf32>
    %cst_91 = arith.constant 1.000000e+00 : f32
    %300 = vector.broadcast %cst_91 : f32 to vector<1x256xf32>
    %301 = arith.addf %300, %299 : vector<1x256xf32>
    %302 = arith.divf %300, %301 : vector<1x256xf32>
    %303 = vector.extract_strided_slice %283 {offsets = [0, 512], sizes = [1, 256], strides = [1, 1]} : vector<1x768xf32> to vector<1x256xf32>
    %304 = vector.extract_strided_slice %286 {offsets = [0, 512], sizes = [1, 256], strides = [1, 1]} : vector<1x768xf32> to vector<1x256xf32>
    %305 = arith.mulf %294, %304 : vector<1x256xf32>
    %306 = arith.addf %303, %305 : vector<1x256xf32>
    %307 = math.tanh %306 : vector<1x256xf32>
    %cst_92 = arith.constant 1.000000e+00 : f32
    %308 = vector.broadcast %cst_92 : f32 to vector<1x256xf32>
    %309 = arith.subf %308, %302 : vector<1x256xf32>
    %310 = arith.mulf %309, %307 : vector<1x256xf32>
    %311 = arith.mulf %302, %279 : vector<1x256xf32>
    %312 = arith.addf %310, %311 : vector<1x256xf32>
    %313 = arith.index_cast %c7_i32 : i32 to index
    %c0_93 = arith.constant 0 : index
    %314 = vector.load %arg8[%313, %c0_93] : memref<8x256xf32, #tpu.memory_space<vmem>>, vector<1x256xf32>
    tpu.vector_store %arg8[%313, %c0_93], %312 {strides = array<i32>} : memref<8x256xf32, #tpu.memory_space<vmem>>, vector<1x256xf32>,
    %c8_i32 = arith.constant 8 : i32
    return
  }
  func.func @transform_0(%arg0: i32, %arg1: memref<8xi32, #tpu.memory_space<smem>>) -> (i32, i32, i32) {
    %c0_i32 = arith.constant 0 : i32
    %c0_i32_0 = arith.constant 0 : i32
    %c0_i32_1 = arith.constant 0 : i32
    %c0_i32_2 = arith.constant 0 : i32
    return %c0_i32, %c0_i32_0, %c0_i32_1 : i32, i32, i32
  }
  func.func @transform_1(%arg0: i32, %arg1: memref<8xi32, #tpu.memory_space<smem>>) -> (i32, i32) {
    %c0_i32 = arith.constant 0 : i32
    %c0_i32_0 = arith.constant 0 : i32
    %c0_i32_1 = arith.constant 0 : i32
    return %c0_i32, %c0_i32_0 : i32, i32
  }
  func.func @transform_2(%arg0: i32, %arg1: memref<8xi32, #tpu.memory_space<smem>>) -> (i32, i32) {
    %c0_i32 = arith.constant 0 : i32
    %c0_i32_0 = arith.constant 0 : i32
    %c0_i32_1 = arith.constant 0 : i32
    return %c0_i32, %c0_i32_0 : i32, i32
  }
  func.func @transform_3(%arg0: i32, %arg1: memref<8xi32, #tpu.memory_space<smem>>) -> (i32, i32) {
    %c0_i32 = arith.constant 0 : i32
    %c0_i32_0 = arith.constant 0 : i32
    %c0_i32_1 = arith.constant 0 : i32
    return %c0_i32, %c0_i32_0 : i32, i32
  }
  func.func @transform_4(%arg0: i32, %arg1: memref<8xi32, #tpu.memory_space<smem>>) -> (i32, i32) {
    %c0_i32 = arith.constant 0 : i32
    %c0_i32_0 = arith.constant 0 : i32
    %c0_i32_1 = arith.constant 0 : i32
    return %c0_i32, %c0_i32_0 : i32, i32
  }
  func.func @transform_5(%arg0: i32, %arg1: memref<8xi32, #tpu.memory_space<smem>>) -> (i32, i32) {
    %c0_i32 = arith.constant 0 : i32
    %c0_i32_0 = arith.constant 0 : i32
    %c0_i32_1 = arith.constant 0 : i32
    return %c0_i32, %c0_i32_0 : i32, i32
  }
  func.func @transform_6(%arg0: i32, %arg1: memref<8xi32, #tpu.memory_space<smem>>) -> (i32, i32) {
    %c0_i32 = arith.constant 0 : i32
    %c0_i32_0 = arith.constant 0 : i32
    %c0_i32_1 = arith.constant 0 : i32
    return %c0_i32, %c0_i32_0 : i32, i32
  }
}

</mosaic_0001>

<bundles_post_ra>
// kernel: tpu_custom_call.1
= control target key start
LH: loop header
LB: loop body
LE: loop exit
PB: predicated region body
PF: predicated region fallthrough
CT: control target
= control target key end

     0   :  { %s5713_s0 = inlined_call_operand.hbm [shape: s32[8], index: 0, kind: input, shape index: {}]   ;;  %s5714_s1 = inlined_call_operand.hbm [shape: f32[64,1,256], index: 1, kind: input, shape index: {}]   ;;  %s5715_s2 = inlined_call_operand.hbm [shape: bf16[256,768], index: 2, kind: input, shape index: {}]   ;;  %s5716_s3 = inlined_call_operand.hbm [shape: bf16[256,768], index: 3, kind: input, shape index: {}]   ;;  %s5717_s4 = inlined_call_operand.vmem [shape: f32[1,768], index: 4, kind: input, shape index: {}]   ;;  %s5718_s5 = inlined_call_operand.vmem [shape: f32[1,768], index: 5, kind: input, shape index: {}]   ;;  %s5719_s6 = inlined_call_operand.vmem [shape: f32[1,256], index: 6, kind: input, shape index: {}]   ;;  %s5720_s7 = inlined_call_operand.hbm [shape: f32[8,256], index: 7, kind: output, shape index: {}]  }
   0x1   :  { %s4062_s26 = scalar_lea.hbm %s5713_s0, 16 }
   0x2   :  { %p4063_p0 = scmp.ne.s32.totalorder %s5713_s0, %s4062_s26  ;;  %p4066_p1 = scmp.lt.u32.totalorder %s4062_s26, %s5713_s0 }
   0x4   :  { %p4068_p2 = pnand %p4066_p1, %p4063_p0 }
   0x6   :  { %4071 = shalt.err (!%p4068_p2)  }
   0x7   :  { %s4168_s8 = smov [#allocation5]  }
   0x8   :  { %13 = dma.hbm_to_smem %s5713_s0, 16, %s4168_s8, [#allocation4] }
   0x9   :  { %4160 = dma.done.wait [#allocation4], 16 }
   0xa   :  { %4161 = vsyncadd [#allocation4], 4294967280 }
   0xb   :  { %15 = sfence }
   0xc   :  { %16 = vsyncpa [#allocation7], 0 }
   0xd   :  { %17 = vsyncpa [#allocation10], 0 }
   0xe   :  { %18 = vsyncpa [#allocation8], 0  ;;  %s4169_s11 = smov [#allocation9]   ;;  %s4072_s15 = scalar_lea.hbm %s5715_s2, 12288 }
   0xf   :  { %s36_s12 = sshll.u32 %s4169_s11, 4  ;;  %p4073_p3 = scmp.ne.s32.totalorder %s5715_s2, %s4072_s15  ;;  %s37_s12 = int_to_ptr.vmem [resolvable:$true] %s36_s12 }
  0x10   :  { %p4076_p4 = scmp.lt.u32.totalorder %s4072_s15, %s5715_s2 }
  0x12   :  { %p4078_p5 = pnand %p4076_p4, %p4073_p3 }
  0x14   :  { %4081 = shalt.err (!%p4078_p5)
}
  0x15   :  { %s4082_s0 = scalar_lea.vmem %s37_s12, 12288  ;;  %p4087_p7 = scmp.lt.s32.totalorder %s37_s12, %s37_s12 }
  0x16   :  { %p4083_p6 = scmp.ne.s32.totalorder %s37_s12, %s4082_s0  ;;  %p4088_p8 = scmp.lt.s32.totalorder %s4082_s0, %s4082_s0 }
  0x18   :  { %p4089_p9 = por %p4088_p8, %p4087_p7 }
  0x1a   :  { %p4090_p10 = pnand %p4089_p9, %p4083_p6 }
  0x1c   :  { %4093 = shalt.err (!%p4090_p10)
}
  0x1d   :  { %s4170_s20 = smov 384   ;;  %s4171_s21 = smov 24  }
  0x1e   :  { %42 = dma.hbm_to_vmem [thread:$0]  %s5715_s2, 12288, %s37_s12, [#allocation10], %s4170_s20, %s4170_s20, %s4171_s21  }
  0x1f   :  { %s4172_s24 = smov [#allocation6]   ;;  %s4094_s28 = scalar_lea.hbm %s5714_s1, 2048 }
  0x20   :  { %s24_s25 = sshll.u32 %s4172_s24, 4  ;;  %p4095_p11 = scmp.ne.s32.totalorder %s5714_s1, %s4094_s28  ;;  %s25_s25 = int_to_ptr.vmem [resolvable:$true] %s24_s25 }
  0x21   :  { %p4098_p12 = scmp.lt.u32.totalorder %s4094_s28, %s5714_s1 }
  0x23   :  { %p4100_p13 = pnand %p4098_p12, %p4095_p11 }
  0x25   :  { %4103 = shalt.err (!%p4100_p13)
}
  0x26   :  { %s4104_s10 = scalar_lea.vmem %s25_s25, 2048  ;;  %p4109_p1 = scmp.lt.s32.totalorder %s25_s25, %s25_s25 }
  0x27   :  { %p4105_p0 = scmp.ne.s32.totalorder %s25_s25, %s4104_s10  ;;  %p4110_p2 = scmp.lt.s32.totalorder %s4104_s10, %s4104_s10 }
  0x29   :  { %p4111_p3 = por %p4110_p2, %p4109_p1 }
  0x2b   :  { %p4112_p4 = pnand %p4111_p3, %p4105_p0 }
  0x2d   :  { %4115 = shalt.err (!%p4112_p4)
}
  0x2e   :  { %s4173_s2 = smov 32   ;;  %s4174_s11 = smov 2  }
  0x2f   :  { %30 = dma.hbm_to_vmem [thread:$0]  %s5714_s1, 2048, %s25_s25, [#allocation7], %s4173_s2, %s4173_s2, %s4174_s11  }
  0x30   :  { %s4175_s14 = smov [#allocation11]   ;;  %s4116_s18 = scalar_lea.hbm %s5716_s3, 12288 }
  0x31   :  { %s48_s15 = sshll.u32 %s4175_s14, 4  ;;  %p4117_p5 = scmp.ne.s32.totalorder %s5716_s3, %s4116_s18  ;;  %s49_s15 = int_to_ptr.vmem [resolvable:$true] %s48_s15 }
  0x32   :  { %p4120_p6 = scmp.lt.u32.totalorder %s4116_s18, %s5716_s3 }
  0x34   :  { %p4122_p7 = pnand %p4120_p6, %p4117_p5 }
  0x36   :  { %4125 = shalt.err (!%p4122_p7)
}
  0x37   :  { %s4126_s24 = scalar_lea.vmem %s49_s15, 12288  ;;  %p4131_p9 = scmp.lt.s32.totalorder %s49_s15, %s49_s15 }
  0x38   :  { %p4127_p8 = scmp.ne.s32.totalorder %s49_s15, %s4126_s24  ;;  %p4132_p10 = scmp.lt.s32.totalorder %s4126_s24, %s4126_s24 }
  0x3a   :  { %p4133_p11 = por %p4132_p10, %p4131_p9 }
  0x3c   :  { %p4134_p12 = pnand %p4133_p11, %p4127_p8 }
  0x3e   :  { %4137 = shalt.err (!%p4134_p12)
}
  0x3f   :  { %54 = dma.hbm_to_vmem [thread:$0]  %s5716_s3, 12288, %s49_s15, [#allocation10], %s4170_s20, %s4170_s20, %s4171_s21  }
  0x40   :  { %4162 = dma.done.wait [#allocation7], 2048  }
  0x41   :  { %4163 = vsyncadd [#allocation7], 4294965248 }
  0x42   :  { %4164 = dma.done.wait [#allocation10], 24576  }
  0x43   :  { %4165 = vsyncadd [#allocation10], 4294942720  ;;  %v3526_v0 = vld [vmem:[#allocation9 + $0x4] ss:$24 sps:$4 sm:$0xff]   ;;  %v3530_v2 = vld [vmem:[#allocation9] ss:$24 sps:$4 sm:$0xff]   ;;  %v74_v38 = vlaneseq }
  0x44   :  { %v3528_v1 = vld [vmem:[#allocation9 + $0xc] ss:$24 sps:$4 sm:$0xff]   ;;  %741 = vmatprep.subr.bf16.mxu0 %v3526_v0  ;;  %v3531_v3 = vld [vmem:[#allocation9 + $0x8] ss:$24 sps:$4 sm:$0xff]   ;;  %v3534_v5 = vld [vmem:[#allocation9 + $0x3c] ss:$24 sps:$4 sm:$0xff]  }
  0x45   :  { %782 = vmatprep.subr.bf16.mxu1 %v3528_v1  ;;  %v3532_v4 = vld [vmem:[#allocation9 + $0x34] ss:$24 sps:$4 sm:$0xff]   ;;  %742 = vmatpush1.bf16.msra.mxu0 %v3530_v2  ;;  %v3536_v6 = vld [vmem:[#allocation9 + $0x30] ss:$24 sps:$4 sm:$0xff]   ;;  %v3538_v8 = vld [vmem:[#allocation9 + $0x64] ss:$24 sps:$4 sm:$0xff]  }
  0x46   :  { %783 = vmatpush1.bf16.msra.mxu1 %v3531_v3  ;;  %743 = vmatprep.subr.bf16.mxu0 %v3532_v4  ;;  %v3537_v7 = vld [vmem:[#allocation9 + $0x38] ss:$24 sps:$4 sm:$0xff]   ;;  %v3540_v9 = vld [vmem:[#allocation9 + $0x6c] ss:$24 sps:$4 sm:$0xff]   ;;  %v3543_v11 = vld [vmem:[#allocation9 + $0x68] ss:$24 sps:$4 sm:$0xff]  }
  0x47   :  { %784 = vmatprep.subr.bf16.mxu1 %v3534_v5  ;;  %v3542_v10 = vld [vmem:[#allocation9 + $0x60] ss:$24 sps:$4 sm:$0xff]   ;;  %v3544_v12 = vld [vmem:[#allocation9 + $0x94] ss:$24 sps:$4 sm:$0xff]   ;;  %v3548_v14 = vld [vmem:[#allocation9 + $0x90] ss:$24 sps:$4 sm:$0xff]  }
  0x48   :  { %v3546_v13 = vld [vmem:[#allocation9 + $0x9c] ss:$24 sps:$4 sm:$0xff]   ;;  %v3549_v15 = vld [vmem:[#allocation9 + $0x98] ss:$24 sps:$4 sm:$0xff]   ;;  %v3552_v17 = vld [vmem:[#allocation9 + $0xcc] ss:$24 sps:$4 sm:$0xff]  }
  0x49   :  { %744 = vmatpush1.bf16.msra.mxu0 %v3536_v6  ;;  %v3550_v16 = vld [vmem:[#allocation9 + $0xc4] ss:$24 sps:$4 sm:$0xff]   ;;  %v3554_v18 = vld [vmem:[#allocation9 + $0xc0] ss:$24 sps:$4 sm:$0xff]   ;;  %v3556_v20 = vld [vmem:[#allocation9 + $0xf4] ss:$24 sps:$4 sm:$0xff]  }
  0x4a   :  { %785 = vmatpush1.bf16.msra.mxu1 %v3537_v7  ;;  %745 = vmatprep.subr.bf16.mxu0 %v3538_v8  ;;  %v3555_v19 = vld [vmem:[#allocation9 + $0xc8] ss:$24 sps:$4 sm:$0xff]   ;;  %v3558_v21 = vld [vmem:[#allocation9 + $0xfc] ss:$24 sps:$4 sm:$0xff]   ;;  %v3561_v23 = vld [vmem:[#allocation9 + $0xf8] ss:$24 sps:$4 sm:$0xff]  }
  0x4b   :  { %786 = vmatprep.subr.bf16.mxu1 %v3540_v9  ;;  %v3560_v22 = vld [vmem:[#allocation9 + $0xf0] ss:$24 sps:$4 sm:$0xff]   ;;  %v3562_v24 = vld [vmem:[#allocation9 + $0x124] ss:$24 sps:$4 sm:$0xff]   ;;  %v3566_v26 = vld [vmem:[#allocation9 + $0x120] ss:$24 sps:$4 sm:$0xff]  }
  0x4c   :  { %v3564_v25 = vld [vmem:[#allocation9 + $0x12c] ss:$24 sps:$4 sm:$0xff]   ;;  %v3567_v27 = vld [vmem:[#allocation9 + $0x128] ss:$24 sps:$4 sm:$0xff]   ;;  %s4272_s3 = sld [smem:[#allocation5]]  ;;  %s4274_s20 = sld [smem:[#allocation5 + $0x1]] }
  0x4d   :  { %746 = vmatpush1.bf16.msra.mxu0 %v3542_v10  ;;  %v3568_v28 = vld [vmem:[#allocation9 + $0x154] ss:$24 sps:$4 sm:$0xff]   ;;  %s4276_s21 = sld [smem:[#allocation5 + $0x2]]  ;;  %s4278_s26 = sld [smem:[#allocation5 + $0x3]]  ;;  %v3572_v30 = vld [vmem:[#allocation9 + $0x150] ss:$24 sps:$4 sm:$0xff]  }
  0x4e   :  { %787 = vmatpush1.bf16.msra.mxu1 %v3543_v11  ;;  %747 = vmatprep.subr.bf16.mxu0 %v3544_v12  ;;  %v3570_v29 = vld [vmem:[#allocation9 + $0x15c] ss:$24 sps:$4 sm:$0xff]   ;;  %s4280_s27 = sld [smem:[#allocation5 + $0x4]]  ;;  %v3573_v31 = vld [vmem:[#allocation9 + $0x158] ss:$24 sps:$4 sm:$0xff]   ;;  %s4282_s28 = sld [smem:[#allocation5 + $0x5]] }
  0x4f   :  { %788 = vmatprep.subr.bf16.mxu1 %v3546_v13  ;;  %v3574_v32 = vld [vmem:[#allocation9 + $0x184] ss:$24 sps:$4 sm:$0xff]   ;;  %s4284_s29 = sld [smem:[#allocation5 + $0x6]]  ;;  %s4286_s30 = sld [smem:[#allocation5 + $0x7]]  ;;  %v3578_v34 = vld [vmem:[#allocation9 + $0x180] ss:$24 sps:$4 sm:$0xff]  }
  0x50   :  { %v3576_v33 = vld [vmem:[#allocation9 + $0x18c] ss:$24 sps:$4 sm:$0xff]   ;;  %v3579_v35 = vld [vmem:[#allocation9 + $0x188] ss:$24 sps:$4 sm:$0xff]   ;;  %v3582_v37 = vld [vmem:[#allocation9 + $0x1bc] ss:$24 sps:$4 sm:$0xff]  }
  0x51   :  { %748 = vmatpush1.bf16.msra.mxu0 %v3548_v14  ;;  %v3580_v36 = vld [vmem:[#allocation9 + $0x1b4] ss:$24 sps:$4 sm:$0xff]   ;;  %v3584_v39 = vld [vmem:[#allocation9 + $0x1b0] ss:$24 sps:$4 sm:$0xff]   ;;  %v3586_v41 = vld [vmem:[#allocation9 + $0x1e4] ss:$24 sps:$4 sm:$0xff]  }
  0x52   :  { %789 = vmatpush1.bf16.msra.mxu1 %v3549_v15  ;;  %749 = vmatprep.subr.bf16.mxu0 %v3550_v16  ;;  %s3293_s8 = sshll.u32 %s4272_s3, 1  ;;  %s3295_s9 = sshll.u32 %s4274_s20, 1  ;;  %v3585_v40 = vld [vmem:[#allocation9 + $0x1b8] ss:$24 sps:$4 sm:$0xff]   ;;  %v3588_v42 = vld [vmem:[#allocation9 + $0x1ec] ss:$24 sps:$4 sm:$0xff]  }
  0x53   :  { %790 = vmatprep.subr.bf16.mxu1 %v3552_v17  ;;  %s3297_s10 = sshll.u32 %s4276_s21, 1  ;;  %s3299_s2 = sshll.u32 %s4278_s26, 1  ;;  %vm4295_vm0 = vcmp.lt.s32.totalorder %v74_v38, 256  ;;  %v5976_v43 = vmov 0  ;;  %v3590_v44 = vld [vmem:[#allocation9 + $0x1e0] ss:$24 sps:$4 sm:$0xff]  }
  0x54   :  { %s3301_s11 = sshll.u32 %s4280_s27, 1  ;;  %s3303_s12 = sshll.u32 %s4282_s28, 1  ;;  %v5977_v43 = vsel %vm4295_vm0, 4294967295, %v5976_v43  ;;  %v3591_v45 = vld [vmem:[#allocation9 + $0x1e8] ss:$24 sps:$4 sm:$0xff]  }
  0x55   :  { %750 = vmatpush1.bf16.msra.mxu0 %v3554_v18  ;;  %5978 = vst [vmem:[#allocation17_spill] sm:$0xff] %v5977_v43  ;;  %s3305_s13 = sshll.u32 %s4284_s29, 1  ;;  %s3307_s14 = sshll.u32 %s4286_s30, 1  ;;  %v3592_v46 = vld [vmem:[#allocation9 + $0x214] ss:$24 sps:$4 sm:$0xff]  }
  0x56   :  { %791 = vmatpush1.bf16.msra.mxu1 %v3555_v19  ;;  %751 = vmatprep.subr.bf16.mxu0 %v3556_v20  ;;  %v3594_v47 = vld [vmem:[#allocation9 + $0x21c] ss:$24 sps:$4 sm:$0xff]   ;;  %v3596_v48 = vld [vmem:[#allocation9 + $0x210] ss:$24 sps:$4 sm:$0xff]   ;;  %s72_s15 = scalar_lea.vmem [#allocation6], %s3293_s8  ;;  %s82_s16 = scalar_lea.vmem [#allocation6], %s3295_s9 }
  0x57   :  { %792 = vmatprep.subr.bf16.mxu1 %v3558_v21  ;;  %v3597_v49 = vld [vmem:[#allocation9 + $0x218] ss:$24 sps:$4 sm:$0xff]   ;;  %v73_v50 = vld [vmem:[%s72_s15] sm:$0x3]  ;;  %v3598_v51 = vld [vmem:[#allocation9 + $0x244] ss:$24 sps:$4 sm:$0xff]  }
  0x58   :  { %v3600_v52 = vld [vmem:[#allocation9 + $0x24c] ss:$24 sps:$4 sm:$0xff]   ;;  %78 = vst.msk [vmem:[#allocation2] ss:$8 sm:$0x3] %vm4295_vm0, %v73_v50  ;;  %s89_s17 = scalar_lea.vmem [#allocation6], %s3297_s10 }
  0x59   :  { %752 = vmatpush1.bf16.msra.mxu0 %v3560_v22  ;;  %v83_v53 = vld [vmem:[%s82_s16] sm:$0x3]  ;;  %s96_s18 = scalar_lea.vmem [#allocation6], %s3299_s2  ;;  %s103_s19 = scalar_lea.vmem [#allocation6], %s3301_s11  ;;  %v3602_v60 = vld [vmem:[#allocation9 + $0x240] ss:$24 sps:$4 sm:$0xff]  }
  0x5a   :  { %793 = vmatpush1.bf16.msra.mxu1 %v3561_v23  ;;  %753 = vmatprep.subr.bf16.mxu0 %v3562_v24  ;;  %v90_v54 = vld [vmem:[%s89_s17] sm:$0x3]  ;;  %85 = vst.msk [vmem:[#allocation2 + $0x1] ss:$8 sm:$0x3] %vm4295_vm0, %v83_v53  ;;  %s110_s0 = scalar_lea.vmem [#allocation6], %s3303_s12 }
  0x5b   :  { %794 = vmatprep.subr.bf16.mxu1 %v3564_v25  ;;  %v97_v55 = vld [vmem:[%s96_s18] sm:$0x3]  ;;  %92 = vst.msk [vmem:[#allocation2 + $0x2] ss:$8 sm:$0x3] %vm4295_vm0, %v90_v54  ;;  %s117_s22 = scalar_lea.vmem [#allocation6], %s3305_s13 }
  0x5c   :  { %99 = vst.msk [vmem:[#allocation2 + $0x3] ss:$8 sm:$0x3] %vm4295_vm0, %v97_v55  ;;  %v104_v56 = vld [vmem:[%s103_s19] sm:$0x3]  ;;  %s124_s23 = scalar_lea.vmem [#allocation6], %s3307_s14 }
  0x5d   :  { %754 = vmatpush1.bf16.msra.mxu0 %v3566_v26  ;;  %v111_v57 = vld [vmem:[%s110_s0] sm:$0x3]  ;;  %106 = vst.msk [vmem:[#allocation2 + $0x4] ss:$8 sm:$0x3] %vm4295_vm0, %v104_v56 }
  0x5e   :  { %795 = vmatpush1.bf16.msra.mxu1 %v3567_v27  ;;  %755 = vmatprep.subr.bf16.mxu0 %v3568_v28  ;;  %v118_v58 = vld [vmem:[%s117_s22] sm:$0x3]  ;;  %113 = vst.msk [vmem:[#allocation2 + $0x5] ss:$8 sm:$0x3] %vm4295_vm0, %v111_v57 }
  0x5f   :  { %796 = vmatprep.subr.bf16.mxu1 %v3570_v29  ;;  %120 = vst.msk [vmem:[#allocation2 + $0x6] ss:$8 sm:$0x3] %vm4295_vm0, %v118_v58  ;;  %v125_v59 = vld [vmem:[%s124_s23] sm:$0x3] }
  0x60   :  { %127 = vst.msk [vmem:[#allocation2 + $0x7] ss:$8 sm:$0x3] %vm4295_vm0, %v125_v59  ;;  %v3603_v61 = vld [vmem:[#allocation9 + $0x248] ss:$24 sps:$4 sm:$0xff]  }
  0x61   :  { %756 = vmatpush1.bf16.msra.mxu0 %v3572_v30  ;;  %v3604_v62 = vld [vmem:[#allocation9 + $0x274] ss:$24 sps:$4 sm:$0xff]   ;;  %v3608_v0 = vld [vmem:[#allocation9 + $0x270] ss:$24 sps:$4 sm:$0xff]   ;;  %v3610_v2 = vld [vmem:[#allocation9 + $0x2a4] ss:$24 sps:$4 sm:$0xff]  }
  0x62   :  { %797 = vmatpush1.bf16.msra.mxu1 %v3573_v31  ;;  %757 = vmatprep.subr.bf16.mxu0 %v3574_v32  ;;  %v3606_v63 = vld [vmem:[#allocation9 + $0x27c] ss:$24 sps:$4 sm:$0xff]   ;;  %v3609_v1 = vld [vmem:[#allocation9 + $0x278] ss:$24 sps:$4 sm:$0xff]   ;;  %v3612_v3 = vld [vmem:[#allocation9 + $0x2ac] ss:$24 sps:$4 sm:$0xff]  }
  0x63   :  { %798 = vmatprep.subr.bf16.mxu1 %v3576_v33  ;;  %v3614_v6 = vld [vmem:[#allocation9 + $0x2a0] ss:$24 sps:$4 sm:$0xff]   ;;  %v3616_v8 = vld [vmem:[#allocation9 + $0x2d4] ss:$24 sps:$4 sm:$0xff]   ;;  %v3620_v10 = vld [vmem:[#allocation9 + $0x2d0] ss:$24 sps:$4 sm:$0xff]  }
  0x64   :  { %v3615_v7 = vld [vmem:[#allocation9 + $0x2a8] ss:$24 sps:$4 sm:$0xff]   ;;  %v3618_v9 = vld [vmem:[#allocation9 + $0x2dc] ss:$24 sps:$4 sm:$0xff]   ;;  %v3621_v11 = vld [vmem:[#allocation9 + $0x2d8] ss:$24 sps:$4 sm:$0xff]  }
  0x65   :  { %758 = vmatpush1.bf16.msra.mxu0 %v3578_v34  ;;  %v3624_v13 = vld [vmem:[#allocation9 + $0x14] ss:$24 sps:$4 sm:$0xff]   ;;  %v4331_v14 = vld [vmem:[#allocation11 + $0x4] ss:$24 sps:$4 sm:$0xff]   ;;  %v3622_v16 = vld [vmem:[#allocation9 + $0x10] ss:$24 sps:$4 sm:$0xff]  }
  0x66   :  { %799 = vmatpush1.bf16.msra.mxu1 %v3579_v35  ;;  %759 = vmatprep.subr.bf16.mxu0 %v3580_v36  ;;  %v4335_v17 = vld [vmem:[#allocation11] ss:$24 sps:$4 sm:$0xff]   ;;  %v3630_v18 = vld [vmem:[#allocation9 + $0x44] ss:$24 sps:$4 sm:$0xff]   ;;  %v4338_v19 = vld [vmem:[#allocation11 + $0x34] ss:$24 sps:$4 sm:$0xff]  }
  0x67   :  { %800 = vmatprep.subr.bf16.mxu1 %v3582_v37  ;;  %v130_v4 = vld [vmem:[#allocation2 + $0x8] sm:$0xff]  ;;  %v129_v12 = vld [vmem:[#allocation2] sm:$0xff]  ;;  %v4367_v36 = vshrl.u32 %v74_v38, 7 }
  0x68   :  { %v132_v5 = vpack.c.bf16 %v130_v4, %v130_v4  ;;  %v4333_v15 = vpack.c.bf16 %v129_v12, %v129_v12  ;;  %v3628_v20 = vld [vmem:[#allocation9 + $0x40] ss:$24 sps:$4 sm:$0xff]   ;;  %v4343_v21 = vld [vmem:[#allocation11 + $0x30] ss:$24 sps:$4 sm:$0xff]   ;;  %v3636_v22 = vld [vmem:[#allocation9 + $0x74] ss:$24 sps:$4 sm:$0xff]  }
  0x69   :  { %760 = vmatpush1.bf16.msra.mxu0 %v3584_v39  ;;  %v4346_v23 = vld [vmem:[#allocation11 + $0x64] ss:$24 sps:$4 sm:$0xff]   ;;  %v3634_v24 = vld [vmem:[#allocation9 + $0x70] ss:$24 sps:$4 sm:$0xff]   ;;  %v4349_v25 = vld [vmem:[#allocation11 + $0x60] ss:$24 sps:$4 sm:$0xff]  }
  0x6a   :  { %801 = vmatpush1.bf16.msra.mxu1 %v3585_v40  ;;  %761 = vmatprep.subr.bf16.mxu0 %v3586_v41  ;;  %v3642_v26 = vld [vmem:[#allocation9 + $0xa4] ss:$24 sps:$4 sm:$0xff]   ;;  %v4352_v27 = vld [vmem:[#allocation11 + $0x94] ss:$24 sps:$4 sm:$0xff]   ;;  %v3640_v28 = vld [vmem:[#allocation9 + $0xa0] ss:$24 sps:$4 sm:$0xff]  }
  0x6b   :  { %802 = vmatprep.subr.bf16.mxu1 %v3588_v42  ;;  %773 = vmatprep.mubr.bf16.mxu0 %v132_v5  ;;  %v4355_v29 = vld [vmem:[#allocation11 + $0x90] ss:$24 sps:$4 sm:$0xff]   ;;  %v3648_v30 = vld [vmem:[#allocation9 + $0xd4] ss:$24 sps:$4 sm:$0xff]   ;;  %v4358_v31 = vld [vmem:[#allocation11 + $0xc4] ss:$24 sps:$4 sm:$0xff]  }
  0x6c   :  { %814 = vmatprep.mubr.bf16.mxu1 %v132_v5  ;;  %v3646_v32 = vld [vmem:[#allocation9 + $0xd0] ss:$24 sps:$4 sm:$0xff]   ;;  %v4361_v33 = vld [vmem:[#allocation11 + $0xc0] ss:$24 sps:$4 sm:$0xff]   ;;  %v3654_v34 = vld [vmem:[#allocation9 + $0x104] ss:$24 sps:$4 sm:$0xff]  }
  0x6d   :  { %762 = vmatpush1.bf16.msra.mxu0 %v3590_v44  ;;  %v4364_v35 = vld [vmem:[#allocation11 + $0xf4] ss:$24 sps:$4 sm:$0xff]   ;;  %5979 = vst [vmem:[#allocation18_spill] sm:$0xff] %v4367_v36  ;;  %v3652_v37 = vld [vmem:[#allocation9 + $0x100] ss:$24 sps:$4 sm:$0xff]   ;;  %v4376_v42 = vsub.s32 1, %v4367_v36 }
  0x6e   :  { %803 = vmatpush1.bf16.msra.mxu1 %v3591_v45  ;;  %763 = vmatprep.subr.bf16.mxu0 %v3592_v46  ;;  %v4370_v39 = vld [vmem:[#allocation11 + $0xf0] ss:$24 sps:$4 sm:$0xff]   ;;  %v3660_v40 = vld [vmem:[#allocation9 + $0x134] ss:$24 sps:$4 sm:$0xff]   ;;  %v4373_v41 = vld [vmem:[#allocation11 + $0x124] ss:$24 sps:$4 sm:$0xff]  }
  0x6f   :  { %804 = vmatprep.subr.bf16.mxu1 %v3594_v47  ;;  %5980 = vst [vmem:[#allocation19_spill] sm:$0xff] %v4376_v42  ;;  %v3658_v44 = vld [vmem:[#allocation9 + $0x130] ss:$24 sps:$4 sm:$0xff]   ;;  %v4379_v38 = vld [vmem:[#allocation11 + $0x120] ss:$24 sps:$4 sm:$0xff]  }
  0x70   :  { %v3666_v45 = vld [vmem:[#allocation9 + $0x164] ss:$24 sps:$4 sm:$0xff]   ;;  %v4384_v46 = vld [vmem:[%s5719_s6] sm:$0x3]  ;;  %v4387_v47 = vld [vmem:[#allocation11 + $0x154] ss:$24 sps:$4 sm:$0xff]  }
  0x71   :  { %764 = vmatpush1.bf16.msra.mxu0 %v3596_v48  ;;  %5981 = vst [vmem:[#allocation20_spill] sm:$0xff] %v4384_v46  ;;  %v979_v48 = vrot.slane %v4384_v46, %v4376_v42  ;;  %v4397_v53 = vld [vmem:[#allocation11 + $0x184] ss:$24 sps:$4 sm:$0xff]   ;;  %v3670_v54 = vld [vmem:[#allocation9 + $0x190] ss:$24 sps:$4 sm:$0xff]  }
  0x72   :  { %805 = vmatpush1.bf16.msra.mxu1 %v3597_v49  ;;  %765 = vmatprep.subr.bf16.mxu0 %v3598_v51  ;;  %v3664_v49 = vld [vmem:[#allocation9 + $0x160] ss:$24 sps:$4 sm:$0xff]   ;;  %v4394_v51 = vld [vmem:[#allocation11 + $0x150] ss:$24 sps:$4 sm:$0xff]   ;;  %v3678_v56 = vld [vmem:[#allocation9 + $0x1c4] ss:$24 sps:$4 sm:$0xff]  }
  0x73   :  { %806 = vmatprep.subr.bf16.mxu1 %v3600_v52  ;;  %v4391_v50 = vpack.c.bf16 %v979_v48, %v979_v48  ;;  %v3672_v52 = vld [vmem:[#allocation9 + $0x194] ss:$24 sps:$4 sm:$0xff]   ;;  %v4401_v55 = vld [vmem:[#allocation11 + $0x180] ss:$24 sps:$4 sm:$0xff]   ;;  %v4407_v59 = vld [vmem:[#allocation11 + $0x1b0] ss:$24 sps:$4 sm:$0xff]  }
  0x74   :  { %v4404_v57 = vld [vmem:[#allocation11 + $0x1b4] ss:$24 sps:$4 sm:$0xff]   ;;  %v3676_v58 = vld [vmem:[#allocation9 + $0x1c0] ss:$24 sps:$4 sm:$0xff]   ;;  %v4466_v48 = vld [vmem:[#allocation11 + $0x44] ss:$24 sps:$4 sm:$0xff]  }
  0x75   :  { %766 = vmatpush1.bf16.msra.mxu0 %v3602_v60  ;;  %v3684_v60 = vld [vmem:[#allocation9 + $0x1f4] ss:$24 sps:$4 sm:$0xff]   ;;  %5990 = vst [vmem:[#allocation29_spill] sm:$0xff] %v4466_v48  ;;  %v4590_v42 = vld [vmem:[#allocation11 + $0x224] ss:$24 sps:$4 sm:$0xff]  }
  0x76   :  { %807 = vmatpush1.bf16.msra.mxu1 %v3603_v61  ;;  %767 = vmatprep.subr.bf16.mxu0 %v3604_v62  ;;  %v4410_v61 = vld [vmem:[#allocation11 + $0x1e4] ss:$24 sps:$4 sm:$0xff]   ;;  %v3682_v62 = vld [vmem:[#allocation9 + $0x1f0] ss:$24 sps:$4 sm:$0xff]   ;;  %v3696_v4 = vld [vmem:[#allocation9 + $0x254] ss:$24 sps:$4 sm:$0xff]  }
  0x77   :  { %808 = vmatprep.subr.bf16.mxu1 %v3606_v63  ;;  %v4413_v63 = vld [vmem:[#allocation11 + $0x1e0] ss:$24 sps:$4 sm:$0xff]   ;;  %v3708_v12 = vld [vmem:[#allocation9 + $0x2b4] ss:$24 sps:$4 sm:$0xff]   ;;  %6027 = vst [vmem:[#allocation66_spill] sm:$0xff] %v4590_v42 }
  0x78   :  { %v4578_v43 = vld [vmem:[#allocation11 + $0x1f4] ss:$24 sps:$4 sm:$0xff]  }
  0x79   :  { %768 = vmatpush1.bf16.msra.mxu0 %v3608_v0  ;;  %v3690_v0 = vld [vmem:[#allocation9 + $0x224] ss:$24 sps:$4 sm:$0xff]   ;;  %6023 = vst [vmem:[#allocation62_spill] sm:$0xff] %v4578_v43 }
  0x7a   :  { %809 = vmatpush1.bf16.msra.mxu1 %v3609_v1  ;;  %769 = vmatprep.subr.bf16.mxu0 %v3610_v2  ;;  %v4416_v1 = vld [vmem:[#allocation11 + $0x214] ss:$24 sps:$4 sm:$0xff]   ;;  %v3688_v2 = vld [vmem:[#allocation9 + $0x220] ss:$24 sps:$4 sm:$0xff]  }
  0x7b   :  { %810 = vmatprep.subr.bf16.mxu1 %v3612_v3  ;;  %v4419_v3 = vld [vmem:[#allocation11 + $0x210] ss:$24 sps:$4 sm:$0xff]  }
  0x7d   :  { %770 = vmatpush1.bf16.msra.mxu0 %v3614_v6  ;;  %v3694_v6 = vld [vmem:[#allocation9 + $0x250] ss:$24 sps:$4 sm:$0xff]  }
  0x7e   :  { %811 = vmatpush1.bf16.msra.mxu1 %v3615_v7  ;;  %771 = vmatprep.subr.bf16.mxu0 %v3616_v8  ;;  %v4425_v7 = vld [vmem:[#allocation11 + $0x240] ss:$24 sps:$4 sm:$0xff]   ;;  %v3702_v8 = vld [vmem:[#allocation9 + $0x284] ss:$24 sps:$4 sm:$0xff]  }
  0x7f   :  { %812 = vmatprep.subr.bf16.mxu1 %v3618_v9  ;;  %v4428_v9 = vld [vmem:[#allocation11 + $0x274] ss:$24 sps:$4 sm:$0xff]  }
  0x81   :  { %772 = vmatpush1.bf16.msra.mxu0 %v3620_v10  ;;  %v3700_v10 = vld [vmem:[#allocation9 + $0x280] ss:$24 sps:$4 sm:$0xff]  }
  0x82   :  { %813 = vmatpush1.bf16.msra.mxu1 %v3621_v11  ;;  %823 = vmatprep.subr.bf16.mxu0 %v3624_v13  ;;  %v4431_v11 = vld [vmem:[#allocation11 + $0x270] ss:$24 sps:$4 sm:$0xff]   ;;  %v4434_v13 = vld [vmem:[#allocation11 + $0x2a4] ss:$24 sps:$4 sm:$0xff]  }
  0x83   :  { %1495 = vmatprep.subr.bf16.mxu1 %v4331_v14  ;;  %5982 = vst [vmem:[#allocation21_spill] sm:$0xff] %v4431_v11  ;;  %5983 = vst [vmem:[#allocation22_spill] sm:$0xff] %v4434_v13 }
  0x84   :  { %774 = vmatmul.mubr.bf16.vlgmr.msra.gmra.mrb[0].mxu0 %v4333_v15 }
  0x85   :  { %815 = vmatmul.mubr.bf16.vlgmr.msra.gmra.mrb[0].mxu1 %v4333_v15  ;;  %824 = vmatpush1.bf16.msra.mxu0 %v3622_v16  ;;  %v4437_v16 = vsub.s32 0, %v4367_v36  ;;  %v4602_v36 = vld [vmem:[#allocation11 + $0x254] ss:$24 sps:$4 sm:$0xff]  }
  0x86   :  { %1496 = vmatpush1.bf16.msra.mxu1 %v4335_v17  ;;  %825 = vmatprep.subr.bf16.mxu0 %v3630_v18  ;;  %v3706_v18 = vld [vmem:[#allocation9 + $0x2b0] ss:$24 sps:$4 sm:$0xff]   ;;  %6031 = vst [vmem:[#allocation70_spill] sm:$0xff] %v4602_v36 }
  0x87   :  { %1497 = vmatprep.subr.bf16.mxu1 %v4338_v19  ;;  %855 = vmatprep.mubr.bf16.mxu0 %v132_v5  ;;  %v4422_v5 = vld [vmem:[#allocation11 + $0x244] ss:$24 sps:$4 sm:$0xff]   ;;  %5984 = vst [vmem:[#allocation23_spill] sm:$0xff] %v4437_v16 }
  0x88   :  { %1527 = vmatprep.mubr.bf16.mxu1 %v4391_v50 }
  0x89   :  { %826 = vmatpush1.bf16.msra.mxu0 %v3628_v20  ;;  %v4440_v20 = vld [vmem:[#allocation11 + $0x2a0] ss:$24 sps:$4 sm:$0xff]  }
  0x8a   :  { %1498 = vmatpush1.bf16.msra.mxu1 %v4343_v21  ;;  %827 = vmatprep.subr.bf16.mxu0 %v3636_v22  ;;  %5985 = vst [vmem:[#allocation24_spill] sm:$0xff] %v4440_v20  ;;  %v3714_v22 = vld [vmem:[#allocation9 + $0x2e4] ss:$24 sps:$4 sm:$0xff]  }
  0x8b   :  { %1499 = vmatprep.subr.bf16.mxu1 %v4346_v23 }
  0x8d   :  { %828 = vmatpush1.bf16.msra.mxu0 %v3634_v24  ;;  %v4443_v24 = vld [vmem:[#allocation11 + $0x2d4] ss:$24 sps:$4 sm:$0xff]  }
  0x8e   :  { %1500 = vmatpush1.bf16.msra.mxu1 %v4349_v25  ;;  %829 = vmatprep.subr.bf16.mxu0 %v3642_v26  ;;  %5986 = vst [vmem:[#allocation25_spill] sm:$0xff] %v4443_v24  ;;  %v3712_v26 = vld [vmem:[#allocation9 + $0x2e0] ss:$24 sps:$4 sm:$0xff]  }
  0x8f   :  { %1501 = vmatprep.subr.bf16.mxu1 %v4352_v27 }
  0x91   :  { %830 = vmatpush1.bf16.msra.mxu0 %v3640_v28  ;;  %v975_v28 = vrot.slane %v4384_v46, %v4437_v16  ;;  %v4584_v46 = vld [vmem:[#allocation11 + $0x1f0] ss:$24 sps:$4 sm:$0xff]   ;;  %v4596_v16 = vld [vmem:[#allocation11 + $0x220] ss:$24 sps:$4 sm:$0xff]  }
  0x92   :  { %1502 = vmatpush1.bf16.msra.mxu1 %v4355_v29  ;;  %831 = vmatprep.subr.bf16.mxu0 %v3648_v30  ;;  %v4448_v30 = vld [vmem:[#allocation11 + $0x2d0] ss:$24 sps:$4 sm:$0xff]   ;;  %6025 = vst [vmem:[#allocation64_spill] sm:$0xff] %v4584_v46  ;;  %6029 = vst [vmem:[#allocation68_spill] sm:$0xff] %v4596_v16 }
  0x93   :  { %1503 = vmatprep.subr.bf16.mxu1 %v4358_v31  ;;  %5987 = vst [vmem:[#allocation26_spill] sm:$0xff] %v4448_v30 }
  0x95   :  { %832 = vmatpush1.bf16.msra.mxu0 %v3646_v32  ;;  %v4451_v32 = vld [vmem:[#allocation11 + $0xc] ss:$24 sps:$4 sm:$0xff]  }
  0x96   :  { %1504 = vmatpush1.bf16.msra.mxu1 %v4361_v33  ;;  %833 = vmatprep.subr.bf16.mxu0 %v3654_v34  ;;  %v4453_v34 = vld [vmem:[#allocation11 + $0x14] ss:$24 sps:$4 sm:$0xff]  }
  0x97   :  { %1505 = vmatprep.subr.bf16.mxu1 %v4364_v35  ;;  %5988 = vst [vmem:[#allocation27_spill] sm:$0xff] %v4453_v34 }
  0x99   :  { %834 = vmatpush1.bf16.msra.mxu0 %v3652_v37  ;;  %v4455_v37 = vpack.c.bf16 %v975_v28, %v975_v28  ;;  %v4530_v28 = vld [vmem:[#allocation11 + $0x134] ss:$24 sps:$4 sm:$0xff]  }
  0x9a   :  { %1506 = vmatpush1.bf16.msra.mxu1 %v4370_v39  ;;  %835 = vmatprep.subr.bf16.mxu0 %v3660_v40  ;;  %v4458_v40 = vld [vmem:[#allocation11 + $0x8] ss:$24 sps:$4 sm:$0xff]   ;;  %6007 = vst [vmem:[#allocation46_spill] sm:$0xff] %v4530_v28 }
  0x9b   :  { %1507 = vmatprep.subr.bf16.mxu1 %v4373_v41 }
  0x9d   :  { %836 = vmatpush1.bf16.msra.mxu0 %v3658_v44  ;;  %v4460_v44 = vld [vmem:[#allocation11 + $0x10] ss:$24 sps:$4 sm:$0xff]  }
  0x9e   :  { %1508 = vmatpush1.bf16.msra.mxu1 %v4379_v38  ;;  %837 = vmatprep.subr.bf16.mxu0 %v3666_v45  ;;  %5989 = vst [vmem:[#allocation28_spill] sm:$0xff] %v4460_v44  ;;  %v4462_v45 = vld [vmem:[#allocation11 + $0x3c] ss:$24 sps:$4 sm:$0xff]  }
  0x9f   :  { %1509 = vmatprep.subr.bf16.mxu1 %v4387_v47 }
  0xa1   :  { %838 = vmatpush1.bf16.msra.mxu0 %v3664_v49  ;;  %v4472_v49 = vld [vmem:[#allocation11 + $0x38] ss:$24 sps:$4 sm:$0xff]  }
  0xa2   :  { %1510 = vmatpush1.bf16.msra.mxu1 %v4394_v51  ;;  %839 = vmatprep.subr.bf16.mxu0 %v3672_v52  ;;  %v4474_v52 = vld [vmem:[#allocation11 + $0x40] ss:$24 sps:$4 sm:$0xff]  }
  0xa3   :  { %1511 = vmatprep.subr.bf16.mxu1 %v4397_v53  ;;  %5991 = vst [vmem:[#allocation30_spill] sm:$0xff] %v4474_v52 }
  0xa5   :  { %840 = vmatpush1.bf16.msra.mxu0 %v3670_v54  ;;  %v4478_v54 = vld [vmem:[#allocation11 + $0x6c] ss:$24 sps:$4 sm:$0xff]  }
  0xa6   :  { %1512 = vmatpush1.bf16.msra.mxu1 %v4401_v55  ;;  %841 = vmatprep.subr.bf16.mxu0 %v3678_v56  ;;  %v4480_v56 = vld [vmem:[#allocation11 + $0x74] ss:$24 sps:$4 sm:$0xff]  }
  0xa7   :  { %1513 = vmatprep.subr.bf16.mxu1 %v4404_v57  ;;  %5992 = vst [vmem:[#allocation31_spill] sm:$0xff] %v4480_v56 }
  0xa9   :  { %842 = vmatpush1.bf16.msra.mxu0 %v3676_v58  ;;  %v4488_v58 = vld [vmem:[#allocation11 + $0x70] ss:$24 sps:$4 sm:$0xff]  }
  0xaa   :  { %1514 = vmatpush1.bf16.msra.mxu1 %v4407_v59  ;;  %843 = vmatprep.subr.bf16.mxu0 %v3684_v60  ;;  %5993 = vst [vmem:[#allocation32_spill] sm:$0xff] %v4488_v58  ;;  %v4492_v60 = vld [vmem:[#allocation11 + $0x9c] ss:$24 sps:$4 sm:$0xff]  }
  0xab   :  { %1515 = vmatprep.subr.bf16.mxu1 %v4410_v61  ;;  %5994 = vst [vmem:[#allocation33_spill] sm:$0xff] %v4492_v60 }
  0xad   :  { %844 = vmatpush1.bf16.msra.mxu0 %v3682_v62  ;;  %v4494_v62 = vld [vmem:[#allocation11 + $0xa4] ss:$24 sps:$4 sm:$0xff]  }
  0xae   :  { %1516 = vmatpush1.bf16.msra.mxu1 %v4413_v63  ;;  %845 = vmatprep.subr.bf16.mxu0 %v3690_v0  ;;  %5995 = vst [vmem:[#allocation34_spill] sm:$0xff] %v4494_v62  ;;  %v4500_v0 = vld [vmem:[#allocation11 + $0xa0] ss:$24 sps:$4 sm:$0xff]  }
  0xaf   :  { %1517 = vmatprep.subr.bf16.mxu1 %v4416_v1  ;;  %5997 = vst [vmem:[#allocation36_spill] sm:$0xff] %v4500_v0 }
  0xb1   :  { %846 = vmatpush1.bf16.msra.mxu0 %v3688_v2  ;;  %v4504_v2 = vld [vmem:[#allocation11 + $0xcc] ss:$24 sps:$4 sm:$0xff]  }
  0xb2   :  { %1518 = vmatpush1.bf16.msra.mxu1 %v4419_v3  ;;  %847 = vmatprep.subr.bf16.mxu0 %v3696_v4  ;;  %5998 = vst [vmem:[#allocation37_spill] sm:$0xff] %v4504_v2  ;;  %v4506_v4 = vld [vmem:[#allocation11 + $0xd4] ss:$24 sps:$4 sm:$0xff]  }
  0xb3   :  { %1519 = vmatprep.subr.bf16.mxu1 %v4422_v5  ;;  %5999 = vst [vmem:[#allocation38_spill] sm:$0xff] %v4506_v4 }
  0xb5   :  { %848 = vmatpush1.bf16.msra.mxu0 %v3694_v6  ;;  %v4510_v6 = vld [vmem:[#allocation11 + $0xc8] ss:$24 sps:$4 sm:$0xff]  }
  0xb6   :  { %1520 = vmatpush1.bf16.msra.mxu1 %v4425_v7  ;;  %849 = vmatprep.subr.bf16.mxu0 %v3702_v8  ;;  %6000 = vst [vmem:[#allocation39_spill] sm:$0xff] %v4510_v6  ;;  %v4512_v8 = vld [vmem:[#allocation11 + $0xd0] ss:$24 sps:$4 sm:$0xff]  }
  0xb7   :  { %1521 = vmatprep.subr.bf16.mxu1 %v4428_v9  ;;  %6001 = vst [vmem:[#allocation40_spill] sm:$0xff] %v4512_v8 }
  0xb9   :  { %850 = vmatpush1.bf16.msra.mxu0 %v3700_v10  ;;  %v4516_v10 = vld [vmem:[#allocation11 + $0xfc] ss:$24 sps:$4 sm:$0xff]  }
  0xba   :  { %1522 = vmatpush1.bf16.msra.mxu1 %v4431_v11  ;;  %851 = vmatprep.subr.bf16.mxu0 %v3708_v12  ;;  %6002 = vst [vmem:[#allocation41_spill] sm:$0xff] %v4516_v10  ;;  %v4518_v12 = vld [vmem:[#allocation11 + $0x104] ss:$24 sps:$4 sm:$0xff]  }
  0xbb   :  { %1523 = vmatprep.subr.bf16.mxu1 %v4434_v13  ;;  %6003 = vst [vmem:[#allocation42_spill] sm:$0xff] %v4518_v12  ;;  %v4632_v13 = vld [vmem:[#allocation11 + $0x2b0] ss:$24 sps:$4 sm:$0xff]   ;;  %v4638_v11 = vld [vmem:[#allocation11 + $0x2e4] ss:$24 sps:$4 sm:$0xff]  }
  0xbd   :  { %852 = vmatpush1.bf16.msra.mxu0 %v3706_v18  ;;  %v4522_v18 = vld [vmem:[#allocation11 + $0xf8] ss:$24 sps:$4 sm:$0xff]  }
  0xbe   :  { %1524 = vmatpush1.bf16.msra.mxu1 %v4440_v20  ;;  %853 = vmatprep.subr.bf16.mxu0 %v3714_v22  ;;  %6004 = vst [vmem:[#allocation43_spill] sm:$0xff] %v4522_v18  ;;  %v4524_v22 = vld [vmem:[#allocation11 + $0x100] ss:$24 sps:$4 sm:$0xff]   ;;  %v4626_v20 = vld [vmem:[#allocation11 + $0x2b4] ss:$24 sps:$4 sm:$0xff]  }
  0xbf   :  { %1525 = vmatprep.subr.bf16.mxu1 %v4443_v24  ;;  %6005 = vst [vmem:[#allocation44_spill] sm:$0xff] %v4524_v22  ;;  %v4620_v24 = vld [vmem:[#allocation11 + $0x280] ss:$24 sps:$4 sm:$0xff]  }
  0xc1   :  { %854 = vmatpush1.bf16.msra.mxu0 %v3712_v26  ;;  %v4528_v26 = vld [vmem:[#allocation11 + $0x12c] ss:$24 sps:$4 sm:$0xff]  }
  0xc2   :  { %1526 = vmatpush1.bf16.msra.mxu1 %v4448_v30  ;;  %1536 = vmatprep.subr.bf16.mxu0 %v4451_v32  ;;  %6006 = vst [vmem:[#allocation45_spill] sm:$0xff] %v4528_v26  ;;  %v4614_v30 = vld [vmem:[#allocation11 + $0x284] ss:$24 sps:$4 sm:$0xff]  }
  0xc3   :  { %1577 = vmatprep.subr.bf16.mxu1 %v4453_v34  ;;  %v4608_v34 = vld [vmem:[#allocation11 + $0x250] ss:$24 sps:$4 sm:$0xff]   ;;  %6035 = vst [vmem:[#allocation74_spill] sm:$0xff] %v4614_v30 }
  0xc4   :  { %856 = vmatmul.mubr.bf16.vlgmr.msra.gmra.mrb[4].mxu0 %v4333_v15  ;;  %v4486_v15 = vld [vmem:[#allocation11 + $0x68] ss:$24 sps:$4 sm:$0xff]   ;;  %6033 = vst [vmem:[#allocation72_spill] sm:$0xff] %v4608_v34 }
  0xc5   :  { %1528 = vmatmul.mubr.bf16.vlgmr.msra.gmra.mrb[4].mxu1 %v4455_v37  ;;  %1537 = vmatpush1.bf16.msra.mxu0 %v4458_v40 }
  0xc6   :  { %1578 = vmatpush1.bf16.msra.mxu1 %v4460_v44  ;;  %1538 = vmatprep.subr.bf16.mxu0 %v4462_v45  ;;  %v4572_v44 = vld [vmem:[#allocation11 + $0x1c0] ss:$24 sps:$4 sm:$0xff]  }
  0xc7   :  { %1579 = vmatprep.subr.bf16.mxu1 %v4466_v48  ;;  %1568 = vmatprep.mubr.bf16.mxu0 %v4391_v50  ;;  %v4566_v48 = vld [vmem:[#allocation11 + $0x1c4] ss:$24 sps:$4 sm:$0xff]   ;;  %6021 = vst [vmem:[#allocation60_spill] sm:$0xff] %v4572_v44 }
  0xc8   :  { %1609 = vmatprep.mubr.bf16.mxu1 %v4391_v50  ;;  %v4498_v50 = vld [vmem:[#allocation11 + $0x98] ss:$24 sps:$4 sm:$0xff]   ;;  %6019 = vst [vmem:[#allocation58_spill] sm:$0xff] %v4566_v48 }
  0xc9   :  { %1539 = vmatpush1.bf16.msra.mxu0 %v4472_v49  ;;  %5996 = vst [vmem:[#allocation35_spill] sm:$0xff] %v4498_v50 }
  0xca   :  { %1580 = vmatpush1.bf16.msra.mxu1 %v4474_v52  ;;  %1540 = vmatprep.subr.bf16.mxu0 %v4478_v54  ;;  %v4560_v52 = vld [vmem:[#allocation11 + $0x190] ss:$24 sps:$4 sm:$0xff]  }
  0xcb   :  { %1581 = vmatprep.subr.bf16.mxu1 %v4480_v56  ;;  %v4554_v56 = vld [vmem:[#allocation11 + $0x194] ss:$24 sps:$4 sm:$0xff]   ;;  %6017 = vst [vmem:[#allocation56_spill] sm:$0xff] %v4560_v52 }
  0xcc   :  { %6015 = vst [vmem:[#allocation54_spill] sm:$0xff] %v4554_v56 }
  0xcd   :  { %1541 = vmatpush1.bf16.msra.mxu0 %v4486_v15 }
  0xce   :  { %1582 = vmatpush1.bf16.msra.mxu1 %v4488_v58  ;;  %1542 = vmatprep.subr.bf16.mxu0 %v4492_v60  ;;  %v4548_v58 = vld [vmem:[#allocation11 + $0x160] ss:$24 sps:$4 sm:$0xff]  }
  0xcf   :  { %1583 = vmatprep.subr.bf16.mxu1 %v4494_v62  ;;  %v4542_v62 = vld [vmem:[#allocation11 + $0x164] ss:$24 sps:$4 sm:$0xff]   ;;  %6013 = vst [vmem:[#allocation52_spill] sm:$0xff] %v4548_v58 }
  0xd0   :  { %6011 = vst [vmem:[#allocation50_spill] sm:$0xff] %v4542_v62 }
  0xd1   :  { %1543 = vmatpush1.bf16.msra.mxu0 %v4498_v50 }
  0xd2   :  { %1584 = vmatpush1.bf16.msra.mxu1 %v4500_v0  ;;  %1544 = vmatprep.subr.bf16.mxu0 %v4504_v2  ;;  %v4536_v0 = vld [vmem:[#allocation11 + $0x130] ss:$24 sps:$4 sm:$0xff]  }
  0xd3   :  { %1585 = vmatprep.subr.bf16.mxu1 %v4506_v4  ;;  %v4534_v4 = vld [vmem:[#allocation11 + $0x128] ss:$24 sps:$4 sm:$0xff]   ;;  %6009 = vst [vmem:[#allocation48_spill] sm:$0xff] %v4536_v0 }
  0xd4   :  { %6008 = vst [vmem:[#allocation47_spill] sm:$0xff] %v4534_v4 }
  0xd5   :  { %1545 = vmatpush1.bf16.msra.mxu0 %v4510_v6 }
  0xd6   :  { %1586 = vmatpush1.bf16.msra.mxu1 %v4512_v8  ;;  %1546 = vmatprep.subr.bf16.mxu0 %v4516_v10  ;;  %v4540_v8 = vld [vmem:[#allocation11 + $0x15c] ss:$24 sps:$4 sm:$0xff]  }
  0xd7   :  { %1587 = vmatprep.subr.bf16.mxu1 %v4518_v12  ;;  %6010 = vst [vmem:[#allocation49_spill] sm:$0xff] %v4540_v8  ;;  %v4546_v12 = vld [vmem:[#allocation11 + $0x158] ss:$24 sps:$4 sm:$0xff]  }
  0xd8   :  { %6012 = vst [vmem:[#allocation51_spill] sm:$0xff] %v4546_v12 }
  0xd9   :  { %1547 = vmatpush1.bf16.msra.mxu0 %v4522_v18 }
  0xda   :  { %1588 = vmatpush1.bf16.msra.mxu1 %v4524_v22  ;;  %1548 = vmatprep.subr.bf16.mxu0 %v4528_v26  ;;  %v4552_v22 = vld [vmem:[#allocation11 + $0x18c] ss:$24 sps:$4 sm:$0xff]  }
  0xdb   :  { %1589 = vmatprep.subr.bf16.mxu1 %v4530_v28  ;;  %6014 = vst [vmem:[#allocation53_spill] sm:$0xff] %v4552_v22  ;;  %v4558_v28 = vld [vmem:[#allocation11 + $0x188] ss:$24 sps:$4 sm:$0xff]  }
  0xdc   :  { %6016 = vst [vmem:[#allocation55_spill] sm:$0xff] %v4558_v28 }
  0xdd   :  { %1549 = vmatpush1.bf16.msra.mxu0 %v4534_v4 }
  0xde   :  { %1590 = vmatpush1.bf16.msra.mxu1 %v4536_v0  ;;  %1550 = vmatprep.subr.bf16.mxu0 %v4540_v8  ;;  %v4564_v0 = vld [vmem:[#allocation11 + $0x1bc] ss:$24 sps:$4 sm:$0xff]  }
  0xdf   :  { %1591 = vmatprep.subr.bf16.mxu1 %v4542_v62  ;;  %6018 = vst [vmem:[#allocation57_spill] sm:$0xff] %v4564_v0  ;;  %v4570_v62 = vld [vmem:[#allocation11 + $0x1b8] ss:$24 sps:$4 sm:$0xff]  }
  0xe0   :  { %6020 = vst [vmem:[#allocation59_spill] sm:$0xff] %v4570_v62 }
  0xe1   :  { %1551 = vmatpush1.bf16.msra.mxu0 %v4546_v12 }
  0xe2   :  { %1592 = vmatpush1.bf16.msra.mxu1 %v4548_v58  ;;  %1552 = vmatprep.subr.bf16.mxu0 %v4552_v22  ;;  %v4576_v58 = vld [vmem:[#allocation11 + $0x1ec] ss:$24 sps:$4 sm:$0xff]  }
  0xe3   :  { %1593 = vmatprep.subr.bf16.mxu1 %v4554_v56  ;;  %6022 = vst [vmem:[#allocation61_spill] sm:$0xff] %v4576_v58  ;;  %v4582_v56 = vld [vmem:[#allocation11 + $0x1e8] ss:$24 sps:$4 sm:$0xff]  }
  0xe4   :  { %6024 = vst [vmem:[#allocation63_spill] sm:$0xff] %v4582_v56 }
  0xe5   :  { %1553 = vmatpush1.bf16.msra.mxu0 %v4558_v28 }
  0xe6   :  { %1594 = vmatpush1.bf16.msra.mxu1 %v4560_v52  ;;  %1554 = vmatprep.subr.bf16.mxu0 %v4564_v0  ;;  %v4588_v52 = vld [vmem:[#allocation11 + $0x21c] ss:$24 sps:$4 sm:$0xff]  }
  0xe7   :  { %1595 = vmatprep.subr.bf16.mxu1 %v4566_v48  ;;  %6026 = vst [vmem:[#allocation65_spill] sm:$0xff] %v4588_v52  ;;  %v4594_v48 = vld [vmem:[#allocation11 + $0x218] ss:$24 sps:$4 sm:$0xff]  }
  0xe8   :  { %6028 = vst [vmem:[#allocation67_spill] sm:$0xff] %v4594_v48 }
  0xe9   :  { %1555 = vmatpush1.bf16.msra.mxu0 %v4570_v62 }
  0xea   :  { %1596 = vmatpush1.bf16.msra.mxu1 %v4572_v44  ;;  %1556 = vmatprep.subr.bf16.mxu0 %v4576_v58  ;;  %v4600_v44 = vld [vmem:[#allocation11 + $0x24c] ss:$24 sps:$4 sm:$0xff]  }
  0xeb   :  { %1597 = vmatprep.subr.bf16.mxu1 %v4578_v43  ;;  %6030 = vst [vmem:[#allocation69_spill] sm:$0xff] %v4600_v44  ;;  %v4606_v43 = vld [vmem:[#allocation11 + $0x248] ss:$24 sps:$4 sm:$0xff]  }
  0xec   :  { %6032 = vst [vmem:[#allocation71_spill] sm:$0xff] %v4606_v43 }
  0xed   :  { %1557 = vmatpush1.bf16.msra.mxu0 %v4582_v56 }
  0xee   :  { %1598 = vmatpush1.bf16.msra.mxu1 %v4584_v46  ;;  %1558 = vmatprep.subr.bf16.mxu0 %v4588_v52  ;;  %v4612_v46 = vld [vmem:[#allocation11 + $0x27c] ss:$24 sps:$4 sm:$0xff]  }
  0xef   :  { %1599 = vmatprep.subr.bf16.mxu1 %v4590_v42  ;;  %6034 = vst [vmem:[#allocation73_spill] sm:$0xff] %v4612_v46  ;;  %v4618_v42 = vld [vmem:[#allocation11 + $0x278] ss:$24 sps:$4 sm:$0xff]  }
  0xf0   :  { %6036 = vst [vmem:[#allocation75_spill] sm:$0xff] %v4618_v42 }
  0xf1   :  { %1559 = vmatpush1.bf16.msra.mxu0 %v4594_v48 }
  0xf2   :  { %1600 = vmatpush1.bf16.msra.mxu1 %v4596_v16  ;;  %1560 = vmatprep.subr.bf16.mxu0 %v4600_v44  ;;  %v4624_v16 = vld [vmem:[#allocation11 + $0x2ac] ss:$24 sps:$4 sm:$0xff]  }
  0xf3   :  { %1601 = vmatprep.subr.bf16.mxu1 %v4602_v36  ;;  %6037 = vst [vmem:[#allocation76_spill] sm:$0xff] %v4624_v16  ;;  %v4630_v36 = vld [vmem:[#allocation11 + $0x2a8] ss:$24 sps:$4 sm:$0xff]  }
  0xf4   :  { %6038 = vst [vmem:[#allocation77_spill] sm:$0xff] %v4630_v36 }
  0xf5   :  { %1561 = vmatpush1.bf16.msra.mxu0 %v4606_v43 }
  0xf6   :  { %1602 = vmatpush1.bf16.msra.mxu1 %v4608_v34  ;;  %1562 = vmatprep.subr.bf16.mxu0 %v4612_v46  ;;  %v4636_v34 = vld [vmem:[#allocation11 + $0x2dc] ss:$24 sps:$4 sm:$0xff]  }
  0xf7   :  { %1603 = vmatprep.subr.bf16.mxu1 %v4614_v30  ;;  %6039 = vst [vmem:[#allocation78_spill] sm:$0xff] %v4636_v34  ;;  %v4642_v30 = vld [vmem:[#allocation11 + $0x2d8] ss:$24 sps:$4 sm:$0xff]  }
  0xf8   :  { %6040 = vst [vmem:[#allocation79_spill] sm:$0xff] %v4642_v30 }
  0xf9   :  { %1563 = vmatpush1.bf16.msra.mxu0 %v4618_v42  ;;  %v4644_v42 = vld [vmem:[#allocation11 + $0x2e0] ss:$24 sps:$4 sm:$0xff]  }
  0xfa   :  { %1604 = vmatpush1.bf16.msra.mxu1 %v4620_v24  ;;  %1564 = vmatprep.subr.bf16.mxu0 %v4624_v16 }
  0xfb   :  { %1605 = vmatprep.subr.bf16.mxu1 %v4626_v20 }
  0xfd   :  { %1565 = vmatpush1.bf16.msra.mxu0 %v4630_v36 }
  0xfe   :  { %1606 = vmatpush1.bf16.msra.mxu1 %v4632_v13  ;;  %1566 = vmatprep.subr.bf16.mxu0 %v4636_v34 }
  0xff   :  { %1607 = vmatprep.subr.bf16.mxu1 %v4638_v11 }
 0x101   :  { %1567 = vmatpush1.bf16.msra.mxu0 %v4642_v30 }
 0x102   :  { %1608 = vmatpush1.bf16.msra.mxu1 %v4644_v42  ;;  %1717 = vmatprep.subr.bf16.mxu0 %v4331_v14 }
 0x103   :  { %1758 = vmatprep.subr.bf16.mxu1 %v4451_v32 }
 0x104   :  { %1569 = vmatmul.mubr.bf16.vlgmr.msra.gmra.mrb[8].mxu0 %v4455_v37 }
 0x105   :  { %1610 = vmatmul.mubr.bf16.vlgmr.msra.gmra.mrb[8].mxu1 %v4455_v37  ;;  %1718 = vmatpush1.bf16.msra.mxu0 %v4335_v17  ;;  %v6041_v17 = vld [vmem:[#allocation21_spill] sm:$0xff] }
 0x106   :  { %1759 = vmatpush1.bf16.msra.mxu1 %v4458_v40  ;;  %1719 = vmatprep.subr.bf16.mxu0 %v4338_v19  ;;  %v6042_v19 = vld [vmem:[#allocation75_spill] sm:$0xff] }
 0x107   :  { %1760 = vmatprep.subr.bf16.mxu1 %v4462_v45 }
 0x109   :  { %1720 = vmatpush1.bf16.msra.mxu0 %v4343_v21  ;;  %v6043_v21 = vld [vmem:[#allocation22_spill] sm:$0xff] }
 0x10a   :  { %1761 = vmatpush1.bf16.msra.mxu1 %v4472_v49  ;;  %1721 = vmatprep.subr.bf16.mxu0 %v4346_v23  ;;  %v6044_v23 = vld [vmem:[#allocation24_spill] sm:$0xff] }
 0x10b   :  { %1762 = vmatprep.subr.bf16.mxu1 %v4478_v54 }
 0x10d   :  { %1722 = vmatpush1.bf16.msra.mxu0 %v4349_v25  ;;  %v6045_v25 = vld [vmem:[#allocation25_spill] sm:$0xff] }
 0x10e   :  { %1763 = vmatpush1.bf16.msra.mxu1 %v4486_v15  ;;  %1723 = vmatprep.subr.bf16.mxu0 %v4352_v27  ;;  %v6046_v27 = vld [vmem:[#allocation26_spill] sm:$0xff] }
 0x10f   :  { %1764 = vmatprep.subr.bf16.mxu1 %v4492_v60 }
 0x111   :  { %1724 = vmatpush1.bf16.msra.mxu0 %v4355_v29  ;;  %v6047_v29 = vld [vmem:[#allocation27_spill] sm:$0xff] }
 0x112   :  { %1765 = vmatpush1.bf16.msra.mxu1 %v4498_v50  ;;  %1725 = vmatprep.subr.bf16.mxu0 %v4358_v31  ;;  %v6048_v31 = vld [vmem:[#allocation18_spill] sm:$0xff] }
 0x113   :  { %1766 = vmatprep.subr.bf16.mxu1 %v4504_v2  ;;  %v241_v37 = vsub.s32 2, %v6048_v31  ;;  %v4176_v2 = vmov 1966171168  }
 0x114   :  { %v1622_v50 = vunpack.c.l.s4 %v4176_v2 }
 0x115   :  { %1726 = vmatpush1.bf16.msra.mxu0 %v4361_v33 }
 0x116   :  { %1767 = vmatpush1.bf16.msra.mxu1 %v4510_v6  ;;  %1727 = vmatprep.subr.bf16.mxu0 %v4364_v35 }
 0x117   :  { %1768 = vmatprep.subr.bf16.mxu1 %v4516_v10 }
 0x119   :  { %1728 = vmatpush1.bf16.msra.mxu0 %v4370_v39 }
 0x11a   :  { %1769 = vmatpush1.bf16.msra.mxu1 %v4522_v18  ;;  %1729 = vmatprep.subr.bf16.mxu0 %v4373_v41  ;;  %v966_v18 = vld [vmem:[%s5718_s5] sm:$0x3f]  ;;  %s4177_s5 = smov [#allocation12]  }
 0x11b   :  { %1770 = vmatprep.subr.bf16.mxu1 %v4528_v26  ;;  %v249_v26 = vsub.s32 4, %v6048_v31  ;;  %s3267_s20 = sshll.u32 %s4177_s5, 4  ;;  %s3268_s20 = int_to_ptr.vmem [resolvable:$true] %s3267_s20 }
 0x11c   :  { %s4138_s21 = scalar_lea.vmem %s3268_s20, 256  ;;  %p4143_p0 = scmp.lt.s32.totalorder %s3268_s20, %s3268_s20 }
 0x11d   :  { %1730 = vmatpush1.bf16.msra.mxu0 %v4379_v38  ;;  %p4139_p13 = scmp.ne.s32.totalorder %s3268_s20, %s4138_s21  ;;  %p4144_p1 = scmp.lt.s32.totalorder %s4138_s21, %s4138_s21 }
 0x11e   :  { %1771 = vmatpush1.bf16.msra.mxu1 %v4534_v4  ;;  %1731 = vmatprep.subr.bf16.mxu0 %v4387_v47 }
 0x11f   :  { %1772 = vmatprep.subr.bf16.mxu1 %v4540_v8  ;;  %p4145_p2 = por %p4144_p1, %p4143_p0 }
 0x121   :  { %1732 = vmatpush1.bf16.msra.mxu0 %v4394_v51  ;;  %p4146_p3 = pnand %p4145_p2, %p4139_p13 }
 0x122   :  { %1773 = vmatpush1.bf16.msra.mxu1 %v4546_v12  ;;  %1733 = vmatprep.subr.bf16.mxu0 %v4397_v53 }
 0x123   :  { %1774 = vmatprep.subr.bf16.mxu1 %v4552_v22 }
 0x125   :  { %1734 = vmatpush1.bf16.msra.mxu0 %v4401_v55 }
 0x126   :  { %1775 = vmatpush1.bf16.msra.mxu1 %v4558_v28  ;;  %1735 = vmatprep.subr.bf16.mxu0 %v4404_v57 }
 0x127   :  { %1776 = vmatprep.subr.bf16.mxu1 %v4564_v0 }
 0x129   :  { %1736 = vmatpush1.bf16.msra.mxu0 %v4407_v59 }
 0x12a   :  { %1777 = vmatpush1.bf16.msra.mxu1 %v4570_v62  ;;  %1737 = vmatprep.subr.bf16.mxu0 %v4410_v61 }
 0x12b   :  { %1778 = vmatprep.subr.bf16.mxu1 %v4576_v58 }
 0x12d   :  { %1738 = vmatpush1.bf16.msra.mxu0 %v4413_v63 }
 0x12e   :  { %1779 = vmatpush1.bf16.msra.mxu1 %v4582_v56  ;;  %1739 = vmatprep.subr.bf16.mxu0 %v4416_v1 }
 0x12f   :  { %1780 = vmatprep.subr.bf16.mxu1 %v4588_v52 }
 0x131   :  { %1740 = vmatpush1.bf16.msra.mxu0 %v4419_v3 }
 0x132   :  { %1781 = vmatpush1.bf16.msra.mxu1 %v4594_v48  ;;  %1741 = vmatprep.subr.bf16.mxu0 %v4422_v5 }
 0x133   :  { %1782 = vmatprep.subr.bf16.mxu1 %v4600_v44 }
 0x135   :  { %1742 = vmatpush1.bf16.msra.mxu0 %v4425_v7 }
 0x136   :  { %1783 = vmatpush1.bf16.msra.mxu1 %v4606_v43  ;;  %1743 = vmatprep.subr.bf16.mxu0 %v4428_v9 }
 0x137   :  { %1784 = vmatprep.subr.bf16.mxu1 %v4612_v46 }
 0x139   :  { %1744 = vmatpush1.bf16.msra.mxu0 %v6041_v17 }
 0x13a   :  { %1785 = vmatpush1.bf16.msra.mxu1 %v6042_v19  ;;  %1745 = vmatprep.subr.bf16.mxu0 %v6043_v21  ;;  %v6049_v19 = vld [vmem:[#allocation23_spill] sm:$0xff] }
 0x13b   :  { %1786 = vmatprep.subr.bf16.mxu1 %v4624_v16  ;;  %v229_v16 = vld [vmem:[%s5717_s4] sm:$0x3f] }
 0x13c   :  { %v234_v46 = vrot.slane %v229_v16, %v6049_v19  ;;  %v242_v43 = vrot.slane %v229_v16, %v241_v37 }
 0x13d   :  { %1746 = vmatpush1.bf16.msra.mxu0 %v6044_v23 }
 0x13e   :  { %1787 = vmatpush1.bf16.msra.mxu1 %v4630_v36  ;;  %1747 = vmatprep.subr.bf16.mxu0 %v6045_v25  ;;  %v245_v36 = vsub.s32 3, %v6048_v31 }
 0x13f   :  { %1788 = vmatprep.subr.bf16.mxu1 %v4636_v34  ;;  %v6050_v34 = vld [vmem:[#allocation19_spill] sm:$0xff] }
 0x140   :  { %v238_v44 = vrot.slane %v229_v16, %v6050_v34  ;;  %v246_v48 = vrot.slane %v229_v16, %v245_v36 }
 0x141   :  { %1748 = vmatpush1.bf16.msra.mxu0 %v6046_v27 }
 0x142   :  { %1789 = vmatpush1.bf16.msra.mxu1 %v4642_v30  ;;  %1799 = vmatprep.subr.bf16.mxu0 %v6047_v29 }
 0x143   :  { %1940 = vmatprep.subr.bf16.mxu1 %v4331_v14 }
 0x157   :  { %v775_v52 = vpop.f32.mrb[0].mxu0 }
 0x158   :  { %v816_v30 = vpop.f32.mrb[0].mxu1  ;;  %v776_v56 = vadd.f32 %v775_v52, %v234_v46  ;;  %v777_v62 = vpop.f32.mrb[1].mxu0  ;;  %v4731_v46 = vrot.slane %v966_v18, %v6049_v19 }
 0x159   :  { %v817_v58 = vadd.f32 %v816_v30, %v242_v43  ;;  %v818_v14 = vpop.f32.mrb[1].mxu1  ;;  %v778_v0 = vadd.f32 %v777_v62, %v238_v44  ;;  %v779_v22 = vpop.f32.mrb[2].mxu0  ;;  %v253_v43 = vsub.s32 5, %v6048_v31  ;;  %v250_v30 = vrot.slane %v229_v16, %v249_v26 }
 0x15a   :  { %v819_v28 = vadd.f32 %v818_v14, %v246_v48  ;;  %v820_v12 = vpop.f32.mrb[2].mxu1  ;;  %864 = vst [vmem:[#allocation3] sm:$0xff] %v776_v56  ;;  %v780_v8 = vpop.f32.mrb[3].mxu0  ;;  %6051 = vst [vmem:[#allocation21_spill] sm:$0xff] %v4731_v46  ;;  %v4734_v44 = vrot.slane %v966_v18, %v6050_v34 }
 0x15b   :  { %866 = vst [vmem:[#allocation3 + $0x10] sm:$0xff] %v817_v58  ;;  %v821_v4 = vpop.f32.mrb[3].mxu1  ;;  %865 = vst [vmem:[#allocation3 + $0x8] sm:$0xff] %v778_v0  ;;  %v254_v48 = vrot.slane %v229_v16, %v253_v43  ;;  %v1623_v16 = vunpack.c.0.s8 %v1622_v50  ;;  %v4747_v50 = vrot.slane %v966_v18, %v245_v36  ;;  %v4749_v2 = vrot.slane %v966_v18, %v253_v43 }
 0x15c   :  { %867 = vst [vmem:[#allocation3 + $0x18] sm:$0xff] %v819_v28 }
 0x15d   :  { %v4739_v60 = vsub.s32 %v1623_v16, %v6048_v31 }
 0x197   :  { %v857_v52 = vpop.f32.mrb[4].mxu0 }
 0x198   :  { %v1529_v56 = vpop.f32.mrb[4].mxu1  ;;  %v858_v58 = vadd.f32 %v857_v52, %v250_v30  ;;  %v859_v62 = vpop.f32.mrb[5].mxu0 }
 0x199   :  { %v1530_v0 = vadd.f32 %v1529_v56, %v4731_v46  ;;  %v1531_v4 = vpop.f32.mrb[5].mxu1  ;;  %v860_v8 = vadd.f32 %v859_v62, %v254_v48  ;;  %v861_v12 = vpop.f32.mrb[6].mxu0  ;;  %v968_v56 = vld [vmem:[#allocation3] ss:$8 sm:$0xf] }
 0x19a   :  { %v1532_v22 = vadd.f32 %v1531_v4, %v4734_v44  ;;  %v1533_v28 = vpop.f32.mrb[6].mxu1  ;;  %868 = vst [vmem:[#allocation3 + $0x20] sm:$0xff] %v858_v58  ;;  %v862_v14 = vpop.f32.mrb[7].mxu0 }
 0x19b   :  { %v1534_v10 = vpop.f32.mrb[7].mxu1  ;;  %869 = vst [vmem:[#allocation3 + $0x28] sm:$0xff] %v860_v8  ;;  %v4743_v8 = vrot.slane %v966_v18, %v241_v37 }
 0x19c   :  { %v1620_v6 = vcombine.low %v1530_v0, %v1532_v22  ;;  %v4745_v0 = vrot.slane %v966_v18, %v249_v26 }
 0x19d   :  { %6052 = vst [vmem:[#allocation22_spill] sm:$0xff] %v4743_v8 }
 0x19e   :  { %v1627_v30 = vrot.slane %v1620_v6, %v4739_v60  ;;  %6053 = vst [vmem:[#allocation24_spill] sm:$0xff] %v4745_v0 }
 0x1a0   :  { %v1634_v62 = vrot.slane %v1627_v30, %v4739_v60 }
 0x1a2   :  { %v969_v52 = vld [vmem:[#allocation3] ss:$8 sm:$0x30] }
 0x1a3   :  { %v970_v48 = vor.u32 %v969_v52, %v968_v56 }
 0x1a5   :  { %v1636_v4 = vadd.f32 %v1634_v62, %v970_v48 }
 0x1a7   :  { %v3500_v12 = vmul.f32 -1.442695, %v1636_v4 }
 0x1a9   :  { %3814 = vpow2.f32 %v3500_v12  ;;  %v1644_v12 = vrot.slane %v970_v48, 2 }
 0x1b3   :  { %v3815_v58 = vpop.eup %3814 }
 0x1b4   :  { %v1640_v10 = vadd.f32 1.0, %v3815_v58 }
 0x1b6   :  { %3816 = vrcp.f32 %v1640_v10 }
 0x1d7   :  { %v1570_v6 = vpop.f32.mrb[8].mxu0 }
 0x1d8   :  { %v1611_v31 = vpop.f32.mrb[8].mxu1  ;;  %v1571_v22 = vadd.f32 %v1570_v6, %v4743_v8  ;;  %v1572_v14 = vpop.f32.mrb[9].mxu0 }
 0x1d9   :  { %v1612_v28 = vadd.f32 %v1611_v31, %v4745_v0  ;;  %v1613_v16 = vpop.f32.mrb[9].mxu1  ;;  %v1573_v30 = vadd.f32 %v1572_v14, %v4747_v50  ;;  %v1574_v52 = vpop.f32.mrb[10].mxu0 }
 0x1da   :  { %v1614_v37 = vadd.f32 %v1613_v16, %v4749_v2  ;;  %v1615_v26 = vpop.f32.mrb[10].mxu1  ;;  %v1575_v56 = vpop.f32.mrb[11].mxu0  ;;  %v1690_v16 = vrot.slane %v970_v48, 4 }
 0x1db   :  { %v1616_v36 = vpop.f32.mrb[11].mxu1  ;;  %v1648_v62 = vcombine.low %v1571_v22, %v1573_v30  ;;  %v3817_v6 = vpop.eup %3816 }
 0x1dc   :  { %v1673_v18 = vcombine.low %v1612_v28, %v1614_v37  ;;  %v6054_v36 = vld [vmem:[#allocation20_spill] sm:$0xff] }
 0x1dd   :  { %v1655_v43 = vrot.slane %v1648_v62, %v4739_v60 }
 0x1de   :  { %v1680_v4 = vrot.slane %v1673_v18, %v4739_v60 }
 0x1df   :  { %v1662_v58 = vrot.slane %v1655_v43, %v4739_v60 }
 0x1e0   :  { %v1687_v10 = vrot.slane %v1680_v4, %v4739_v60 }
 0x1e1   :  { %v1664_v31 = vadd.f32 %v1662_v58, %v1644_v12  ;;  %v6056_v58 = vld [vmem:[#allocation28_spill] sm:$0xff] }
 0x1e2   :  { %v1689_v14 = vmul.f32 %v3817_v6, %v1687_v10  ;;  %v6057_v10 = vld [vmem:[#allocation29_spill] sm:$0xff]  ;;  %v4775_v6 = vld [vmem:[#allocation11] ss:$24 sps:$4 sm:$0xff]  }
 0x1e3   :  { %v3501_v0 = vmul.f32 -1.442695, %v1664_v31  ;;  %v4778_v31 = vld [vmem:[#allocation11 + $0x34] ss:$24 sps:$4 sm:$0xff]  }
 0x1e4   :  { %v1692_v56 = vadd.f32 %v1690_v16, %v1689_v14  ;;  %v6058_v14 = vld [vmem:[#allocation30_spill] sm:$0xff]  ;;  %v6059_v16 = vld [vmem:[#allocation31_spill] sm:$0xff] }
 0x1e5   :  { %3818 = vpow2.f32 %v3501_v0 }
 0x1ef   :  { %v3819_v52 = vpop.eup %3818 }
 0x1f0   :  { %v1668_v26 = vadd.f32 1.0, %v3819_v52  ;;  %v4783_v52 = vld [vmem:[#allocation11 + $0x30] ss:$24 sps:$4 sm:$0xff]  }
 0x1f2   :  { %3820 = vrcp.f32 %v1668_v26  ;;  %v4786_v26 = vld [vmem:[#allocation11 + $0x64] ss:$24 sps:$4 sm:$0xff]  }
 0x1f3   :  { %3822 = vtanh.f32 %v1692_v56  ;;  %v6060_v56 = vld [vmem:[#allocation32_spill] sm:$0xff] }
 0x1fc   :  { %v3821_v22 = vpop.eup %3820 }
 0x1fd   :  { %v1694_v28 = vsub.f32 1.0, %v3821_v22  ;;  %v3823_v30 = vpop.eup %3822  ;;  %v1696_v62 = vmul.f32 %v3821_v22, %v6054_v36  ;;  %v6061_v22 = vld [vmem:[#allocation34_spill] sm:$0xff] }
 0x1fe   :  { %v6064_v36 = vld [vmem:[#allocation38_spill] sm:$0xff] }
 0x1ff   :  { %v1695_v37 = vmul.f32 %v3823_v30, %v1694_v28  ;;  %v4791_v28 = vld [vmem:[#allocation11 + $0x60] ss:$24 sps:$4 sm:$0xff]   ;;  %v4794_v30 = vld [vmem:[#allocation11 + $0x94] ss:$24 sps:$4 sm:$0xff]  }
 0x200   :  { %6062 = vst [vmem:[#allocation25_spill] sm:$0xff] %v4794_v30 }
 0x201   :  { %v4760_v18 = vadd.f32 %v1696_v62, %v1695_v37  ;;  %v6063_v37 = vld [vmem:[#allocation36_spill] sm:$0xff] }
 0x202   :  { %v4799_v62 = vld [vmem:[#allocation11 + $0x90] ss:$24 sps:$4 sm:$0xff]  }
 0x203   :  { %1698 = vst.msk [vmem:[#allocation12] ss:$8 sm:$0x3] %vm4295_vm0, %v4760_v18  ;;  %v1712_v48 = vrot.slane %v4760_v18, %v6050_v34  ;;  %v1708_v0 = vrot.slane %v4760_v18, %v6049_v19  ;;  %6065 = vst [vmem:[#allocation26_spill] sm:$0xff] %v4799_v62 }
 0x205   :  { %v1716_v4 = vpack.c.bf16 %v1712_v48, %v1712_v48  ;;  %v4769_v12 = vpack.c.bf16 %v1708_v0, %v1708_v0  ;;  %v4802_v48 = vld [vmem:[#allocation11 + $0xc4] ss:$24 sps:$4 sm:$0xff]   ;;  %v6066_v0 = vld [vmem:[#allocation40_spill] sm:$0xff] }
 0x207   :  { %1749 = vmatprep.mubr.bf16.mxu0 %v1716_v4  ;;  %1790 = vmatprep.mubr.bf16.mxu1 %v1716_v4 }
 0x208   :  { %1750 = vmatmul.mubr.bf16.vlgmr.msra.gmra.mrb[12].mxu0 %v4769_v12  ;;  %1791 = vmatmul.mubr.bf16.vlgmr.msra.gmra.mrb[12].mxu1 %v4769_v12 }
 0x209   :  { %1800 = vmatpush1.bf16.msra.mxu0 %v6056_v58  ;;  %1831 = vmatprep.mubr.bf16.mxu0 %v1716_v4  ;;  %v6067_v4 = vld [vmem:[#allocation42_spill] sm:$0xff] }
 0x20a   :  { %1801 = vmatprep.subr.bf16.mxu0 %v6057_v10  ;;  %1941 = vmatpush1.bf16.msra.mxu1 %v4775_v6 }
 0x20b   :  { %1942 = vmatprep.subr.bf16.mxu1 %v4778_v31 }
 0x20d   :  { %1802 = vmatpush1.bf16.msra.mxu0 %v6058_v14 }
 0x20e   :  { %1803 = vmatprep.subr.bf16.mxu0 %v6059_v16  ;;  %1943 = vmatpush1.bf16.msra.mxu1 %v4783_v52 }
 0x20f   :  { %1944 = vmatprep.subr.bf16.mxu1 %v4786_v26 }
 0x211   :  { %1804 = vmatpush1.bf16.msra.mxu0 %v6060_v56 }
 0x212   :  { %1805 = vmatprep.subr.bf16.mxu0 %v6061_v22  ;;  %1945 = vmatpush1.bf16.msra.mxu1 %v4791_v28 }
 0x213   :  { %1946 = vmatprep.subr.bf16.mxu1 %v4794_v30  ;;  %v6068_v30 = vld [vmem:[#allocation44_spill] sm:$0xff] }
 0x215   :  { %1806 = vmatpush1.bf16.msra.mxu0 %v6063_v37  ;;  %v6069_v37 = vld [vmem:[#allocation46_spill] sm:$0xff] }
 0x216   :  { %1807 = vmatprep.subr.bf16.mxu0 %v6064_v36  ;;  %1947 = vmatpush1.bf16.msra.mxu1 %v4799_v62  ;;  %v6070_v62 = vld [vmem:[#allocation48_spill] sm:$0xff]  ;;  %v6071_v36 = vld [vmem:[#allocation50_spill] sm:$0xff] }
 0x217   :  { %1948 = vmatprep.subr.bf16.mxu1 %v4802_v48 }
 0x219   :  { %1808 = vmatpush1.bf16.msra.mxu0 %v6066_v0 }
 0x21a   :  { %1809 = vmatprep.subr.bf16.mxu0 %v6067_v4  ;;  %1949 = vmatpush1.bf16.msra.mxu1 %v4361_v33  ;;  %v6072_v4 = vld [vmem:[#allocation52_spill] sm:$0xff]  ;;  %v6073_v33 = vld [vmem:[#allocation54_spill] sm:$0xff] }
 0x21b   :  { %1950 = vmatprep.subr.bf16.mxu1 %v4364_v35  ;;  %v6074_v35 = vld [vmem:[#allocation56_spill] sm:$0xff] }
 0x21d   :  { %1810 = vmatpush1.bf16.msra.mxu0 %v6068_v30 }
 0x21e   :  { %1811 = vmatprep.subr.bf16.mxu0 %v6069_v37  ;;  %1951 = vmatpush1.bf16.msra.mxu1 %v4370_v39  ;;  %v6075_v39 = vld [vmem:[#allocation58_spill] sm:$0xff] }
 0x21f   :  { %1952 = vmatprep.subr.bf16.mxu1 %v4373_v41  ;;  %v6076_v41 = vld [vmem:[#allocation60_spill] sm:$0xff] }
 0x221   :  { %1812 = vmatpush1.bf16.msra.mxu0 %v6070_v62 }
 0x222   :  { %1813 = vmatprep.subr.bf16.mxu0 %v6071_v36  ;;  %1953 = vmatpush1.bf16.msra.mxu1 %v4379_v38  ;;  %v6077_v38 = vld [vmem:[#allocation62_spill] sm:$0xff] }
 0x223   :  { %1954 = vmatprep.subr.bf16.mxu1 %v4387_v47  ;;  %v6078_v47 = vld [vmem:[#allocation64_spill] sm:$0xff] }
 0x225   :  { %1814 = vmatpush1.bf16.msra.mxu0 %v6072_v4 }
 0x226   :  { %1815 = vmatprep.subr.bf16.mxu0 %v6073_v33  ;;  %1955 = vmatpush1.bf16.msra.mxu1 %v4394_v51  ;;  %v6079_v51 = vld [vmem:[#allocation66_spill] sm:$0xff] }
 0x227   :  { %1956 = vmatprep.subr.bf16.mxu1 %v4397_v53  ;;  %v6080_v53 = vld [vmem:[#allocation68_spill] sm:$0xff] }
 0x229   :  { %1816 = vmatpush1.bf16.msra.mxu0 %v6074_v35 }
 0x22a   :  { %1817 = vmatprep.subr.bf16.mxu0 %v6075_v39  ;;  %1957 = vmatpush1.bf16.msra.mxu1 %v4401_v55  ;;  %v6081_v55 = vld [vmem:[#allocation70_spill] sm:$0xff] }
 0x22b   :  { %1958 = vmatprep.subr.bf16.mxu1 %v4404_v57  ;;  %v6082_v57 = vld [vmem:[#allocation72_spill] sm:$0xff] }
 0x22d   :  { %1818 = vmatpush1.bf16.msra.mxu0 %v6076_v41 }
 0x22e   :  { %1819 = vmatprep.subr.bf16.mxu0 %v6077_v38  ;;  %1959 = vmatpush1.bf16.msra.mxu1 %v4407_v59  ;;  %v6083_v59 = vld [vmem:[#allocation74_spill] sm:$0xff] }
 0x22f   :  { %1960 = vmatprep.subr.bf16.mxu1 %v4410_v61  ;;  %v6084_v61 = vld [vmem:[#allocation33_spill] sm:$0xff] }
 0x231   :  { %1820 = vmatpush1.bf16.msra.mxu0 %v6078_v47 }
 0x232   :  { %1821 = vmatprep.subr.bf16.mxu0 %v6079_v51  ;;  %1961 = vmatpush1.bf16.msra.mxu1 %v4413_v63  ;;  %v6085_v63 = vld [vmem:[#allocation35_spill] sm:$0xff] }
 0x233   :  { %1962 = vmatprep.subr.bf16.mxu1 %v4416_v1  ;;  %v6086_v1 = vld [vmem:[#allocation37_spill] sm:$0xff] }
 0x235   :  { %1822 = vmatpush1.bf16.msra.mxu0 %v6080_v53 }
 0x236   :  { %1823 = vmatprep.subr.bf16.mxu0 %v6081_v55  ;;  %1963 = vmatpush1.bf16.msra.mxu1 %v4419_v3  ;;  %v6087_v3 = vld [vmem:[#allocation39_spill] sm:$0xff] }
 0x237   :  { %1964 = vmatprep.subr.bf16.mxu1 %v4422_v5  ;;  %v6088_v5 = vld [vmem:[#allocation41_spill] sm:$0xff] }
 0x239   :  { %1824 = vmatpush1.bf16.msra.mxu0 %v6082_v57 }
 0x23a   :  { %1825 = vmatprep.subr.bf16.mxu0 %v6083_v59  ;;  %1965 = vmatpush1.bf16.msra.mxu1 %v4425_v7  ;;  %v6089_v7 = vld [vmem:[#allocation43_spill] sm:$0xff] }
 0x23b   :  { %1966 = vmatprep.subr.bf16.mxu1 %v4428_v9  ;;  %v6090_v9 = vld [vmem:[#allocation45_spill] sm:$0xff] }
 0x23d   :  { %1826 = vmatpush1.bf16.msra.mxu0 %v4620_v24 }
 0x23e   :  { %1827 = vmatprep.subr.bf16.mxu0 %v4626_v20  ;;  %1967 = vmatpush1.bf16.msra.mxu1 %v6041_v17  ;;  %v6097_v17 = vld [vmem:[#allocation59_spill] sm:$0xff] }
 0x23f   :  { %1968 = vmatprep.subr.bf16.mxu1 %v6043_v21  ;;  %v6098_v21 = vld [vmem:[#allocation61_spill] sm:$0xff] }
 0x241   :  { %1828 = vmatpush1.bf16.msra.mxu0 %v4632_v13 }
 0x242   :  { %1829 = vmatprep.subr.bf16.mxu0 %v4638_v11  ;;  %1969 = vmatpush1.bf16.msra.mxu1 %v6044_v23  ;;  %v6099_v23 = vld [vmem:[#allocation63_spill] sm:$0xff] }
 0x243   :  { %1970 = vmatprep.subr.bf16.mxu1 %v6045_v25  ;;  %v6100_v25 = vld [vmem:[#allocation65_spill] sm:$0xff] }
 0x245   :  { %1830 = vmatpush1.bf16.msra.mxu0 %v4644_v42 }
 0x246   :  { %1981 = vmatprep.subr.bf16.mxu0 %v4451_v32  ;;  %1971 = vmatpush1.bf16.msra.mxu1 %v6046_v27  ;;  %v6091_v32 = vld [vmem:[#allocation47_spill] sm:$0xff] }
 0x247   :  { %2022 = vmatprep.subr.bf16.mxu1 %v6047_v29  ;;  %v6101_v27 = vld [vmem:[#allocation67_spill] sm:$0xff]  ;;  %v6102_v29 = vld [vmem:[#allocation69_spill] sm:$0xff] }
 0x248   :  { %1832 = vmatmul.mubr.bf16.vlgmr.msra.gmra.mrb[16].mxu0 %v4769_v12  ;;  %v6103_v12 = vld [vmem:[#allocation71_spill] sm:$0xff] }
 0x249   :  { %1982 = vmatpush1.bf16.msra.mxu0 %v4458_v40  ;;  %v6092_v40 = vld [vmem:[#allocation49_spill] sm:$0xff] }
 0x24a   :  { %1983 = vmatprep.subr.bf16.mxu0 %v4462_v45  ;;  %v6093_v45 = vld [vmem:[#allocation51_spill] sm:$0xff] }
 0x24d   :  { %1984 = vmatpush1.bf16.msra.mxu0 %v4472_v49  ;;  %v6094_v49 = vld [vmem:[#allocation53_spill] sm:$0xff] }
 0x24e   :  { %1985 = vmatprep.subr.bf16.mxu0 %v4478_v54  ;;  %v6095_v54 = vld [vmem:[#allocation55_spill] sm:$0xff] }
 0x251   :  { %1986 = vmatpush1.bf16.msra.mxu0 %v4486_v15  ;;  %v6096_v15 = vld [vmem:[#allocation57_spill] sm:$0xff] }
 0x252   :  { %1987 = vmatprep.subr.bf16.mxu0 %v6084_v61  ;;  %v6104_v61 = vld [vmem:[#allocation73_spill] sm:$0xff] }
 0x255   :  { %1988 = vmatpush1.bf16.msra.mxu0 %v6085_v63  ;;  %v6105_v63 = vld [vmem:[#allocation75_spill] sm:$0xff] }
 0x256   :  { %1989 = vmatprep.subr.bf16.mxu0 %v6086_v1 }
 0x259   :  { %1990 = vmatpush1.bf16.msra.mxu0 %v6087_v3 }
 0x25a   :  { %1991 = vmatprep.subr.bf16.mxu0 %v6088_v5 }
 0x25d   :  { %1992 = vmatpush1.bf16.msra.mxu0 %v6089_v7 }
 0x25e   :  { %1993 = vmatprep.subr.bf16.mxu0 %v6090_v9  ;;  %v1702_v9 = vld [vmem:[#allocation3 + $0x1] ss:$8 sm:$0x30] }
 0x261   :  { %1994 = vmatpush1.bf16.msra.mxu0 %v6091_v32 }
 0x262   :  { %1995 = vmatprep.subr.bf16.mxu0 %v6092_v40 }
 0x265   :  { %1996 = vmatpush1.bf16.msra.mxu0 %v6093_v45 }
 0x266   :  { %1997 = vmatprep.subr.bf16.mxu0 %v6094_v49 }
 0x269   :  { %1998 = vmatpush1.bf16.msra.mxu0 %v6095_v54  ;;  %v6106_v54 = vld [vmem:[#allocation76_spill] sm:$0xff] }
 0x26a   :  { %1999 = vmatprep.subr.bf16.mxu0 %v6096_v15  ;;  %v6107_v15 = vld [vmem:[#allocation77_spill] sm:$0xff] }
 0x26d   :  { %2000 = vmatpush1.bf16.msra.mxu0 %v6097_v17  ;;  %v6108_v17 = vld [vmem:[#allocation78_spill] sm:$0xff] }
 0x26e   :  { %2001 = vmatprep.subr.bf16.mxu0 %v6098_v21  ;;  %v6109_v21 = vld [vmem:[#allocation79_spill] sm:$0xff] }
 0x271   :  { %2002 = vmatpush1.bf16.msra.mxu0 %v6099_v23  ;;  %v4885_v23 = vld [vmem:[#allocation11 + $0x4] ss:$24 sps:$4 sm:$0xff]  }
 0x272   :  { %2003 = vmatprep.subr.bf16.mxu0 %v6100_v25  ;;  %6110 = vst [vmem:[#allocation27_spill] sm:$0xff] %v4885_v23 }
 0x275   :  { %2004 = vmatpush1.bf16.msra.mxu0 %v6101_v27 }
 0x276   :  { %2005 = vmatprep.subr.bf16.mxu0 %v6102_v29 }
 0x279   :  { %2006 = vmatpush1.bf16.msra.mxu0 %v6103_v12 }
 0x27a   :  { %2007 = vmatprep.subr.bf16.mxu0 %v6104_v61 }
 0x27d   :  { %2008 = vmatpush1.bf16.msra.mxu0 %v6105_v63 }
 0x27e   :  { %2009 = vmatprep.subr.bf16.mxu0 %v6106_v54 }
 0x281   :  { %2010 = vmatpush1.bf16.msra.mxu0 %v6107_v15 }
 0x282   :  { %2011 = vmatprep.subr.bf16.mxu0 %v6108_v17 }
 0x285   :  { %2012 = vmatpush1.bf16.msra.mxu0 %v6109_v21 }
 0x286   :  { %2163 = vmatprep.subr.bf16.mxu0 %v4885_v23 }
 0x2db   :  { %v1751_v27 = vpop.f32.mrb[12].mxu0  ;;  %v1792_v29 = vpop.f32.mrb[12].mxu1 }
 0x2dc   :  { %v1752_v12 = vadd.f32 %v1751_v27, %v4731_v46  ;;  %v1793_v61 = vadd.f32 %v1792_v29, %v4743_v8  ;;  %v1753_v25 = vpop.f32.mrb[13].mxu0  ;;  %v1794_v63 = vpop.f32.mrb[13].mxu1  ;;  %v1701_v27 = vld [vmem:[#allocation3 + $0x1] ss:$8 sm:$0xf] }
 0x2dd   :  { %v1754_v54 = vadd.f32 %v1753_v25, %v4734_v44  ;;  %v1795_v15 = vadd.f32 %v1794_v63, %v4747_v50  ;;  %v1755_v49 = vpop.f32.mrb[14].mxu0  ;;  %v1796_v17 = vpop.f32.mrb[14].mxu1  ;;  %v1703_v46 = vor.u32 %v1702_v9, %v1701_v27 }
 0x2de   :  { %v1756_v45 = vpop.f32.mrb[15].mxu0  ;;  %v1797_v21 = vpop.f32.mrb[15].mxu1 }
 0x2df   :  { %v1842_v40 = vcombine.low %v1752_v12, %v1754_v54  ;;  %v1870_v32 = vcombine.low %v1793_v61, %v1795_v15  ;;  %v1866_v49 = vrot.slane %v1703_v46, 2  ;;  %v6111_v15 = vld [vmem:[#allocation24_spill] sm:$0xff] }
 0x2e1   :  { %v1849_v23 = vrot.slane %v1842_v40, %v4739_v60  ;;  %v1877_v8 = vrot.slane %v1870_v32, %v4739_v60 }
 0x2e3   :  { %v1856_v7 = vrot.slane %v1849_v23, %v4739_v60  ;;  %v1884_v25 = vrot.slane %v1877_v8, %v4739_v60 }
 0x2e5   :  { %v1858_v29 = vadd.f32 %v1856_v7, %v1703_v46  ;;  %v1886_v17 = vadd.f32 %v1884_v25, %v1866_v49  ;;  %v1912_v49 = vrot.slane %v1703_v46, 4 }
 0x2e7   :  { %v3502_v5 = vmul.f32 -1.442695, %v1858_v29  ;;  %v3503_v45 = vmul.f32 -1.442695, %v1886_v17 }
 0x2e9   :  { %3824 = vpow2.f32 %v3502_v5 }
 0x2ea   :  { %3826 = vpow2.f32 %v3503_v45 }
 0x2f3   :  { %v3825_v21 = vpop.eup %3824 }
 0x2f4   :  { %v1862_v54 = vadd.f32 1.0, %v3825_v21  ;;  %v3827_v61 = vpop.eup %3826 }
 0x2f5   :  { %v1890_v27 = vadd.f32 1.0, %v3827_v61 }
 0x2f6   :  { %3828 = vrcp.f32 %v1862_v54 }
 0x2f7   :  { %3830 = vrcp.f32 %v1890_v27  ;;  %v4951_v27 = vld [vmem:[#allocation11 + $0x154] ss:$24 sps:$4 sm:$0xff]  }
 0x300   :  { %v3829_v29 = vpop.eup %3828 }
 0x301   :  { %v3831_v45 = vpop.eup %3830 }
 0x302   :  { %v1916_v21 = vsub.f32 1.0, %v3831_v45 }
 0x31b   :  { %v1833_v40 = vpop.f32.mrb[16].mxu0 }
 0x31c   :  { %v1834_v12 = vadd.f32 %v1833_v40, %v6111_v15  ;;  %v1835_v23 = vpop.f32.mrb[17].mxu0 }
 0x31d   :  { %v1836_v9 = vadd.f32 %v1835_v23, %v4749_v2  ;;  %v1837_v7 = vpop.f32.mrb[18].mxu0  ;;  %v1918_v23 = vmul.f32 %v3831_v45, %v4760_v18  ;;  %v6112_v18 = vld [vmem:[#allocation25_spill] sm:$0xff]  ;;  %v6138_v45 = vld [vmem:[#allocation43_spill] sm:$0xff] }
 0x31e   :  { %v1838_v32 = vpop.f32.mrb[19].mxu0 }
 0x31f   :  { %v1895_v63 = vcombine.low %v1834_v12, %v1836_v9  ;;  %v6115_v32 = vld [vmem:[#allocation26_spill] sm:$0xff] }
 0x321   :  { %v1902_v8 = vrot.slane %v1895_v63, %v4739_v60  ;;  %v4943_v63 = vld [vmem:[#allocation11 + $0x124] ss:$24 sps:$4 sm:$0xff]  }
 0x323   :  { %v1909_v5 = vrot.slane %v1902_v8, %v4739_v60  ;;  %v5032_v8 = vld [vmem:[#allocation11 + $0x3c] ss:$24 sps:$4 sm:$0xff]  }
 0x324   :  { %6131 = vst [vmem:[#allocation48_spill] sm:$0xff] %v5032_v8 }
 0x325   :  { %v1911_v25 = vmul.f32 %v3829_v29, %v1909_v5  ;;  %v5038_v5 = vld [vmem:[#allocation11 + $0x6c] ss:$24 sps:$4 sm:$0xff]   ;;  %v5041_v29 = vld [vmem:[#allocation11 + $0x68] ss:$24 sps:$4 sm:$0xff]  }
 0x326   :  { %6133 = vst [vmem:[#allocation52_spill] sm:$0xff] %v5038_v5  ;;  %6134 = vst [vmem:[#allocation54_spill] sm:$0xff] %v5041_v29 }
 0x327   :  { %v1914_v17 = vadd.f32 %v1912_v49, %v1911_v25  ;;  %v5044_v25 = vld [vmem:[#allocation11 + $0x9c] ss:$24 sps:$4 sm:$0xff]   ;;  %v5047_v49 = vld [vmem:[#allocation11 + $0x98] ss:$24 sps:$4 sm:$0xff]  }
 0x328   :  { %6135 = vst [vmem:[#allocation56_spill] sm:$0xff] %v5044_v25  ;;  %6136 = vst [vmem:[#allocation58_spill] sm:$0xff] %v5047_v49 }
 0x329   :  { %3832 = vtanh.f32 %v1914_v17  ;;  %v6137_v17 = vld [vmem:[#allocation41_spill] sm:$0xff] }
 0x333   :  { %v3833_v54 = vpop.eup %3832 }
 0x334   :  { %v1917_v40 = vmul.f32 %v3833_v54, %v1916_v21  ;;  %v6139_v21 = vld [vmem:[#allocation45_spill] sm:$0xff]  ;;  %v6140_v54 = vld [vmem:[#allocation47_spill] sm:$0xff] }
 0x336   :  { %v4901_v7 = vadd.f32 %v1918_v23, %v1917_v40  ;;  %v6141_v40 = vld [vmem:[#allocation49_spill] sm:$0xff]  ;;  %v6142_v23 = vld [vmem:[#allocation51_spill] sm:$0xff] }
 0x338   :  { %1921 = vst.msk [vmem:[#allocation12 + $0x1] ss:$8 sm:$0x3] %vm4295_vm0, %v4901_v7  ;;  %v1935_v12 = vrot.slane %v4901_v7, %v6050_v34  ;;  %v1931_v46 = vrot.slane %v4901_v7, %v6049_v19 }
 0x33a   :  { %v1939_v9 = vpack.c.bf16 %v1935_v12, %v1935_v12  ;;  %v4910_v61 = vpack.c.bf16 %v1931_v46, %v1931_v46  ;;  %v6143_v12 = vld [vmem:[#allocation53_spill] sm:$0xff]  ;;  %v6144_v46 = vld [vmem:[#allocation55_spill] sm:$0xff] }
 0x33c   :  { %1972 = vmatprep.mubr.bf16.mxu1 %v1939_v9  ;;  %2013 = vmatprep.mubr.bf16.mxu0 %v1939_v9 }
 0x33d   :  { %1973 = vmatmul.mubr.bf16.vlgmr.msra.gmra.mrb[16].mxu1 %v4910_v61  ;;  %2014 = vmatmul.mubr.bf16.vlgmr.msra.gmra.mrb[20].mxu0 %v4910_v61 }
 0x33e   :  { %2023 = vmatpush1.bf16.msra.mxu1 %v6056_v58  ;;  %2054 = vmatprep.mubr.bf16.mxu1 %v1939_v9  ;;  %v6113_v58 = vld [vmem:[#allocation36_spill] sm:$0xff]  ;;  %v6145_v9 = vld [vmem:[#allocation57_spill] sm:$0xff] }
 0x33f   :  { %2024 = vmatprep.subr.bf16.mxu1 %v6057_v10  ;;  %2164 = vmatpush1.bf16.msra.mxu0 %v4775_v6  ;;  %v6114_v10 = vld [vmem:[#allocation38_spill] sm:$0xff] }
 0x340   :  { %2165 = vmatprep.subr.bf16.mxu0 %v4778_v31 }
 0x342   :  { %2025 = vmatpush1.bf16.msra.mxu1 %v6058_v14  ;;  %v6116_v14 = vld [vmem:[#allocation42_spill] sm:$0xff] }
 0x343   :  { %2026 = vmatprep.subr.bf16.mxu1 %v6059_v16  ;;  %2166 = vmatpush1.bf16.msra.mxu0 %v4783_v52  ;;  %v4932_v16 = vld [vmem:[#allocation11 + $0xc0] ss:$24 sps:$4 sm:$0xff]  }
 0x344   :  { %2167 = vmatprep.subr.bf16.mxu0 %v4786_v26 }
 0x346   :  { %2027 = vmatpush1.bf16.msra.mxu1 %v6060_v56  ;;  %v4935_v56 = vld [vmem:[#allocation11 + $0xf4] ss:$24 sps:$4 sm:$0xff]  }
 0x347   :  { %2028 = vmatprep.subr.bf16.mxu1 %v6061_v22  ;;  %2168 = vmatpush1.bf16.msra.mxu0 %v4791_v28  ;;  %v4940_v22 = vld [vmem:[#allocation11 + $0xf0] ss:$24 sps:$4 sm:$0xff]  }
 0x348   :  { %2169 = vmatprep.subr.bf16.mxu0 %v6112_v18 }
 0x34a   :  { %2029 = vmatpush1.bf16.msra.mxu1 %v6113_v58  ;;  %v6149_v58 = vld [vmem:[#allocation65_spill] sm:$0xff] }
 0x34b   :  { %2030 = vmatprep.subr.bf16.mxu1 %v6114_v10  ;;  %2170 = vmatpush1.bf16.msra.mxu0 %v6115_v32  ;;  %v6150_v10 = vld [vmem:[#allocation67_spill] sm:$0xff] }
 0x34c   :  { %2171 = vmatprep.subr.bf16.mxu0 %v4802_v48 }
 0x34e   :  { %2031 = vmatpush1.bf16.msra.mxu1 %v6066_v0  ;;  %v4948_v0 = vld [vmem:[#allocation11 + $0x120] ss:$24 sps:$4 sm:$0xff]  }
 0x34f   :  { %2032 = vmatprep.subr.bf16.mxu1 %v6116_v14  ;;  %2172 = vmatpush1.bf16.msra.mxu0 %v4932_v16  ;;  %v6151_v14 = vld [vmem:[#allocation69_spill] sm:$0xff] }
 0x350   :  { %2173 = vmatprep.subr.bf16.mxu0 %v4935_v56 }
 0x352   :  { %2033 = vmatpush1.bf16.msra.mxu1 %v6068_v30  ;;  %v4956_v30 = vld [vmem:[#allocation11 + $0x150] ss:$24 sps:$4 sm:$0xff]  }
 0x353   :  { %2034 = vmatprep.subr.bf16.mxu1 %v6069_v37  ;;  %2174 = vmatpush1.bf16.msra.mxu0 %v4940_v22  ;;  %v4959_v37 = vld [vmem:[#allocation11 + $0x184] ss:$24 sps:$4 sm:$0xff]  }
 0x354   :  { %2175 = vmatprep.subr.bf16.mxu0 %v4943_v63 }
 0x356   :  { %2035 = vmatpush1.bf16.msra.mxu1 %v6070_v62  ;;  %v4967_v62 = vld [vmem:[#allocation11 + $0x1b4] ss:$24 sps:$4 sm:$0xff]  }
 0x357   :  { %2036 = vmatprep.subr.bf16.mxu1 %v6071_v36  ;;  %2176 = vmatpush1.bf16.msra.mxu0 %v4948_v0  ;;  %v4964_v36 = vld [vmem:[#allocation11 + $0x180] ss:$24 sps:$4 sm:$0xff]  }
 0x358   :  { %2177 = vmatprep.subr.bf16.mxu0 %v4951_v27 }
 0x35a   :  { %2037 = vmatpush1.bf16.msra.mxu1 %v6072_v4  ;;  %v4972_v4 = vld [vmem:[#allocation11 + $0x1b0] ss:$24 sps:$4 sm:$0xff]  }
 0x35b   :  { %2038 = vmatprep.subr.bf16.mxu1 %v6073_v33  ;;  %2178 = vmatpush1.bf16.msra.mxu0 %v4956_v30  ;;  %v4975_v33 = vld [vmem:[#allocation11 + $0x1e4] ss:$24 sps:$4 sm:$0xff]  }
 0x35c   :  { %2179 = vmatprep.subr.bf16.mxu0 %v4959_v37 }
 0x35e   :  { %2039 = vmatpush1.bf16.msra.mxu1 %v6074_v35  ;;  %v4980_v35 = vld [vmem:[#allocation11 + $0x1e0] ss:$24 sps:$4 sm:$0xff]  }
 0x35f   :  { %2040 = vmatprep.subr.bf16.mxu1 %v6075_v39  ;;  %2180 = vmatpush1.bf16.msra.mxu0 %v4964_v36  ;;  %6117 = vst [vmem:[#allocation18_spill] sm:$0xff] %v4980_v35  ;;  %v4983_v39 = vld [vmem:[#allocation11 + $0x214] ss:$24 sps:$4 sm:$0xff]  }
 0x360   :  { %2181 = vmatprep.subr.bf16.mxu0 %v4967_v62  ;;  %6118 = vst [vmem:[#allocation23_spill] sm:$0xff] %v4983_v39 }
 0x362   :  { %2041 = vmatpush1.bf16.msra.mxu1 %v6076_v41  ;;  %v4988_v41 = vld [vmem:[#allocation11 + $0x210] ss:$24 sps:$4 sm:$0xff]  }
 0x363   :  { %2042 = vmatprep.subr.bf16.mxu1 %v6077_v38  ;;  %2182 = vmatpush1.bf16.msra.mxu0 %v4972_v4  ;;  %6119 = vst [vmem:[#allocation19_spill] sm:$0xff] %v4988_v41  ;;  %v4991_v38 = vld [vmem:[#allocation11 + $0x244] ss:$24 sps:$4 sm:$0xff]  }
 0x364   :  { %2183 = vmatprep.subr.bf16.mxu0 %v4975_v33  ;;  %6120 = vst [vmem:[#allocation20_spill] sm:$0xff] %v4991_v38 }
 0x366   :  { %2043 = vmatpush1.bf16.msra.mxu1 %v6078_v47  ;;  %v4996_v47 = vld [vmem:[#allocation11 + $0x240] ss:$24 sps:$4 sm:$0xff]  }
 0x367   :  { %2044 = vmatprep.subr.bf16.mxu1 %v6079_v51  ;;  %2184 = vmatpush1.bf16.msra.mxu0 %v4980_v35  ;;  %6121 = vst [vmem:[#allocation17_spill] sm:$0xff] %v4996_v47  ;;  %v4999_v51 = vld [vmem:[#allocation11 + $0x274] ss:$24 sps:$4 sm:$0xff]  }
 0x368   :  { %2185 = vmatprep.subr.bf16.mxu0 %v4983_v39  ;;  %6122 = vst [vmem:[#allocation28_spill] sm:$0xff] %v4999_v51 }
 0x36a   :  { %2045 = vmatpush1.bf16.msra.mxu1 %v6080_v53  ;;  %v5004_v53 = vld [vmem:[#allocation11 + $0x270] ss:$24 sps:$4 sm:$0xff]  }
 0x36b   :  { %2046 = vmatprep.subr.bf16.mxu1 %v6081_v55  ;;  %2186 = vmatpush1.bf16.msra.mxu0 %v4988_v41  ;;  %6123 = vst [vmem:[#allocation29_spill] sm:$0xff] %v5004_v53  ;;  %v5007_v55 = vld [vmem:[#allocation11 + $0x2a4] ss:$24 sps:$4 sm:$0xff]  }
 0x36c   :  { %2187 = vmatprep.subr.bf16.mxu0 %v4991_v38  ;;  %6124 = vst [vmem:[#allocation30_spill] sm:$0xff] %v5007_v55 }
 0x36e   :  { %2047 = vmatpush1.bf16.msra.mxu1 %v6082_v57  ;;  %v5012_v57 = vld [vmem:[#allocation11 + $0x2a0] ss:$24 sps:$4 sm:$0xff]  }
 0x36f   :  { %2048 = vmatprep.subr.bf16.mxu1 %v6083_v59  ;;  %2188 = vmatpush1.bf16.msra.mxu0 %v4996_v47  ;;  %6125 = vst [vmem:[#allocation31_spill] sm:$0xff] %v5012_v57  ;;  %v5015_v59 = vld [vmem:[#allocation11 + $0x2d4] ss:$24 sps:$4 sm:$0xff]  }
 0x370   :  { %2189 = vmatprep.subr.bf16.mxu0 %v4999_v51  ;;  %6126 = vst [vmem:[#allocation32_spill] sm:$0xff] %v5015_v59 }
 0x372   :  { %2049 = vmatpush1.bf16.msra.mxu1 %v4620_v24  ;;  %v5022_v24 = vld [vmem:[#allocation11 + $0x2d0] ss:$24 sps:$4 sm:$0xff]  }
 0x373   :  { %2050 = vmatprep.subr.bf16.mxu1 %v4626_v20  ;;  %2190 = vmatpush1.bf16.msra.mxu0 %v5004_v53  ;;  %v5019_v20 = vld [vmem:[#allocation11 + $0xc] ss:$24 sps:$4 sm:$0xff]   ;;  %6128 = vst [vmem:[#allocation40_spill] sm:$0xff] %v5022_v24 }
 0x374   :  { %2191 = vmatprep.subr.bf16.mxu0 %v5007_v55  ;;  %6127 = vst [vmem:[#allocation34_spill] sm:$0xff] %v5019_v20 }
 0x376   :  { %2051 = vmatpush1.bf16.msra.mxu1 %v4632_v13  ;;  %v5025_v13 = vld [vmem:[#allocation11 + $0x14] ss:$24 sps:$4 sm:$0xff]  }
 0x377   :  { %2052 = vmatprep.subr.bf16.mxu1 %v4638_v11  ;;  %2192 = vmatpush1.bf16.msra.mxu0 %v5012_v57  ;;  %6129 = vst [vmem:[#allocation44_spill] sm:$0xff] %v5025_v13  ;;  %v5029_v11 = vld [vmem:[#allocation11 + $0x8] ss:$24 sps:$4 sm:$0xff]  }
 0x378   :  { %2193 = vmatprep.subr.bf16.mxu0 %v5015_v59  ;;  %6130 = vst [vmem:[#allocation46_spill] sm:$0xff] %v5029_v11 }
 0x37a   :  { %2053 = vmatpush1.bf16.msra.mxu1 %v4644_v42  ;;  %v5035_v42 = vld [vmem:[#allocation11 + $0x38] ss:$24 sps:$4 sm:$0xff]  }
 0x37b   :  { %2204 = vmatprep.subr.bf16.mxu1 %v5019_v20  ;;  %2194 = vmatpush1.bf16.msra.mxu0 %v5022_v24  ;;  %6132 = vst [vmem:[#allocation50_spill] sm:$0xff] %v5035_v42 }
 0x37c   :  { %2245 = vmatprep.subr.bf16.mxu0 %v5025_v13 }
 0x37d   :  { %2055 = vmatmul.mubr.bf16.vlgmr.msra.gmra.mrb[20].mxu1 %v4910_v61  ;;  %v6148_v61 = vld [vmem:[#allocation63_spill] sm:$0xff] }
 0x37e   :  { %2205 = vmatpush1.bf16.msra.mxu1 %v5029_v11 }
 0x37f   :  { %2206 = vmatprep.subr.bf16.mxu1 %v5032_v8 }
 0x382   :  { %2207 = vmatpush1.bf16.msra.mxu1 %v5035_v42 }
 0x383   :  { %2208 = vmatprep.subr.bf16.mxu1 %v5038_v5 }
 0x386   :  { %2209 = vmatpush1.bf16.msra.mxu1 %v5041_v29  ;;  %v1925_v29 = vld [vmem:[#allocation3 + $0x2] ss:$8 sm:$0x30] }
 0x387   :  { %2210 = vmatprep.subr.bf16.mxu1 %v5044_v25 }
 0x38a   :  { %2211 = vmatpush1.bf16.msra.mxu1 %v5047_v49 }
 0x38b   :  { %2212 = vmatprep.subr.bf16.mxu1 %v6086_v1  ;;  %v6146_v1 = vld [vmem:[#allocation59_spill] sm:$0xff] }
 0x38e   :  { %2213 = vmatpush1.bf16.msra.mxu1 %v6087_v3  ;;  %v6147_v3 = vld [vmem:[#allocation61_spill] sm:$0xff] }
 0x38f   :  { %2214 = vmatprep.subr.bf16.mxu1 %v6137_v17  ;;  %v6152_v17 = vld [vmem:[#allocation71_spill] sm:$0xff] }
 0x392   :  { %2215 = vmatpush1.bf16.msra.mxu1 %v6138_v45  ;;  %v6153_v45 = vld [vmem:[#allocation73_spill] sm:$0xff] }
 0x393   :  { %2216 = vmatprep.subr.bf16.mxu1 %v6139_v21  ;;  %v6154_v21 = vld [vmem:[#allocation75_spill] sm:$0xff] }
 0x396   :  { %2217 = vmatpush1.bf16.msra.mxu1 %v6140_v54  ;;  %v6155_v54 = vld [vmem:[#allocation76_spill] sm:$0xff] }
 0x397   :  { %2218 = vmatprep.subr.bf16.mxu1 %v6141_v40  ;;  %v6156_v40 = vld [vmem:[#allocation77_spill] sm:$0xff] }
 0x39a   :  { %2219 = vmatpush1.bf16.msra.mxu1 %v6142_v23  ;;  %v6157_v23 = vld [vmem:[#allocation78_spill] sm:$0xff] }
 0x39b   :  { %2220 = vmatprep.subr.bf16.mxu1 %v6143_v12  ;;  %v6158_v12 = vld [vmem:[#allocation79_spill] sm:$0xff] }
 0x39e   :  { %2221 = vmatpush1.bf16.msra.mxu1 %v6144_v46  ;;  %v6159_v46 = vld [vmem:[#allocation27_spill] sm:$0xff] }
 0x39f   :  { %2222 = vmatprep.subr.bf16.mxu1 %v6145_v9 }
 0x3a2   :  { %2223 = vmatpush1.bf16.msra.mxu1 %v6146_v1 }
 0x3a3   :  { %2224 = vmatprep.subr.bf16.mxu1 %v6147_v3  ;;  %v6160_v3 = vld [vmem:[#allocation21_spill] sm:$0xff] }
 0x3a6   :  { %2225 = vmatpush1.bf16.msra.mxu1 %v6148_v61 }
 0x3a7   :  { %2226 = vmatprep.subr.bf16.mxu1 %v6149_v58  ;;  %v6161_v58 = vld [vmem:[#allocation22_spill] sm:$0xff] }
 0x3aa   :  { %2227 = vmatpush1.bf16.msra.mxu1 %v6150_v10 }
 0x3ab   :  { %2228 = vmatprep.subr.bf16.mxu1 %v6151_v14 }
 0x3ae   :  { %2229 = vmatpush1.bf16.msra.mxu1 %v6152_v17 }
 0x3af   :  { %2230 = vmatprep.subr.bf16.mxu1 %v6153_v45 }
 0x3b2   :  { %2231 = vmatpush1.bf16.msra.mxu1 %v6154_v21 }
 0x3b3   :  { %2232 = vmatprep.subr.bf16.mxu1 %v6155_v54 }
 0x3b6   :  { %2233 = vmatpush1.bf16.msra.mxu1 %v6156_v40 }
 0x3b7   :  { %2234 = vmatprep.subr.bf16.mxu1 %v6157_v23 }
 0x3ba   :  { %2235 = vmatpush1.bf16.msra.mxu1 %v6158_v12 }
 0x3bb   :  { %2386 = vmatprep.subr.bf16.mxu1 %v6159_v46 }
 0x410   :  { %v1974_v9 = vpop.f32.mrb[16].mxu1  ;;  %v2015_v1 = vpop.f32.mrb[20].mxu0 }
 0x411   :  { %v1975_v61 = vadd.f32 %v1974_v9, %v6160_v3  ;;  %v2016_v10 = vadd.f32 %v2015_v1, %v6161_v58  ;;  %v1976_v14 = vpop.f32.mrb[17].mxu1  ;;  %v2017_v17 = vpop.f32.mrb[21].mxu0  ;;  %v1924_v9 = vld [vmem:[#allocation3 + $0x2] ss:$8 sm:$0xf] }
 0x412   :  { %v1977_v45 = vadd.f32 %v1976_v14, %v4734_v44  ;;  %v2018_v21 = vadd.f32 %v2017_v17, %v4747_v50  ;;  %v1978_v54 = vpop.f32.mrb[18].mxu1  ;;  %v2019_v40 = vpop.f32.mrb[22].mxu0  ;;  %v1926_v3 = vor.u32 %v1925_v29, %v1924_v9 }
 0x413   :  { %v1979_v49 = vpop.f32.mrb[19].mxu1  ;;  %v2020_v23 = vpop.f32.mrb[23].mxu0 }
 0x414   :  { %v2065_v25 = vcombine.low %v1975_v61, %v1977_v45  ;;  %v2093_v12 = vcombine.low %v2016_v10, %v2018_v21  ;;  %v2089_v17 = vrot.slane %v1926_v3, 2 }
 0x416   :  { %v2072_v46 = vrot.slane %v2065_v25, %v4739_v60  ;;  %v2100_v58 = vrot.slane %v2093_v12, %v4739_v60 }
 0x418   :  { %v2079_v5 = vrot.slane %v2072_v46, %v4739_v60  ;;  %v2107_v14 = vrot.slane %v2100_v58, %v4739_v60 }
 0x41a   :  { %v2081_v1 = vadd.f32 %v2079_v5, %v1926_v3  ;;  %v2109_v54 = vadd.f32 %v2107_v14, %v2089_v17  ;;  %v2135_v14 = vrot.slane %v1926_v3, 4 }
 0x41c   :  { %v3504_v42 = vmul.f32 -1.442695, %v2081_v1  ;;  %v3505_v49 = vmul.f32 -1.442695, %v2109_v54 }
 0x41e   :  { %3834 = vpow2.f32 %v3504_v42 }
 0x41f   :  { %3836 = vpow2.f32 %v3505_v49 }
 0x428   :  { %v3835_v40 = vpop.eup %3834 }
 0x429   :  { %v2085_v61 = vadd.f32 1.0, %v3835_v40  ;;  %v3837_v45 = vpop.eup %3836 }
 0x42a   :  { %v2113_v12 = vadd.f32 1.0, %v3837_v45  ;;  %v5104_v45 = vld [vmem:[#allocation11 + $0x44] ss:$24 sps:$4 sm:$0xff]  }
 0x42b   :  { %3838 = vrcp.f32 %v2085_v61 }
 0x42c   :  { %3840 = vrcp.f32 %v2113_v12  ;;  %v5117_v12 = vld [vmem:[#allocation11 + $0x70] ss:$24 sps:$4 sm:$0xff]  }
 0x435   :  { %v3839_v9 = vpop.eup %3838 }
 0x436   :  { %v3841_v54 = vpop.eup %3840 }
 0x437   :  { %v2139_v49 = vsub.f32 1.0, %v3841_v54 }
 0x450   :  { %v2056_v25 = vpop.f32.mrb[20].mxu1 }
 0x451   :  { %v2057_v10 = vadd.f32 %v2056_v25, %v6111_v15  ;;  %v2058_v46 = vpop.f32.mrb[21].mxu1  ;;  %v2141_v25 = vmul.f32 %v3841_v54, %v4901_v7  ;;  %v5101_v7 = vld [vmem:[#allocation11 + $0x10] ss:$24 sps:$4 sm:$0xff]   ;;  %v5144_v54 = vld [vmem:[#allocation11 + $0x134] ss:$24 sps:$4 sm:$0xff]  }
 0x452   :  { %v2059_v29 = vadd.f32 %v2058_v46, %v4749_v2  ;;  %v2060_v5 = vpop.f32.mrb[22].mxu1 }
 0x453   :  { %v2061_v21 = vpop.f32.mrb[23].mxu1 }
 0x454   :  { %v2118_v23 = vcombine.low %v2057_v10, %v2059_v29  ;;  %v5109_v21 = vld [vmem:[#allocation11 + $0x40] ss:$24 sps:$4 sm:$0xff]  }
 0x456   :  { %v2125_v42 = vrot.slane %v2118_v23, %v4739_v60  ;;  %v5112_v23 = vld [vmem:[#allocation11 + $0x74] ss:$24 sps:$4 sm:$0xff]  }
 0x458   :  { %v2132_v58 = vrot.slane %v2125_v42, %v4739_v60  ;;  %v5120_v42 = vld [vmem:[#allocation11 + $0xa4] ss:$24 sps:$4 sm:$0xff]  }
 0x45a   :  { %v2134_v1 = vmul.f32 %v3839_v9, %v2132_v58  ;;  %v5125_v58 = vld [vmem:[#allocation11 + $0xa0] ss:$24 sps:$4 sm:$0xff]   ;;  %v5128_v9 = vld [vmem:[#allocation11 + $0xd4] ss:$24 sps:$4 sm:$0xff]  }
 0x45c   :  { %v2137_v17 = vadd.f32 %v2135_v14, %v2134_v1  ;;  %v5133_v1 = vld [vmem:[#allocation11 + $0xd0] ss:$24 sps:$4 sm:$0xff]   ;;  %v5136_v14 = vld [vmem:[#allocation11 + $0x104] ss:$24 sps:$4 sm:$0xff]  }
 0x45e   :  { %3842 = vtanh.f32 %v2137_v17  ;;  %v5141_v17 = vld [vmem:[#allocation11 + $0x100] ss:$24 sps:$4 sm:$0xff]  }
 0x468   :  { %v3843_v40 = vpop.eup %3842 }
 0x469   :  { %v2140_v61 = vmul.f32 %v3843_v40, %v2139_v49  ;;  %v5149_v49 = vld [vmem:[#allocation11 + $0x130] ss:$24 sps:$4 sm:$0xff]   ;;  %v5152_v40 = vld [vmem:[#allocation11 + $0x164] ss:$24 sps:$4 sm:$0xff]  }
 0x46b   :  { %v5088_v46 = vadd.f32 %v2141_v25, %v2140_v61  ;;  %v5157_v61 = vld [vmem:[#allocation11 + $0x160] ss:$24 sps:$4 sm:$0xff]   ;;  %v5160_v25 = vld [vmem:[#allocation11 + $0x194] ss:$24 sps:$4 sm:$0xff]  }
 0x46c   :  { %6162 = vst [vmem:[#allocation60_spill] sm:$0xff] %v5160_v25 }
 0x46d   :  { %2144 = vst.msk [vmem:[#allocation12 + $0x2] ss:$8 sm:$0x3] %vm4295_vm0, %v5088_v46  ;;  %v2158_v10 = vrot.slane %v5088_v46, %v6050_v34  ;;  %v2154_v3 = vrot.slane %v5088_v46, %v6049_v19 }
 0x46f   :  { %v2162_v29 = vpack.c.bf16 %v2158_v10, %v2158_v10  ;;  %v5097_v5 = vpack.c.bf16 %v2154_v3, %v2154_v3  ;;  %v5165_v10 = vld [vmem:[#allocation11 + $0x190] ss:$24 sps:$4 sm:$0xff]   ;;  %v5168_v3 = vld [vmem:[#allocation11 + $0x1c4] ss:$24 sps:$4 sm:$0xff]  }
 0x470   :  { %6163 = vst [vmem:[#allocation62_spill] sm:$0xff] %v5165_v10  ;;  %6164 = vst [vmem:[#allocation64_spill] sm:$0xff] %v5168_v3 }
 0x471   :  { %2195 = vmatprep.mubr.bf16.mxu0 %v2162_v29  ;;  %2236 = vmatprep.mubr.bf16.mxu1 %v2162_v29 }
 0x472   :  { %2196 = vmatmul.mubr.bf16.vlgmr.msra.gmra.mrb[24].mxu0 %v5097_v5  ;;  %2237 = vmatmul.mubr.bf16.vlgmr.msra.gmra.mrb[24].mxu1 %v5097_v5 }
 0x473   :  { %2246 = vmatpush1.bf16.msra.mxu0 %v5101_v7  ;;  %2277 = vmatprep.mubr.bf16.mxu0 %v2162_v29  ;;  %v5173_v29 = vld [vmem:[#allocation11 + $0x1c0] ss:$24 sps:$4 sm:$0xff]  }
 0x474   :  { %2247 = vmatprep.subr.bf16.mxu0 %v5104_v45  ;;  %2387 = vmatpush1.bf16.msra.mxu1 %v4775_v6  ;;  %6165 = vst [vmem:[#allocation66_spill] sm:$0xff] %v5173_v29 }
 0x475   :  { %2388 = vmatprep.subr.bf16.mxu1 %v4778_v31 }
 0x477   :  { %2248 = vmatpush1.bf16.msra.mxu0 %v5109_v21 }
 0x478   :  { %2249 = vmatprep.subr.bf16.mxu0 %v5112_v23  ;;  %2389 = vmatpush1.bf16.msra.mxu1 %v4783_v52 }
 0x479   :  { %2390 = vmatprep.subr.bf16.mxu1 %v4786_v26 }
 0x47b   :  { %2250 = vmatpush1.bf16.msra.mxu0 %v5117_v12 }
 0x47c   :  { %2251 = vmatprep.subr.bf16.mxu0 %v5120_v42  ;;  %2391 = vmatpush1.bf16.msra.mxu1 %v4791_v28 }
 0x47d   :  { %2392 = vmatprep.subr.bf16.mxu1 %v6112_v18 }
 0x47f   :  { %2252 = vmatpush1.bf16.msra.mxu0 %v5125_v58 }
 0x480   :  { %2253 = vmatprep.subr.bf16.mxu0 %v5128_v9  ;;  %2393 = vmatpush1.bf16.msra.mxu1 %v6115_v32 }
 0x481   :  { %2394 = vmatprep.subr.bf16.mxu1 %v4802_v48 }
 0x483   :  { %2254 = vmatpush1.bf16.msra.mxu0 %v5133_v1 }
 0x484   :  { %2255 = vmatprep.subr.bf16.mxu0 %v5136_v14  ;;  %2395 = vmatpush1.bf16.msra.mxu1 %v4932_v16 }
 0x485   :  { %2396 = vmatprep.subr.bf16.mxu1 %v4935_v56 }
 0x487   :  { %2256 = vmatpush1.bf16.msra.mxu0 %v5141_v17 }
 0x488   :  { %2257 = vmatprep.subr.bf16.mxu0 %v5144_v54  ;;  %2397 = vmatpush1.bf16.msra.mxu1 %v4940_v22 }
 0x489   :  { %2398 = vmatprep.subr.bf16.mxu1 %v4943_v63 }
 0x48b   :  { %2258 = vmatpush1.bf16.msra.mxu0 %v5149_v49 }
 0x48c   :  { %2259 = vmatprep.subr.bf16.mxu0 %v5152_v40  ;;  %2399 = vmatpush1.bf16.msra.mxu1 %v4948_v0 }
 0x48d   :  { %2400 = vmatprep.subr.bf16.mxu1 %v4951_v27 }
 0x48f   :  { %2260 = vmatpush1.bf16.msra.mxu0 %v5157_v61 }
 0x490   :  { %2261 = vmatprep.subr.bf16.mxu0 %v5160_v25  ;;  %2401 = vmatpush1.bf16.msra.mxu1 %v4956_v30  ;;  %v5176_v25 = vld [vmem:[#allocation11 + $0x1f4] ss:$24 sps:$4 sm:$0xff]  }
 0x491   :  { %2402 = vmatprep.subr.bf16.mxu1 %v4959_v37  ;;  %6166 = vst [vmem:[#allocation68_spill] sm:$0xff] %v5176_v25 }
 0x493   :  { %2262 = vmatpush1.bf16.msra.mxu0 %v5165_v10  ;;  %v5181_v10 = vld [vmem:[#allocation11 + $0x1f0] ss:$24 sps:$4 sm:$0xff]  }
 0x494   :  { %2263 = vmatprep.subr.bf16.mxu0 %v5168_v3  ;;  %2403 = vmatpush1.bf16.msra.mxu1 %v4964_v36  ;;  %6167 = vst [vmem:[#allocation70_spill] sm:$0xff] %v5181_v10  ;;  %v5184_v3 = vld [vmem:[#allocation11 + $0x224] ss:$24 sps:$4 sm:$0xff]  }
 0x495   :  { %2404 = vmatprep.subr.bf16.mxu1 %v4967_v62  ;;  %6168 = vst [vmem:[#allocation72_spill] sm:$0xff] %v5184_v3 }
 0x497   :  { %2264 = vmatpush1.bf16.msra.mxu0 %v5173_v29  ;;  %v5189_v29 = vld [vmem:[#allocation11 + $0x220] ss:$24 sps:$4 sm:$0xff]  }
 0x498   :  { %2265 = vmatprep.subr.bf16.mxu0 %v5176_v25  ;;  %2405 = vmatpush1.bf16.msra.mxu1 %v4972_v4  ;;  %6169 = vst [vmem:[#allocation74_spill] sm:$0xff] %v5189_v29  ;;  %v5192_v25 = vld [vmem:[#allocation11 + $0x254] ss:$24 sps:$4 sm:$0xff]  }
 0x499   :  { %2406 = vmatprep.subr.bf16.mxu1 %v4975_v33  ;;  %6170 = vst [vmem:[#allocation33_spill] sm:$0xff] %v5192_v25 }
 0x49b   :  { %2266 = vmatpush1.bf16.msra.mxu0 %v5181_v10  ;;  %v5197_v10 = vld [vmem:[#allocation11 + $0x250] ss:$24 sps:$4 sm:$0xff]  }
 0x49c   :  { %2267 = vmatprep.subr.bf16.mxu0 %v5184_v3  ;;  %2407 = vmatpush1.bf16.msra.mxu1 %v4980_v35  ;;  %6171 = vst [vmem:[#allocation35_spill] sm:$0xff] %v5197_v10  ;;  %v5200_v3 = vld [vmem:[#allocation11 + $0x284] ss:$24 sps:$4 sm:$0xff]  }
 0x49d   :  { %2408 = vmatprep.subr.bf16.mxu1 %v4983_v39  ;;  %6172 = vst [vmem:[#allocation37_spill] sm:$0xff] %v5200_v3 }
 0x49f   :  { %2268 = vmatpush1.bf16.msra.mxu0 %v5189_v29  ;;  %v5205_v29 = vld [vmem:[#allocation11 + $0x280] ss:$24 sps:$4 sm:$0xff]  }
 0x4a0   :  { %2269 = vmatprep.subr.bf16.mxu0 %v5192_v25  ;;  %2409 = vmatpush1.bf16.msra.mxu1 %v4988_v41  ;;  %6173 = vst [vmem:[#allocation39_spill] sm:$0xff] %v5205_v29  ;;  %v5208_v25 = vld [vmem:[#allocation11 + $0x2b4] ss:$24 sps:$4 sm:$0xff]   ;;  %v2148_v41 = vld [vmem:[#allocation3 + $0x3] ss:$8 sm:$0x30] }
 0x4a1   :  { %2410 = vmatprep.subr.bf16.mxu1 %v4991_v38  ;;  %6174 = vst [vmem:[#allocation24_spill] sm:$0xff] %v5208_v25 }
 0x4a3   :  { %2270 = vmatpush1.bf16.msra.mxu0 %v5197_v10  ;;  %v5213_v10 = vld [vmem:[#allocation11 + $0x2b0] ss:$24 sps:$4 sm:$0xff]  }
 0x4a4   :  { %2271 = vmatprep.subr.bf16.mxu0 %v5200_v3  ;;  %2411 = vmatpush1.bf16.msra.mxu1 %v4996_v47  ;;  %6175 = vst [vmem:[#allocation25_spill] sm:$0xff] %v5213_v10  ;;  %v5216_v3 = vld [vmem:[#allocation11 + $0x2e4] ss:$24 sps:$4 sm:$0xff]  }
 0x4a5   :  { %2412 = vmatprep.subr.bf16.mxu1 %v4999_v51  ;;  %6176 = vst [vmem:[#allocation36_spill] sm:$0xff] %v5216_v3 }
 0x4a7   :  { %2272 = vmatpush1.bf16.msra.mxu0 %v5205_v29  ;;  %v5221_v29 = vld [vmem:[#allocation11 + $0x2e0] ss:$24 sps:$4 sm:$0xff]  }
 0x4a8   :  { %2273 = vmatprep.subr.bf16.mxu0 %v5208_v25  ;;  %2413 = vmatpush1.bf16.msra.mxu1 %v5004_v53  ;;  %6177 = vst [vmem:[#allocation38_spill] sm:$0xff] %v5221_v29 }
 0x4a9   :  { %2414 = vmatprep.subr.bf16.mxu1 %v5007_v55 }
 0x4ab   :  { %2274 = vmatpush1.bf16.msra.mxu0 %v5213_v10  ;;  %v6181_v10 = vld [vmem:[#allocation56_spill] sm:$0xff] }
 0x4ac   :  { %2275 = vmatprep.subr.bf16.mxu0 %v5216_v3  ;;  %2415 = vmatpush1.bf16.msra.mxu1 %v5012_v57  ;;  %v6178_v3 = vld [vmem:[#allocation50_spill] sm:$0xff]  ;;  %v6179_v57 = vld [vmem:[#allocation52_spill] sm:$0xff] }
 0x4ad   :  { %2416 = vmatprep.subr.bf16.mxu1 %v5015_v59  ;;  %v6180_v59 = vld [vmem:[#allocation54_spill] sm:$0xff] }
 0x4af   :  { %2276 = vmatpush1.bf16.msra.mxu0 %v5221_v29  ;;  %v6182_v29 = vld [vmem:[#allocation58_spill] sm:$0xff] }
 0x4b0   :  { %2427 = vmatprep.subr.bf16.mxu0 %v5019_v20  ;;  %2417 = vmatpush1.bf16.msra.mxu1 %v5022_v24  ;;  %v5235_v20 = vld [vmem:[#allocation11 + $0xcc] ss:$24 sps:$4 sm:$0xff]  }
 0x4b1   :  { %2468 = vmatprep.subr.bf16.mxu1 %v5025_v13  ;;  %6183 = vst [vmem:[#allocation26_spill] sm:$0xff] %v5235_v20  ;;  %v5238_v13 = vld [vmem:[#allocation11 + $0xc8] ss:$24 sps:$4 sm:$0xff]  }
 0x4b2   :  { %2278 = vmatmul.mubr.bf16.vlgmr.msra.gmra.mrb[28].mxu0 %v5097_v5  ;;  %6184 = vst [vmem:[#allocation42_spill] sm:$0xff] %v5238_v13  ;;  %v5241_v5 = vld [vmem:[#allocation11 + $0xfc] ss:$24 sps:$4 sm:$0xff]  }
 0x4b3   :  { %2428 = vmatpush1.bf16.msra.mxu0 %v5029_v11  ;;  %6185 = vst [vmem:[#allocation41_spill] sm:$0xff] %v5241_v5  ;;  %v6209_v11 = vld [vmem:[#allocation22_spill] sm:$0xff] }
 0x4b4   :  { %2429 = vmatprep.subr.bf16.mxu0 %v5032_v8 }
 0x4b7   :  { %2430 = vmatpush1.bf16.msra.mxu0 %v6178_v3  ;;  %v5244_v3 = vld [vmem:[#allocation11 + $0xf8] ss:$24 sps:$4 sm:$0xff]  }
 0x4b8   :  { %2431 = vmatprep.subr.bf16.mxu0 %v6179_v57  ;;  %6186 = vst [vmem:[#allocation43_spill] sm:$0xff] %v5244_v3  ;;  %v6208_v57 = vld [vmem:[#allocation21_spill] sm:$0xff] }
 0x4bb   :  { %2432 = vmatpush1.bf16.msra.mxu0 %v6180_v59  ;;  %v5247_v59 = vld [vmem:[#allocation11 + $0x12c] ss:$24 sps:$4 sm:$0xff]  }
 0x4bc   :  { %2433 = vmatprep.subr.bf16.mxu0 %v6181_v10  ;;  %6187 = vst [vmem:[#allocation45_spill] sm:$0xff] %v5247_v59 }
 0x4bf   :  { %2434 = vmatpush1.bf16.msra.mxu0 %v6182_v29  ;;  %v5250_v29 = vld [vmem:[#allocation11 + $0x128] ss:$24 sps:$4 sm:$0xff]  }
 0x4c0   :  { %2435 = vmatprep.subr.bf16.mxu0 %v5235_v20  ;;  %6188 = vst [vmem:[#allocation47_spill] sm:$0xff] %v5250_v29  ;;  %v5253_v20 = vld [vmem:[#allocation11 + $0x15c] ss:$24 sps:$4 sm:$0xff]  }
 0x4c1   :  { %6189 = vst [vmem:[#allocation49_spill] sm:$0xff] %v5253_v20 }
 0x4c3   :  { %2436 = vmatpush1.bf16.msra.mxu0 %v5238_v13  ;;  %v5256_v13 = vld [vmem:[#allocation11 + $0x158] ss:$24 sps:$4 sm:$0xff]  }
 0x4c4   :  { %2437 = vmatprep.subr.bf16.mxu0 %v5241_v5  ;;  %6190 = vst [vmem:[#allocation51_spill] sm:$0xff] %v5256_v13  ;;  %v5259_v5 = vld [vmem:[#allocation11 + $0x18c] ss:$24 sps:$4 sm:$0xff]  }
 0x4c5   :  { %6191 = vst [vmem:[#allocation53_spill] sm:$0xff] %v5259_v5 }
 0x4c7   :  { %2438 = vmatpush1.bf16.msra.mxu0 %v5244_v3  ;;  %v5262_v3 = vld [vmem:[#allocation11 + $0x188] ss:$24 sps:$4 sm:$0xff]  }
 0x4c8   :  { %2439 = vmatprep.subr.bf16.mxu0 %v5247_v59  ;;  %6192 = vst [vmem:[#allocation55_spill] sm:$0xff] %v5262_v3  ;;  %v5265_v59 = vld [vmem:[#allocation11 + $0x1bc] ss:$24 sps:$4 sm:$0xff]  }
 0x4c9   :  { %6193 = vst [vmem:[#allocation57_spill] sm:$0xff] %v5265_v59 }
 0x4cb   :  { %2440 = vmatpush1.bf16.msra.mxu0 %v5250_v29  ;;  %v5268_v29 = vld [vmem:[#allocation11 + $0x1b8] ss:$24 sps:$4 sm:$0xff]  }
 0x4cc   :  { %2441 = vmatprep.subr.bf16.mxu0 %v5253_v20  ;;  %6194 = vst [vmem:[#allocation59_spill] sm:$0xff] %v5268_v29  ;;  %v5271_v20 = vld [vmem:[#allocation11 + $0x1ec] ss:$24 sps:$4 sm:$0xff]  }
 0x4cd   :  { %6195 = vst [vmem:[#allocation61_spill] sm:$0xff] %v5271_v20 }
 0x4cf   :  { %2442 = vmatpush1.bf16.msra.mxu0 %v5256_v13  ;;  %v5274_v13 = vld [vmem:[#allocation11 + $0x1e8] ss:$24 sps:$4 sm:$0xff]  }
 0x4d0   :  { %2443 = vmatprep.subr.bf16.mxu0 %v5259_v5  ;;  %6196 = vst [vmem:[#allocation63_spill] sm:$0xff] %v5274_v13  ;;  %v5277_v5 = vld [vmem:[#allocation11 + $0x21c] ss:$24 sps:$4 sm:$0xff]  }
 0x4d1   :  { %6197 = vst [vmem:[#allocation65_spill] sm:$0xff] %v5277_v5 }
 0x4d3   :  { %2444 = vmatpush1.bf16.msra.mxu0 %v5262_v3  ;;  %v5280_v3 = vld [vmem:[#allocation11 + $0x218] ss:$24 sps:$4 sm:$0xff]  }
 0x4d4   :  { %2445 = vmatprep.subr.bf16.mxu0 %v5265_v59  ;;  %6198 = vst [vmem:[#allocation67_spill] sm:$0xff] %v5280_v3  ;;  %v5283_v59 = vld [vmem:[#allocation11 + $0x24c] ss:$24 sps:$4 sm:$0xff]  }
 0x4d5   :  { %6199 = vst [vmem:[#allocation69_spill] sm:$0xff] %v5283_v59 }
 0x4d7   :  { %2446 = vmatpush1.bf16.msra.mxu0 %v5268_v29  ;;  %v5286_v29 = vld [vmem:[#allocation11 + $0x248] ss:$24 sps:$4 sm:$0xff]  }
 0x4d8   :  { %2447 = vmatprep.subr.bf16.mxu0 %v5271_v20  ;;  %6200 = vst [vmem:[#allocation71_spill] sm:$0xff] %v5286_v29  ;;  %v5289_v20 = vld [vmem:[#allocation11 + $0x27c] ss:$24 sps:$4 sm:$0xff]  }
 0x4d9   :  { %6201 = vst [vmem:[#allocation73_spill] sm:$0xff] %v5289_v20 }
 0x4db   :  { %2448 = vmatpush1.bf16.msra.mxu0 %v5274_v13  ;;  %v5292_v13 = vld [vmem:[#allocation11 + $0x278] ss:$24 sps:$4 sm:$0xff]  }
 0x4dc   :  { %2449 = vmatprep.subr.bf16.mxu0 %v5277_v5  ;;  %6202 = vst [vmem:[#allocation75_spill] sm:$0xff] %v5292_v13  ;;  %v5295_v5 = vld [vmem:[#allocation11 + $0x2ac] ss:$24 sps:$4 sm:$0xff]  }
 0x4dd   :  { %6203 = vst [vmem:[#allocation76_spill] sm:$0xff] %v5295_v5 }
 0x4df   :  { %2450 = vmatpush1.bf16.msra.mxu0 %v5280_v3  ;;  %v5298_v3 = vld [vmem:[#allocation11 + $0x2a8] ss:$24 sps:$4 sm:$0xff]  }
 0x4e0   :  { %2451 = vmatprep.subr.bf16.mxu0 %v5283_v59  ;;  %6204 = vst [vmem:[#allocation77_spill] sm:$0xff] %v5298_v3  ;;  %v5301_v59 = vld [vmem:[#allocation11 + $0x2dc] ss:$24 sps:$4 sm:$0xff]  }
 0x4e1   :  { %6205 = vst [vmem:[#allocation78_spill] sm:$0xff] %v5301_v59 }
 0x4e3   :  { %2452 = vmatpush1.bf16.msra.mxu0 %v5286_v29  ;;  %v5304_v29 = vld [vmem:[#allocation11 + $0x2d8] ss:$24 sps:$4 sm:$0xff]  }
 0x4e4   :  { %2453 = vmatprep.subr.bf16.mxu0 %v5289_v20  ;;  %6206 = vst [vmem:[#allocation79_spill] sm:$0xff] %v5304_v29  ;;  %v6207_v20 = vld [vmem:[#allocation27_spill] sm:$0xff] }
 0x4e7   :  { %2454 = vmatpush1.bf16.msra.mxu0 %v5292_v13 }
 0x4e8   :  { %2455 = vmatprep.subr.bf16.mxu0 %v5295_v5 }
 0x4eb   :  { %2456 = vmatpush1.bf16.msra.mxu0 %v5298_v3 }
 0x4ec   :  { %2457 = vmatprep.subr.bf16.mxu0 %v5301_v59 }
 0x4ef   :  { %2458 = vmatpush1.bf16.msra.mxu0 %v5304_v29 }
 0x4f0   :  { %2609 = vmatprep.subr.bf16.mxu0 %v6207_v20 }
 0x545   :  { %v2197_v10 = vpop.f32.mrb[24].mxu0  ;;  %v2238_v13 = vpop.f32.mrb[24].mxu1 }
 0x546   :  { %v2198_v8 = vadd.f32 %v2197_v10, %v6208_v57  ;;  %v2239_v5 = vadd.f32 %v2238_v13, %v6209_v11  ;;  %v2199_v24 = vpop.f32.mrb[25].mxu0  ;;  %v2240_v55 = vpop.f32.mrb[25].mxu1  ;;  %v2147_v10 = vld [vmem:[#allocation3 + $0x3] ss:$8 sm:$0xf] }
 0x547   :  { %v2200_v3 = vadd.f32 %v2199_v24, %v4734_v44  ;;  %v2241_v53 = vadd.f32 %v2240_v55, %v4747_v50  ;;  %v2201_v25 = vpop.f32.mrb[26].mxu0  ;;  %v2242_v59 = vpop.f32.mrb[26].mxu1  ;;  %v2149_v57 = vor.u32 %v2148_v41, %v2147_v10 }
 0x548   :  { %v2202_v51 = vpop.f32.mrb[27].mxu0  ;;  %v2243_v47 = vpop.f32.mrb[27].mxu1 }
 0x549   :  { %v2288_v38 = vcombine.low %v2198_v8, %v2200_v3  ;;  %v2316_v29 = vcombine.low %v2239_v5, %v2241_v53  ;;  %v2312_v55 = vrot.slane %v2149_v57, 2 }
 0x54b   :  { %v2295_v20 = vrot.slane %v2288_v38, %v4739_v60  ;;  %v2323_v11 = vrot.slane %v2316_v29, %v4739_v60 }
 0x54d   :  { %v2302_v39 = vrot.slane %v2295_v20, %v4739_v60  ;;  %v2330_v24 = vrot.slane %v2323_v11, %v4739_v60 }
 0x54f   :  { %v2304_v13 = vadd.f32 %v2302_v39, %v2149_v57  ;;  %v2332_v59 = vadd.f32 %v2330_v24, %v2312_v55  ;;  %v2358_v24 = vrot.slane %v2149_v57, 4 }
 0x551   :  { %v3506_v35 = vmul.f32 -1.442695, %v2304_v13  ;;  %v3507_v51 = vmul.f32 -1.442695, %v2332_v59 }
 0x553   :  { %3844 = vpow2.f32 %v3506_v35 }
 0x554   :  { %3846 = vpow2.f32 %v3507_v51 }
 0x55d   :  { %v3845_v47 = vpop.eup %3844 }
 0x55e   :  { %v2308_v53 = vadd.f32 1.0, %v3845_v47  ;;  %v3847_v25 = vpop.eup %3846 }
 0x55f   :  { %v2336_v5 = vadd.f32 1.0, %v3847_v25  ;;  %v6219_v25 = vld [vmem:[#allocation74_spill] sm:$0xff] }
 0x560   :  { %3848 = vrcp.f32 %v2308_v53 }
 0x561   :  { %3850 = vrcp.f32 %v2336_v5  ;;  %v6222_v5 = vld [vmem:[#allocation20_spill] sm:$0xff] }
 0x56a   :  { %v3849_v10 = vpop.eup %3848 }
 0x56b   :  { %v3851_v59 = vpop.eup %3850 }
 0x56c   :  { %v2362_v51 = vsub.f32 1.0, %v3851_v59 }
 0x585   :  { %v2279_v38 = vpop.f32.mrb[28].mxu0 }
 0x586   :  { %v2280_v8 = vadd.f32 %v2279_v38, %v6111_v15  ;;  %v2281_v20 = vpop.f32.mrb[29].mxu0  ;;  %v2364_v38 = vmul.f32 %v3851_v59, %v5088_v46  ;;  %v6218_v46 = vld [vmem:[#allocation23_spill] sm:$0xff]  ;;  %v6229_v59 = vld [vmem:[#allocation29_spill] sm:$0xff] }
 0x587   :  { %v2282_v41 = vadd.f32 %v2281_v20, %v4749_v2  ;;  %v2283_v39 = vpop.f32.mrb[30].mxu0 }
 0x588   :  { %v2284_v3 = vpop.f32.mrb[31].mxu0 }
 0x589   :  { %v2341_v29 = vcombine.low %v2280_v8, %v2282_v41  ;;  %v6220_v3 = vld [vmem:[#allocation33_spill] sm:$0xff] }
 0x58b   :  { %v2348_v35 = vrot.slane %v2341_v29, %v4739_v60  ;;  %v6221_v29 = vld [vmem:[#allocation19_spill] sm:$0xff] }
 0x58d   :  { %v2355_v11 = vrot.slane %v2348_v35, %v4739_v60  ;;  %v6223_v35 = vld [vmem:[#allocation35_spill] sm:$0xff] }
 0x58f   :  { %v2357_v13 = vmul.f32 %v3849_v10, %v2355_v11  ;;  %v6224_v11 = vld [vmem:[#allocation37_spill] sm:$0xff] }
 0x590   :  { %v6225_v10 = vld [vmem:[#allocation17_spill] sm:$0xff] }
 0x591   :  { %v2360_v55 = vadd.f32 %v2358_v24, %v2357_v13  ;;  %v6226_v13 = vld [vmem:[#allocation28_spill] sm:$0xff]  ;;  %v6227_v24 = vld [vmem:[#allocation39_spill] sm:$0xff] }
 0x593   :  { %3852 = vtanh.f32 %v2360_v55  ;;  %v6228_v55 = vld [vmem:[#allocation24_spill] sm:$0xff] }
 0x59d   :  { %v3853_v47 = vpop.eup %3852 }
 0x59e   :  { %v2363_v53 = vmul.f32 %v3853_v47, %v2362_v51  ;;  %v6230_v51 = vld [vmem:[#allocation30_spill] sm:$0xff]  ;;  %v6231_v47 = vld [vmem:[#allocation25_spill] sm:$0xff] }
 0x5a0   :  { %v5321_v20 = vadd.f32 %v2364_v38, %v2363_v53  ;;  %v6232_v53 = vld [vmem:[#allocation36_spill] sm:$0xff]  ;;  %v6233_v38 = vld [vmem:[#allocation31_spill] sm:$0xff] }
 0x5a2   :  { %2367 = vst.msk [vmem:[#allocation12 + $0x3] ss:$8 sm:$0x3] %vm4295_vm0, %v5321_v20  ;;  %v2381_v8 = vrot.slane %v5321_v20, %v6050_v34  ;;  %v2377_v57 = vrot.slane %v5321_v20, %v6049_v19 }
 0x5a4   :  { %v2385_v41 = vpack.c.bf16 %v2381_v8, %v2381_v8  ;;  %v5330_v39 = vpack.c.bf16 %v2377_v57, %v2377_v57  ;;  %v6234_v8 = vld [vmem:[#allocation32_spill] sm:$0xff]  ;;  %v6235_v57 = vld [vmem:[#allocation38_spill] sm:$0xff] }
 0x5a6   :  { %2418 = vmatprep.mubr.bf16.mxu1 %v2385_v41  ;;  %2459 = vmatprep.mubr.bf16.mxu0 %v2385_v41 }
 0x5a7   :  { %2419 = vmatmul.mubr.bf16.vlgmr.msra.gmra.mrb[28].mxu1 %v5330_v39  ;;  %2460 = vmatmul.mubr.bf16.vlgmr.msra.gmra.mrb[32].mxu0 %v5330_v39 }
 0x5a8   :  { %2469 = vmatpush1.bf16.msra.mxu1 %v5101_v7  ;;  %2500 = vmatprep.mubr.bf16.mxu1 %v2385_v41  ;;  %v6236_v41 = vld [vmem:[#allocation34_spill] sm:$0xff] }
 0x5a9   :  { %2470 = vmatprep.subr.bf16.mxu1 %v5104_v45  ;;  %2610 = vmatpush1.bf16.msra.mxu0 %v4775_v6  ;;  %v6210_v6 = vld [vmem:[#allocation60_spill] sm:$0xff] }
 0x5aa   :  { %2611 = vmatprep.subr.bf16.mxu0 %v4778_v31  ;;  %v6211_v31 = vld [vmem:[#allocation62_spill] sm:$0xff] }
 0x5ac   :  { %2471 = vmatpush1.bf16.msra.mxu1 %v5109_v21 }
 0x5ad   :  { %2472 = vmatprep.subr.bf16.mxu1 %v5112_v23  ;;  %2612 = vmatpush1.bf16.msra.mxu0 %v4783_v52  ;;  %v6212_v52 = vld [vmem:[#allocation64_spill] sm:$0xff] }
 0x5ae   :  { %2613 = vmatprep.subr.bf16.mxu0 %v4786_v26  ;;  %v6213_v26 = vld [vmem:[#allocation66_spill] sm:$0xff] }
 0x5b0   :  { %2473 = vmatpush1.bf16.msra.mxu1 %v5117_v12 }
 0x5b1   :  { %2474 = vmatprep.subr.bf16.mxu1 %v5120_v42  ;;  %2614 = vmatpush1.bf16.msra.mxu0 %v4791_v28  ;;  %v6214_v28 = vld [vmem:[#allocation68_spill] sm:$0xff] }
 0x5b2   :  { %2615 = vmatprep.subr.bf16.mxu0 %v6112_v18  ;;  %v6216_v18 = vld [vmem:[#allocation72_spill] sm:$0xff] }
 0x5b4   :  { %2475 = vmatpush1.bf16.msra.mxu1 %v5125_v58 }
 0x5b5   :  { %2476 = vmatprep.subr.bf16.mxu1 %v5128_v9  ;;  %2616 = vmatpush1.bf16.msra.mxu0 %v6115_v32  ;;  %v6217_v32 = vld [vmem:[#allocation18_spill] sm:$0xff] }
 0x5b6   :  { %2617 = vmatprep.subr.bf16.mxu0 %v4802_v48  ;;  %v6215_v48 = vld [vmem:[#allocation70_spill] sm:$0xff] }
 0x5b8   :  { %2477 = vmatpush1.bf16.msra.mxu1 %v5133_v1 }
 0x5b9   :  { %2478 = vmatprep.subr.bf16.mxu1 %v5136_v14  ;;  %2618 = vmatpush1.bf16.msra.mxu0 %v4932_v16 }
 0x5ba   :  { %2619 = vmatprep.subr.bf16.mxu0 %v4935_v56 }
 0x5bc   :  { %2479 = vmatpush1.bf16.msra.mxu1 %v5141_v17 }
 0x5bd   :  { %2480 = vmatprep.subr.bf16.mxu1 %v5144_v54  ;;  %2620 = vmatpush1.bf16.msra.mxu0 %v4940_v22 }
 0x5be   :  { %2621 = vmatprep.subr.bf16.mxu0 %v4943_v63 }
 0x5c0   :  { %2481 = vmatpush1.bf16.msra.mxu1 %v5149_v49 }
 0x5c1   :  { %2482 = vmatprep.subr.bf16.mxu1 %v5152_v40  ;;  %2622 = vmatpush1.bf16.msra.mxu0 %v4948_v0 }
 0x5c2   :  { %2623 = vmatprep.subr.bf16.mxu0 %v4951_v27 }
 0x5c4   :  { %2483 = vmatpush1.bf16.msra.mxu1 %v5157_v61 }
 0x5c5   :  { %2484 = vmatprep.subr.bf16.mxu1 %v6210_v6  ;;  %2624 = vmatpush1.bf16.msra.mxu0 %v4956_v30 }
 0x5c6   :  { %2625 = vmatprep.subr.bf16.mxu0 %v4959_v37 }
 0x5c8   :  { %2485 = vmatpush1.bf16.msra.mxu1 %v6211_v31 }
 0x5c9   :  { %2486 = vmatprep.subr.bf16.mxu1 %v6212_v52  ;;  %2626 = vmatpush1.bf16.msra.mxu0 %v4964_v36 }
 0x5ca   :  { %2627 = vmatprep.subr.bf16.mxu0 %v4967_v62 }
 0x5cc   :  { %2487 = vmatpush1.bf16.msra.mxu1 %v6213_v26 }
 0x5cd   :  { %2488 = vmatprep.subr.bf16.mxu1 %v6214_v28  ;;  %2628 = vmatpush1.bf16.msra.mxu0 %v4972_v4 }
 0x5ce   :  { %2629 = vmatprep.subr.bf16.mxu0 %v4975_v33 }
 0x5d0   :  { %2489 = vmatpush1.bf16.msra.mxu1 %v6215_v48 }
 0x5d1   :  { %2490 = vmatprep.subr.bf16.mxu1 %v6216_v18  ;;  %2630 = vmatpush1.bf16.msra.mxu0 %v6217_v32 }
 0x5d2   :  { %2631 = vmatprep.subr.bf16.mxu0 %v6218_v46 }
 0x5d4   :  { %2491 = vmatpush1.bf16.msra.mxu1 %v6219_v25 }
 0x5d5   :  { %2492 = vmatprep.subr.bf16.mxu1 %v6220_v3  ;;  %2632 = vmatpush1.bf16.msra.mxu0 %v6221_v29  ;;  %v2371_v3 = vld [vmem:[#allocation3 + $0x4] ss:$8 sm:$0x30] }
 0x5d6   :  { %2633 = vmatprep.subr.bf16.mxu0 %v6222_v5 }
 0x5d8   :  { %2493 = vmatpush1.bf16.msra.mxu1 %v6223_v35 }
 0x5d9   :  { %2494 = vmatprep.subr.bf16.mxu1 %v6224_v11  ;;  %2634 = vmatpush1.bf16.msra.mxu0 %v6225_v10  ;;  %v6272_v10 = vld [vmem:[#allocation22_spill] sm:$0xff] }
 0x5da   :  { %2635 = vmatprep.subr.bf16.mxu0 %v6226_v13  ;;  %v6237_v13 = vld [vmem:[#allocation40_spill] sm:$0xff] }
 0x5dc   :  { %2495 = vmatpush1.bf16.msra.mxu1 %v6227_v24  ;;  %v6238_v24 = vld [vmem:[#allocation44_spill] sm:$0xff] }
 0x5dd   :  { %2496 = vmatprep.subr.bf16.mxu1 %v6228_v55  ;;  %2636 = vmatpush1.bf16.msra.mxu0 %v6229_v59  ;;  %v6239_v59 = vld [vmem:[#allocation46_spill] sm:$0xff]  ;;  %v6271_v55 = vld [vmem:[#allocation21_spill] sm:$0xff] }
 0x5de   :  { %2637 = vmatprep.subr.bf16.mxu0 %v6230_v51  ;;  %v6240_v51 = vld [vmem:[#allocation48_spill] sm:$0xff] }
 0x5e0   :  { %2497 = vmatpush1.bf16.msra.mxu1 %v6231_v47  ;;  %v6241_v47 = vld [vmem:[#allocation50_spill] sm:$0xff] }
 0x5e1   :  { %2498 = vmatprep.subr.bf16.mxu1 %v6232_v53  ;;  %2638 = vmatpush1.bf16.msra.mxu0 %v6233_v38  ;;  %v6242_v53 = vld [vmem:[#allocation52_spill] sm:$0xff]  ;;  %v6243_v38 = vld [vmem:[#allocation54_spill] sm:$0xff] }
 0x5e2   :  { %2639 = vmatprep.subr.bf16.mxu0 %v6234_v8  ;;  %v6244_v8 = vld [vmem:[#allocation56_spill] sm:$0xff] }
 0x5e4   :  { %2499 = vmatpush1.bf16.msra.mxu1 %v6235_v57  ;;  %v6245_v57 = vld [vmem:[#allocation58_spill] sm:$0xff] }
 0x5e5   :  { %2650 = vmatprep.subr.bf16.mxu1 %v6236_v41  ;;  %2640 = vmatpush1.bf16.msra.mxu0 %v6237_v13  ;;  %v6246_v41 = vld [vmem:[#allocation26_spill] sm:$0xff] }
 0x5e6   :  { %2691 = vmatprep.subr.bf16.mxu0 %v6238_v24  ;;  %v6247_v13 = vld [vmem:[#allocation42_spill] sm:$0xff]  ;;  %v6248_v24 = vld [vmem:[#allocation41_spill] sm:$0xff] }
 0x5e7   :  { %2501 = vmatmul.mubr.bf16.vlgmr.msra.gmra.mrb[32].mxu1 %v5330_v39  ;;  %v6249_v39 = vld [vmem:[#allocation43_spill] sm:$0xff] }
 0x5e8   :  { %2651 = vmatpush1.bf16.msra.mxu1 %v6239_v59  ;;  %v6250_v59 = vld [vmem:[#allocation45_spill] sm:$0xff] }
 0x5e9   :  { %2652 = vmatprep.subr.bf16.mxu1 %v6240_v51  ;;  %v6251_v51 = vld [vmem:[#allocation47_spill] sm:$0xff] }
 0x5ec   :  { %2653 = vmatpush1.bf16.msra.mxu1 %v6241_v47  ;;  %v6252_v47 = vld [vmem:[#allocation49_spill] sm:$0xff] }
 0x5ed   :  { %2654 = vmatprep.subr.bf16.mxu1 %v6242_v53  ;;  %v6253_v53 = vld [vmem:[#allocation51_spill] sm:$0xff] }
 0x5f0   :  { %2655 = vmatpush1.bf16.msra.mxu1 %v6243_v38  ;;  %v6254_v38 = vld [vmem:[#allocation53_spill] sm:$0xff] }
 0x5f1   :  { %2656 = vmatprep.subr.bf16.mxu1 %v6244_v8  ;;  %v6255_v8 = vld [vmem:[#allocation55_spill] sm:$0xff] }
 0x5f4   :  { %2657 = vmatpush1.bf16.msra.mxu1 %v6245_v57  ;;  %v6256_v57 = vld [vmem:[#allocation57_spill] sm:$0xff] }
 0x5f5   :  { %2658 = vmatprep.subr.bf16.mxu1 %v6246_v41  ;;  %v6257_v41 = vld [vmem:[#allocation59_spill] sm:$0xff] }
 0x5f8   :  { %2659 = vmatpush1.bf16.msra.mxu1 %v6247_v13  ;;  %v6258_v13 = vld [vmem:[#allocation61_spill] sm:$0xff] }
 0x5f9   :  { %2660 = vmatprep.subr.bf16.mxu1 %v6248_v24  ;;  %v6259_v24 = vld [vmem:[#allocation63_spill] sm:$0xff] }
 0x5fc   :  { %2661 = vmatpush1.bf16.msra.mxu1 %v6249_v39  ;;  %v6260_v39 = vld [vmem:[#allocation65_spill] sm:$0xff] }
 0x5fd   :  { %2662 = vmatprep.subr.bf16.mxu1 %v6250_v59  ;;  %v6261_v59 = vld [vmem:[#allocation67_spill] sm:$0xff] }
 0x600   :  { %2663 = vmatpush1.bf16.msra.mxu1 %v6251_v51  ;;  %v6262_v51 = vld [vmem:[#allocation69_spill] sm:$0xff] }
 0x601   :  { %2664 = vmatprep.subr.bf16.mxu1 %v6252_v47  ;;  %v6263_v47 = vld [vmem:[#allocation71_spill] sm:$0xff] }
 0x604   :  { %2665 = vmatpush1.bf16.msra.mxu1 %v6253_v53  ;;  %v6264_v53 = vld [vmem:[#allocation73_spill] sm:$0xff] }
 0x605   :  { %2666 = vmatprep.subr.bf16.mxu1 %v6254_v38  ;;  %v6265_v38 = vld [vmem:[#allocation75_spill] sm:$0xff] }
 0x608   :  { %2667 = vmatpush1.bf16.msra.mxu1 %v6255_v8  ;;  %v6266_v8 = vld [vmem:[#allocation76_spill] sm:$0xff] }
 0x609   :  { %2668 = vmatprep.subr.bf16.mxu1 %v6256_v57  ;;  %v6267_v57 = vld [vmem:[#allocation77_spill] sm:$0xff] }
 0x60c   :  { %2669 = vmatpush1.bf16.msra.mxu1 %v6257_v41  ;;  %v6268_v41 = vld [vmem:[#allocation78_spill] sm:$0xff] }
 0x60d   :  { %2670 = vmatprep.subr.bf16.mxu1 %v6258_v13  ;;  %v6269_v13 = vld [vmem:[#allocation79_spill] sm:$0xff] }
 0x610   :  { %2671 = vmatpush1.bf16.msra.mxu1 %v6259_v24  ;;  %v6270_v24 = vld [vmem:[#allocation27_spill] sm:$0xff] }
 0x611   :  { %2672 = vmatprep.subr.bf16.mxu1 %v6260_v39 }
 0x614   :  { %2673 = vmatpush1.bf16.msra.mxu1 %v6261_v59 }
 0x615   :  { %2674 = vmatprep.subr.bf16.mxu1 %v6262_v51 }
 0x618   :  { %2675 = vmatpush1.bf16.msra.mxu1 %v6263_v47 }
 0x619   :  { %2676 = vmatprep.subr.bf16.mxu1 %v6264_v53 }
 0x61c   :  { %2677 = vmatpush1.bf16.msra.mxu1 %v6265_v38 }
 0x61d   :  { %2678 = vmatprep.subr.bf16.mxu1 %v6266_v8 }
 0x620   :  { %2679 = vmatpush1.bf16.msra.mxu1 %v6267_v57 }
 0x621   :  { %2680 = vmatprep.subr.bf16.mxu1 %v6268_v41 }
 0x624   :  { %2681 = vmatpush1.bf16.msra.mxu1 %v6269_v13 }
 0x625   :  { %2832 = vmatprep.subr.bf16.mxu1 %v6270_v24 }
 0x67a   :  { %v2420_v39 = vpop.f32.mrb[28].mxu1  ;;  %v2461_v59 = vpop.f32.mrb[32].mxu0 }
 0x67b   :  { %v2421_v51 = vadd.f32 %v2420_v39, %v6271_v55  ;;  %v2462_v47 = vadd.f32 %v2461_v59, %v6272_v10  ;;  %v2422_v11 = vpop.f32.mrb[29].mxu1  ;;  %v2463_v53 = vpop.f32.mrb[33].mxu0  ;;  %v2370_v39 = vld [vmem:[#allocation3 + $0x4] ss:$8 sm:$0xf] }
 0x67c   :  { %v2423_v38 = vadd.f32 %v2422_v11, %v4734_v44  ;;  %v2464_v8 = vadd.f32 %v2463_v53, %v4747_v50  ;;  %v2424_v35 = vpop.f32.mrb[30].mxu1  ;;  %v2465_v57 = vpop.f32.mrb[34].mxu0  ;;  %v2372_v55 = vor.u32 %v2371_v3, %v2370_v39 }
 0x67d   :  { %v2425_v5 = vpop.f32.mrb[31].mxu1  ;;  %v2466_v41 = vpop.f32.mrb[35].mxu0 }
 0x67e   :  { %v2511_v29 = vcombine.low %v2421_v51, %v2423_v38  ;;  %v2539_v13 = vcombine.low %v2462_v47, %v2464_v8  ;;  %v2535_v35 = vrot.slane %v2372_v55, 2 }
 0x680   :  { %v2518_v24 = vrot.slane %v2511_v29, %v4739_v60  ;;  %v2546_v10 = vrot.slane %v2539_v13, %v4739_v60 }
 0x682   :  { %v2525_v25 = vrot.slane %v2518_v24, %v4739_v60  ;;  %v2553_v11 = vrot.slane %v2546_v10, %v4739_v60 }
 0x684   :  { %v2527_v59 = vadd.f32 %v2525_v25, %v2372_v55  ;;  %v2555_v53 = vadd.f32 %v2553_v11, %v2535_v35  ;;  %v2581_v11 = vrot.slane %v2372_v55, 4 }
 0x686   :  { %v3508_v46 = vmul.f32 -1.442695, %v2527_v59  ;;  %v3509_v5 = vmul.f32 -1.442695, %v2555_v53 }
 0x688   :  { %3854 = vpow2.f32 %v3508_v46 }
 0x689   :  { %3856 = vpow2.f32 %v3509_v5 }
 0x692   :  { %v3855_v57 = vpop.eup %3854 }
 0x693   :  { %v2531_v51 = vadd.f32 1.0, %v3855_v57  ;;  %v3857_v8 = vpop.eup %3856 }
 0x694   :  { %v2559_v24 = vadd.f32 1.0, %v3857_v8  ;;  %v5462_v8 = vld [vmem:[#allocation11 + $0x34] ss:$24 sps:$4 sm:$0xff]  }
 0x695   :  { %3858 = vrcp.f32 %v2531_v51 }
 0x696   :  { %3860 = vrcp.f32 %v2559_v24  ;;  %v5475_v24 = vld [vmem:[#allocation11 + $0x60] ss:$24 sps:$4 sm:$0xff]  }
 0x69f   :  { %v3859_v39 = vpop.eup %3858 }
 0x6a0   :  { %v3861_v53 = vpop.eup %3860 }
 0x6a1   :  { %v2585_v5 = vsub.f32 1.0, %v3861_v53 }
 0x6ba   :  { %v2502_v29 = vpop.f32.mrb[32].mxu1 }
 0x6bb   :  { %v2503_v47 = vadd.f32 %v2502_v29, %v6111_v15  ;;  %v2504_v38 = vpop.f32.mrb[33].mxu1  ;;  %v2587_v29 = vmul.f32 %v3861_v53, %v5321_v20  ;;  %v5459_v20 = vld [vmem:[#allocation11] ss:$24 sps:$4 sm:$0xff]   ;;  %v6289_v53 = vld [vmem:[#allocation32_spill] sm:$0xff] }
 0x6bc   :  { %v2505_v3 = vadd.f32 %v2504_v38, %v4749_v2  ;;  %v2506_v25 = vpop.f32.mrb[34].mxu1 }
 0x6bd   :  { %v2507_v13 = vpop.f32.mrb[35].mxu1 }
 0x6be   :  { %v2564_v41 = vcombine.low %v2503_v47, %v2505_v3  ;;  %v5467_v13 = vld [vmem:[#allocation11 + $0x30] ss:$24 sps:$4 sm:$0xff]  }
 0x6c0   :  { %v2571_v46 = vrot.slane %v2564_v41, %v4739_v60  ;;  %v5470_v41 = vld [vmem:[#allocation11 + $0x64] ss:$24 sps:$4 sm:$0xff]  }
 0x6c2   :  { %v2578_v10 = vrot.slane %v2571_v46, %v4739_v60  ;;  %v5478_v46 = vld [vmem:[#allocation11 + $0x94] ss:$24 sps:$4 sm:$0xff]  }
 0x6c4   :  { %v2580_v59 = vmul.f32 %v3859_v39, %v2578_v10  ;;  %v5483_v10 = vld [vmem:[#allocation11 + $0x90] ss:$24 sps:$4 sm:$0xff]   ;;  %v5486_v39 = vld [vmem:[#allocation11 + $0xc4] ss:$24 sps:$4 sm:$0xff]  }
 0x6c6   :  { %v2583_v35 = vadd.f32 %v2581_v11, %v2580_v59  ;;  %v6286_v59 = vld [vmem:[#allocation25_spill] sm:$0xff]  ;;  %v6287_v11 = vld [vmem:[#allocation36_spill] sm:$0xff] }
 0x6c8   :  { %3862 = vtanh.f32 %v2583_v35  ;;  %v6288_v35 = vld [vmem:[#allocation31_spill] sm:$0xff] }
 0x6d2   :  { %v3863_v57 = vpop.eup %3862 }
 0x6d3   :  { %v2586_v51 = vmul.f32 %v3863_v57, %v2585_v5  ;;  %v6290_v5 = vld [vmem:[#allocation38_spill] sm:$0xff] }
 0x6d4   :  { %v6291_v57 = vld [vmem:[#allocation34_spill] sm:$0xff] }
 0x6d5   :  { %v5444_v38 = vadd.f32 %v2587_v29, %v2586_v51  ;;  %v6292_v51 = vld [vmem:[#allocation40_spill] sm:$0xff] }
 0x6d6   :  { %v6293_v29 = vld [vmem:[#allocation44_spill] sm:$0xff] }
 0x6d7   :  { %2590 = vst.msk [vmem:[#allocation12 + $0x4] ss:$8 sm:$0x3] %vm4295_vm0, %v5444_v38  ;;  %v2604_v47 = vrot.slane %v5444_v38, %v6050_v34  ;;  %v2600_v55 = vrot.slane %v5444_v38, %v6049_v19 }
 0x6d9   :  { %v2608_v3 = vpack.c.bf16 %v2604_v47, %v2604_v47  ;;  %v5453_v25 = vpack.c.bf16 %v2600_v55, %v2600_v55  ;;  %v6294_v47 = vld [vmem:[#allocation46_spill] sm:$0xff]  ;;  %v6295_v55 = vld [vmem:[#allocation48_spill] sm:$0xff] }
 0x6db   :  { %2641 = vmatprep.mubr.bf16.mxu0 %v2608_v3  ;;  %2682 = vmatprep.mubr.bf16.mxu1 %v2608_v3 }
 0x6dc   :  { %2642 = vmatmul.mubr.bf16.vlgmr.msra.gmra.mrb[36].mxu0 %v5453_v25  ;;  %2683 = vmatmul.mubr.bf16.vlgmr.msra.gmra.mrb[36].mxu1 %v5453_v25 }
 0x6dd   :  { %2692 = vmatpush1.bf16.msra.mxu0 %v5101_v7  ;;  %2723 = vmatprep.mubr.bf16.mxu0 %v2608_v3  ;;  %v6296_v3 = vld [vmem:[#allocation50_spill] sm:$0xff] }
 0x6de   :  { %2693 = vmatprep.subr.bf16.mxu0 %v5104_v45  ;;  %2833 = vmatpush1.bf16.msra.mxu1 %v5459_v20 }
 0x6df   :  { %2834 = vmatprep.subr.bf16.mxu1 %v5462_v8 }
 0x6e1   :  { %2694 = vmatpush1.bf16.msra.mxu0 %v5109_v21 }
 0x6e2   :  { %2695 = vmatprep.subr.bf16.mxu0 %v5112_v23  ;;  %2835 = vmatpush1.bf16.msra.mxu1 %v5467_v13 }
 0x6e3   :  { %2836 = vmatprep.subr.bf16.mxu1 %v5470_v41 }
 0x6e5   :  { %2696 = vmatpush1.bf16.msra.mxu0 %v5117_v12 }
 0x6e6   :  { %2697 = vmatprep.subr.bf16.mxu0 %v5120_v42  ;;  %2837 = vmatpush1.bf16.msra.mxu1 %v5475_v24 }
 0x6e7   :  { %2838 = vmatprep.subr.bf16.mxu1 %v5478_v46 }
 0x6e9   :  { %2698 = vmatpush1.bf16.msra.mxu0 %v5125_v58 }
 0x6ea   :  { %2699 = vmatprep.subr.bf16.mxu0 %v5128_v9  ;;  %2839 = vmatpush1.bf16.msra.mxu1 %v5483_v10 }
 0x6eb   :  { %2840 = vmatprep.subr.bf16.mxu1 %v5486_v39 }
 0x6ed   :  { %2700 = vmatpush1.bf16.msra.mxu0 %v5133_v1 }
 0x6ee   :  { %2701 = vmatprep.subr.bf16.mxu0 %v5136_v14  ;;  %2841 = vmatpush1.bf16.msra.mxu1 %v4932_v16  ;;  %v6273_v16 = vld [vmem:[#allocation23_spill] sm:$0xff] }
 0x6ef   :  { %2842 = vmatprep.subr.bf16.mxu1 %v4935_v56  ;;  %v6274_v56 = vld [vmem:[#allocation74_spill] sm:$0xff] }
 0x6f1   :  { %2702 = vmatpush1.bf16.msra.mxu0 %v5141_v17 }
 0x6f2   :  { %2703 = vmatprep.subr.bf16.mxu0 %v5144_v54  ;;  %2843 = vmatpush1.bf16.msra.mxu1 %v4940_v22  ;;  %v6275_v22 = vld [vmem:[#allocation33_spill] sm:$0xff] }
 0x6f3   :  { %2844 = vmatprep.subr.bf16.mxu1 %v4943_v63  ;;  %v6276_v63 = vld [vmem:[#allocation19_spill] sm:$0xff] }
 0x6f5   :  { %2704 = vmatpush1.bf16.msra.mxu0 %v5149_v49 }
 0x6f6   :  { %2705 = vmatprep.subr.bf16.mxu0 %v5152_v40  ;;  %2845 = vmatpush1.bf16.msra.mxu1 %v4948_v0  ;;  %v6277_v0 = vld [vmem:[#allocation20_spill] sm:$0xff] }
 0x6f7   :  { %2846 = vmatprep.subr.bf16.mxu1 %v4951_v27  ;;  %v6278_v27 = vld [vmem:[#allocation35_spill] sm:$0xff] }
 0x6f9   :  { %2706 = vmatpush1.bf16.msra.mxu0 %v5157_v61 }
 0x6fa   :  { %2707 = vmatprep.subr.bf16.mxu0 %v6210_v6  ;;  %2847 = vmatpush1.bf16.msra.mxu1 %v4956_v30  ;;  %v6279_v30 = vld [vmem:[#allocation37_spill] sm:$0xff] }
 0x6fb   :  { %2848 = vmatprep.subr.bf16.mxu1 %v4959_v37  ;;  %v6280_v37 = vld [vmem:[#allocation17_spill] sm:$0xff] }
 0x6fd   :  { %2708 = vmatpush1.bf16.msra.mxu0 %v6211_v31 }
 0x6fe   :  { %2709 = vmatprep.subr.bf16.mxu0 %v6212_v52  ;;  %2849 = vmatpush1.bf16.msra.mxu1 %v4964_v36  ;;  %v6281_v36 = vld [vmem:[#allocation28_spill] sm:$0xff] }
 0x6ff   :  { %2850 = vmatprep.subr.bf16.mxu1 %v4967_v62  ;;  %v6282_v62 = vld [vmem:[#allocation39_spill] sm:$0xff] }
 0x701   :  { %2710 = vmatpush1.bf16.msra.mxu0 %v6213_v26 }
 0x702   :  { %2711 = vmatprep.subr.bf16.mxu0 %v6214_v28  ;;  %2851 = vmatpush1.bf16.msra.mxu1 %v4972_v4  ;;  %v6283_v4 = vld [vmem:[#allocation24_spill] sm:$0xff] }
 0x703   :  { %2852 = vmatprep.subr.bf16.mxu1 %v4975_v33  ;;  %v6284_v33 = vld [vmem:[#allocation29_spill] sm:$0xff] }
 0x705   :  { %2712 = vmatpush1.bf16.msra.mxu0 %v6215_v48 }
 0x706   :  { %2713 = vmatprep.subr.bf16.mxu0 %v6216_v18  ;;  %2853 = vmatpush1.bf16.msra.mxu1 %v6217_v32  ;;  %v6285_v32 = vld [vmem:[#allocation30_spill] sm:$0xff] }
 0x707   :  { %2854 = vmatprep.subr.bf16.mxu1 %v6273_v16  ;;  %v6297_v16 = vld [vmem:[#allocation52_spill] sm:$0xff] }
 0x709   :  { %2714 = vmatpush1.bf16.msra.mxu0 %v6274_v56 }
 0x70a   :  { %2715 = vmatprep.subr.bf16.mxu0 %v6275_v22  ;;  %2855 = vmatpush1.bf16.msra.mxu1 %v6276_v63  ;;  %v6298_v63 = vld [vmem:[#allocation54_spill] sm:$0xff] }
 0x70b   :  { %2856 = vmatprep.subr.bf16.mxu1 %v6277_v0  ;;  %v6299_v0 = vld [vmem:[#allocation56_spill] sm:$0xff] }
 0x70d   :  { %2716 = vmatpush1.bf16.msra.mxu0 %v6278_v27 }
 0x70e   :  { %2717 = vmatprep.subr.bf16.mxu0 %v6279_v30  ;;  %2857 = vmatpush1.bf16.msra.mxu1 %v6280_v37  ;;  %v6300_v37 = vld [vmem:[#allocation58_spill] sm:$0xff] }
 0x70f   :  { %2858 = vmatprep.subr.bf16.mxu1 %v6281_v36  ;;  %v6301_v36 = vld [vmem:[#allocation26_spill] sm:$0xff] }
 0x711   :  { %2718 = vmatpush1.bf16.msra.mxu0 %v6282_v62 }
 0x712   :  { %2719 = vmatprep.subr.bf16.mxu0 %v6283_v4  ;;  %2859 = vmatpush1.bf16.msra.mxu1 %v6284_v33  ;;  %v6302_v33 = vld [vmem:[#allocation42_spill] sm:$0xff] }
 0x713   :  { %2860 = vmatprep.subr.bf16.mxu1 %v6285_v32  ;;  %v6303_v32 = vld [vmem:[#allocation41_spill] sm:$0xff] }
 0x715   :  { %2720 = vmatpush1.bf16.msra.mxu0 %v6286_v59 }
 0x716   :  { %2721 = vmatprep.subr.bf16.mxu0 %v6287_v11  ;;  %2861 = vmatpush1.bf16.msra.mxu1 %v6288_v35  ;;  %v6305_v35 = vld [vmem:[#allocation45_spill] sm:$0xff] }
 0x717   :  { %2862 = vmatprep.subr.bf16.mxu1 %v6289_v53  ;;  %v6306_v53 = vld [vmem:[#allocation47_spill] sm:$0xff]  ;;  %v2594_v11 = vld [vmem:[#allocation3 + $0x5] ss:$8 sm:$0x30] }
 0x719   :  { %2722 = vmatpush1.bf16.msra.mxu0 %v6290_v5 }
 0x71a   :  { %2873 = vmatprep.subr.bf16.mxu0 %v6291_v57  ;;  %2863 = vmatpush1.bf16.msra.mxu1 %v6292_v51  ;;  %v6307_v57 = vld [vmem:[#allocation49_spill] sm:$0xff]  ;;  %v6308_v51 = vld [vmem:[#allocation51_spill] sm:$0xff] }
 0x71b   :  { %2914 = vmatprep.subr.bf16.mxu1 %v6293_v29  ;;  %v6309_v29 = vld [vmem:[#allocation53_spill] sm:$0xff] }
 0x71c   :  { %2724 = vmatmul.mubr.bf16.vlgmr.msra.gmra.mrb[40].mxu0 %v5453_v25  ;;  %v6304_v25 = vld [vmem:[#allocation43_spill] sm:$0xff] }
 0x71d   :  { %2874 = vmatpush1.bf16.msra.mxu0 %v6294_v47  ;;  %v6310_v47 = vld [vmem:[#allocation55_spill] sm:$0xff] }
 0x71e   :  { %2875 = vmatprep.subr.bf16.mxu0 %v6295_v55  ;;  %v6311_v55 = vld [vmem:[#allocation57_spill] sm:$0xff] }
 0x721   :  { %2876 = vmatpush1.bf16.msra.mxu0 %v6296_v3  ;;  %v6312_v3 = vld [vmem:[#allocation59_spill] sm:$0xff] }
 0x722   :  { %2877 = vmatprep.subr.bf16.mxu0 %v6297_v16  ;;  %v6313_v16 = vld [vmem:[#allocation61_spill] sm:$0xff] }
 0x725   :  { %2878 = vmatpush1.bf16.msra.mxu0 %v6298_v63  ;;  %v6314_v63 = vld [vmem:[#allocation63_spill] sm:$0xff] }
 0x726   :  { %2879 = vmatprep.subr.bf16.mxu0 %v6299_v0  ;;  %v6315_v0 = vld [vmem:[#allocation65_spill] sm:$0xff] }
 0x729   :  { %2880 = vmatpush1.bf16.msra.mxu0 %v6300_v37  ;;  %v6316_v37 = vld [vmem:[#allocation67_spill] sm:$0xff] }
 0x72a   :  { %2881 = vmatprep.subr.bf16.mxu0 %v6301_v36 }
 0x72d   :  { %2882 = vmatpush1.bf16.msra.mxu0 %v6302_v33 }
 0x72e   :  { %2883 = vmatprep.subr.bf16.mxu0 %v6303_v32 }
 0x731   :  { %2884 = vmatpush1.bf16.msra.mxu0 %v6304_v25  ;;  %v6326_v25 = vld [vmem:[#allocation22_spill] sm:$0xff] }
 0x732   :  { %2885 = vmatprep.subr.bf16.mxu0 %v6305_v35  ;;  %v6325_v35 = vld [vmem:[#allocation21_spill] sm:$0xff] }
 0x735   :  { %2886 = vmatpush1.bf16.msra.mxu0 %v6306_v53  ;;  %v6317_v53 = vld [vmem:[#allocation69_spill] sm:$0xff] }
 0x736   :  { %2887 = vmatprep.subr.bf16.mxu0 %v6307_v57  ;;  %v6318_v57 = vld [vmem:[#allocation71_spill] sm:$0xff] }
 0x739   :  { %2888 = vmatpush1.bf16.msra.mxu0 %v6308_v51  ;;  %v6319_v51 = vld [vmem:[#allocation73_spill] sm:$0xff] }
 0x73a   :  { %2889 = vmatprep.subr.bf16.mxu0 %v6309_v29  ;;  %v6320_v29 = vld [vmem:[#allocation75_spill] sm:$0xff] }
 0x73d   :  { %2890 = vmatpush1.bf16.msra.mxu0 %v6310_v47  ;;  %v6321_v47 = vld [vmem:[#allocation76_spill] sm:$0xff] }
 0x73e   :  { %2891 = vmatprep.subr.bf16.mxu0 %v6311_v55  ;;  %v6322_v55 = vld [vmem:[#allocation77_spill] sm:$0xff] }
 0x741   :  { %2892 = vmatpush1.bf16.msra.mxu0 %v6312_v3  ;;  %v6323_v3 = vld [vmem:[#allocation78_spill] sm:$0xff] }
 0x742   :  { %2893 = vmatprep.subr.bf16.mxu0 %v6313_v16  ;;  %v6324_v16 = vld [vmem:[#allocation79_spill] sm:$0xff] }
 0x745   :  { %2894 = vmatpush1.bf16.msra.mxu0 %v6314_v63  ;;  %v3998_v63 = vld [vmem:[#allocation11 + $0x4] ss:$24 sps:$4 sm:$0xff]  }
 0x746   :  { %2895 = vmatprep.subr.bf16.mxu0 %v6315_v0 }
 0x749   :  { %2896 = vmatpush1.bf16.msra.mxu0 %v6316_v37 }
 0x74a   :  { %2897 = vmatprep.subr.bf16.mxu0 %v6317_v53 }
 0x74d   :  { %2898 = vmatpush1.bf16.msra.mxu0 %v6318_v57 }
 0x74e   :  { %2899 = vmatprep.subr.bf16.mxu0 %v6319_v51 }
 0x751   :  { %2900 = vmatpush1.bf16.msra.mxu0 %v6320_v29 }
 0x752   :  { %2901 = vmatprep.subr.bf16.mxu0 %v6321_v47 }
 0x755   :  { %2902 = vmatpush1.bf16.msra.mxu0 %v6322_v55 }
 0x756   :  { %2903 = vmatprep.subr.bf16.mxu0 %v6323_v3 }
 0x759   :  { %2904 = vmatpush1.bf16.msra.mxu0 %v6324_v16 }
 0x75a   :  { %3055 = vmatprep.subr.bf16.mxu0 %v3998_v63 }
 0x7af   :  { %v2643_v0 = vpop.f32.mrb[36].mxu0  ;;  %v2684_v37 = vpop.f32.mrb[36].mxu1 }
 0x7b0   :  { %v2644_v53 = vadd.f32 %v2643_v0, %v6325_v35  ;;  %v2685_v57 = vadd.f32 %v2684_v37, %v6326_v25  ;;  %v2645_v32 = vpop.f32.mrb[37].mxu0  ;;  %v2686_v51 = vpop.f32.mrb[37].mxu1  ;;  %v2593_v0 = vld [vmem:[#allocation3 + $0x5] ss:$8 sm:$0xf] }
 0x7b1   :  { %v2646_v29 = vadd.f32 %v2645_v32, %v4734_v44  ;;  %v2687_v47 = vadd.f32 %v2686_v51, %v4747_v50  ;;  %v2647_v33 = vpop.f32.mrb[38].mxu0  ;;  %v2688_v55 = vpop.f32.mrb[38].mxu1  ;;  %v2595_v35 = vor.u32 %v2594_v11, %v2593_v0 }
 0x7b2   :  { %v2648_v36 = vpop.f32.mrb[39].mxu0  ;;  %v2689_v3 = vpop.f32.mrb[39].mxu1 }
 0x7b3   :  { %v2734_v5 = vcombine.low %v2644_v53, %v2646_v29  ;;  %v2762_v16 = vcombine.low %v2685_v57, %v2687_v47  ;;  %v2758_v33 = vrot.slane %v2595_v35, 2 }
 0x7b5   :  { %v2741_v63 = vrot.slane %v2734_v5, %v4739_v60  ;;  %v2769_v25 = vrot.slane %v2762_v16, %v4739_v60 }
 0x7b7   :  { %v2748_v59 = vrot.slane %v2741_v63, %v4739_v60  ;;  %v2776_v32 = vrot.slane %v2769_v25, %v4739_v60 }
 0x7b9   :  { %v2750_v37 = vadd.f32 %v2748_v59, %v2595_v35  ;;  %v2778_v51 = vadd.f32 %v2776_v32, %v2758_v33  ;;  %v2804_v32 = vrot.slane %v2595_v35, 4 }
 0x7bb   :  { %v3510_v4 = vmul.f32 -1.442695, %v2750_v37  ;;  %v3511_v36 = vmul.f32 -1.442695, %v2778_v51 }
 0x7bd   :  { %3864 = vpow2.f32 %v3510_v4 }
 0x7be   :  { %3866 = vpow2.f32 %v3511_v36 }
 0x7c7   :  { %v3865_v55 = vpop.eup %3864 }
 0x7c8   :  { %v2754_v53 = vadd.f32 1.0, %v3865_v55  ;;  %v3867_v47 = vpop.eup %3866 }
 0x7c9   :  { %v2782_v63 = vadd.f32 1.0, %v3867_v47  ;;  %v6331_v47 = vld [vmem:[#allocation26_spill] sm:$0xff] }
 0x7ca   :  { %3868 = vrcp.f32 %v2754_v53 }
 0x7cb   :  { %3870 = vrcp.f32 %v2782_v63  ;;  %v6334_v63 = vld [vmem:[#allocation43_spill] sm:$0xff] }
 0x7d4   :  { %v3869_v0 = vpop.eup %3868 }
 0x7d5   :  { %v3871_v51 = vpop.eup %3870 }
 0x7d6   :  { %v2808_v36 = vsub.f32 1.0, %v3871_v51 }
 0x7ef   :  { %v2725_v5 = vpop.f32.mrb[40].mxu0 }
 0x7f0   :  { %v2726_v57 = vadd.f32 %v2725_v5, %v6111_v15  ;;  %v2727_v29 = vpop.f32.mrb[41].mxu0  ;;  %v2810_v5 = vmul.f32 %v3871_v51, %v5444_v38  ;;  %v6329_v38 = vld [vmem:[#allocation36_spill] sm:$0xff]  ;;  %v6341_v51 = vld [vmem:[#allocation57_spill] sm:$0xff] }
 0x7f1   :  { %v2728_v11 = vadd.f32 %v2727_v29, %v4749_v2  ;;  %v2729_v59 = vpop.f32.mrb[42].mxu0 }
 0x7f2   :  { %v2730_v3 = vpop.f32.mrb[43].mxu0 }
 0x7f3   :  { %v2787_v16 = vcombine.low %v2726_v57, %v2728_v11  ;;  %v6332_v3 = vld [vmem:[#allocation42_spill] sm:$0xff] }
 0x7f5   :  { %v2794_v4 = vrot.slane %v2787_v16, %v4739_v60  ;;  %v6333_v16 = vld [vmem:[#allocation41_spill] sm:$0xff] }
 0x7f7   :  { %v2801_v25 = vrot.slane %v2794_v4, %v4739_v60  ;;  %v6335_v4 = vld [vmem:[#allocation45_spill] sm:$0xff] }
 0x7f9   :  { %v2803_v37 = vmul.f32 %v3869_v0, %v2801_v25  ;;  %v6336_v25 = vld [vmem:[#allocation47_spill] sm:$0xff]  ;;  %v6337_v0 = vld [vmem:[#allocation49_spill] sm:$0xff] }
 0x7fb   :  { %v2806_v33 = vadd.f32 %v2804_v32, %v2803_v37  ;;  %v6338_v37 = vld [vmem:[#allocation51_spill] sm:$0xff]  ;;  %v6339_v32 = vld [vmem:[#allocation53_spill] sm:$0xff] }
 0x7fd   :  { %3872 = vtanh.f32 %v2806_v33  ;;  %v6340_v33 = vld [vmem:[#allocation55_spill] sm:$0xff] }
 0x807   :  { %v3873_v55 = vpop.eup %3872 }
 0x808   :  { %v2809_v53 = vmul.f32 %v3873_v55, %v2808_v36  ;;  %v6342_v36 = vld [vmem:[#allocation59_spill] sm:$0xff]  ;;  %v6343_v55 = vld [vmem:[#allocation61_spill] sm:$0xff] }
 0x80a   :  { %v5582_v29 = vadd.f32 %v2810_v5, %v2809_v53  ;;  %v6344_v53 = vld [vmem:[#allocation63_spill] sm:$0xff]  ;;  %v6345_v5 = vld [vmem:[#allocation65_spill] sm:$0xff] }
 0x80c   :  { %2813 = vst.msk [vmem:[#allocation12 + $0x5] ss:$8 sm:$0x3] %vm4295_vm0, %v5582_v29  ;;  %v2827_v57 = vrot.slane %v5582_v29, %v6050_v34  ;;  %v2823_v35 = vrot.slane %v5582_v29, %v6049_v19 }
 0x80e   :  { %v2831_v11 = vpack.c.bf16 %v2827_v57, %v2827_v57  ;;  %v5591_v59 = vpack.c.bf16 %v2823_v35, %v2823_v35  ;;  %v6346_v57 = vld [vmem:[#allocation67_spill] sm:$0xff]  ;;  %v6347_v35 = vld [vmem:[#allocation69_spill] sm:$0xff] }
 0x810   :  { %2864 = vmatprep.mubr.bf16.mxu1 %v2831_v11  ;;  %2905 = vmatprep.mubr.bf16.mxu0 %v2831_v11 }
 0x811   :  { %2865 = vmatmul.mubr.bf16.vlgmr.msra.gmra.mrb[40].mxu1 %v5591_v59  ;;  %2906 = vmatmul.mubr.bf16.vlgmr.msra.gmra.mrb[44].mxu0 %v5591_v59 }
 0x812   :  { %2915 = vmatpush1.bf16.msra.mxu1 %v5101_v7  ;;  %2946 = vmatprep.mubr.bf16.mxu1 %v2831_v11  ;;  %v3999_v7 = vld [vmem:[#allocation11 + $0xc0] ss:$24 sps:$4 sm:$0xff]  }
 0x813   :  { %2916 = vmatprep.subr.bf16.mxu1 %v5104_v45  ;;  %3056 = vmatpush1.bf16.msra.mxu0 %v5459_v20  ;;  %v4000_v45 = vld [vmem:[#allocation11 + $0xf4] ss:$24 sps:$4 sm:$0xff]   ;;  %v4019_v20 = vld [vmem:[#allocation11 + $0x2a0] ss:$24 sps:$4 sm:$0xff]  }
 0x814   :  { %3057 = vmatprep.subr.bf16.mxu0 %v5462_v8  ;;  %v4020_v8 = vld [vmem:[#allocation11 + $0x2d4] ss:$24 sps:$4 sm:$0xff]   ;;  %v6348_v11 = vld [vmem:[#allocation71_spill] sm:$0xff] }
 0x816   :  { %2917 = vmatpush1.bf16.msra.mxu1 %v5109_v21  ;;  %v4001_v21 = vld [vmem:[#allocation11 + $0xf0] ss:$24 sps:$4 sm:$0xff]  }
 0x817   :  { %2918 = vmatprep.subr.bf16.mxu1 %v5112_v23  ;;  %3058 = vmatpush1.bf16.msra.mxu0 %v5467_v13  ;;  %v4002_v23 = vld [vmem:[#allocation11 + $0x124] ss:$24 sps:$4 sm:$0xff]  }
 0x818   :  { %3059 = vmatprep.subr.bf16.mxu0 %v5470_v41  ;;  %v6330_v13 = vld [vmem:[#allocation38_spill] sm:$0xff]  ;;  %v4021_v41 = vld [vmem:[#allocation11 + $0xc] ss:$24 sps:$4 sm:$0xff]  }
 0x81a   :  { %2919 = vmatpush1.bf16.msra.mxu1 %v5117_v12  ;;  %v4003_v12 = vld [vmem:[#allocation11 + $0x120] ss:$24 sps:$4 sm:$0xff]  }
 0x81b   :  { %2920 = vmatprep.subr.bf16.mxu1 %v5120_v42  ;;  %3060 = vmatpush1.bf16.msra.mxu0 %v5475_v24  ;;  %v4004_v42 = vld [vmem:[#allocation11 + $0x154] ss:$24 sps:$4 sm:$0xff]   ;;  %v4022_v24 = vld [vmem:[#allocation11 + $0x2d0] ss:$24 sps:$4 sm:$0xff]  }
 0x81c   :  { %3061 = vmatprep.subr.bf16.mxu0 %v5478_v46  ;;  %v4023_v46 = vld [vmem:[#allocation11 + $0x14] ss:$24 sps:$4 sm:$0xff]  }
 0x81e   :  { %2921 = vmatpush1.bf16.msra.mxu1 %v5125_v58  ;;  %v4005_v58 = vld [vmem:[#allocation11 + $0x150] ss:$24 sps:$4 sm:$0xff]  }
 0x81f   :  { %2922 = vmatprep.subr.bf16.mxu1 %v5128_v9  ;;  %3062 = vmatpush1.bf16.msra.mxu0 %v5483_v10  ;;  %v4006_v9 = vld [vmem:[#allocation11 + $0x184] ss:$24 sps:$4 sm:$0xff]   ;;  %v4024_v10 = vld [vmem:[#allocation11 + $0x8] ss:$24 sps:$4 sm:$0xff]  }
 0x820   :  { %3063 = vmatprep.subr.bf16.mxu0 %v5486_v39  ;;  %v4025_v39 = vld [vmem:[#allocation11 + $0x3c] ss:$24 sps:$4 sm:$0xff]  }
 0x822   :  { %2923 = vmatpush1.bf16.msra.mxu1 %v5133_v1  ;;  %v4007_v1 = vld [vmem:[#allocation11 + $0x180] ss:$24 sps:$4 sm:$0xff]  }
 0x823   :  { %2924 = vmatprep.subr.bf16.mxu1 %v5136_v14  ;;  %3064 = vmatpush1.bf16.msra.mxu0 %v3999_v7  ;;  %v4008_v14 = vld [vmem:[#allocation11 + $0x1b4] ss:$24 sps:$4 sm:$0xff]   ;;  %v6350_v7 = vld [vmem:[#allocation75_spill] sm:$0xff] }
 0x824   :  { %3065 = vmatprep.subr.bf16.mxu0 %v4000_v45  ;;  %v6351_v45 = vld [vmem:[#allocation76_spill] sm:$0xff] }
 0x826   :  { %2925 = vmatpush1.bf16.msra.mxu1 %v5141_v17  ;;  %v4009_v17 = vld [vmem:[#allocation11 + $0x1b0] ss:$24 sps:$4 sm:$0xff]  }
 0x827   :  { %2926 = vmatprep.subr.bf16.mxu1 %v5144_v54  ;;  %3066 = vmatpush1.bf16.msra.mxu0 %v4001_v21  ;;  %v4010_v54 = vld [vmem:[#allocation11 + $0x1e4] ss:$24 sps:$4 sm:$0xff]   ;;  %v6352_v21 = vld [vmem:[#allocation77_spill] sm:$0xff] }
 0x828   :  { %3067 = vmatprep.subr.bf16.mxu0 %v4002_v23  ;;  %v6353_v23 = vld [vmem:[#allocation78_spill] sm:$0xff] }
 0x82a   :  { %2927 = vmatpush1.bf16.msra.mxu1 %v5149_v49  ;;  %v4011_v49 = vld [vmem:[#allocation11 + $0x1e0] ss:$24 sps:$4 sm:$0xff]  }
 0x82b   :  { %2928 = vmatprep.subr.bf16.mxu1 %v5152_v40  ;;  %3068 = vmatpush1.bf16.msra.mxu0 %v4003_v12  ;;  %v4012_v40 = vld [vmem:[#allocation11 + $0x214] ss:$24 sps:$4 sm:$0xff]   ;;  %v6354_v12 = vld [vmem:[#allocation79_spill] sm:$0xff] }
 0x82c   :  { %3069 = vmatprep.subr.bf16.mxu0 %v4004_v42 }
 0x82e   :  { %2929 = vmatpush1.bf16.msra.mxu1 %v5157_v61  ;;  %v4013_v61 = vld [vmem:[#allocation11 + $0x210] ss:$24 sps:$4 sm:$0xff]  }
 0x82f   :  { %2930 = vmatprep.subr.bf16.mxu1 %v6210_v6  ;;  %3070 = vmatpush1.bf16.msra.mxu0 %v4005_v58  ;;  %v4014_v6 = vld [vmem:[#allocation11 + $0x244] ss:$24 sps:$4 sm:$0xff]  }
 0x830   :  { %3071 = vmatprep.subr.bf16.mxu0 %v4006_v9  ;;  %v6355_v9 = vld [vmem:[#allocation21_spill] sm:$0xff] }
 0x832   :  { %2931 = vmatpush1.bf16.msra.mxu1 %v6211_v31  ;;  %v4015_v31 = vld [vmem:[#allocation11 + $0x240] ss:$24 sps:$4 sm:$0xff]  }
 0x833   :  { %2932 = vmatprep.subr.bf16.mxu1 %v6212_v52  ;;  %3072 = vmatpush1.bf16.msra.mxu0 %v4007_v1  ;;  %v4016_v52 = vld [vmem:[#allocation11 + $0x274] ss:$24 sps:$4 sm:$0xff]  }
 0x834   :  { %3073 = vmatprep.subr.bf16.mxu0 %v4008_v14  ;;  %v6356_v14 = vld [vmem:[#allocation22_spill] sm:$0xff] }
 0x836   :  { %2933 = vmatpush1.bf16.msra.mxu1 %v6213_v26  ;;  %v6327_v26 = vld [vmem:[#allocation24_spill] sm:$0xff] }
 0x837   :  { %2934 = vmatprep.subr.bf16.mxu1 %v6214_v28  ;;  %3074 = vmatpush1.bf16.msra.mxu0 %v4009_v17  ;;  %v4017_v28 = vld [vmem:[#allocation11 + $0x270] ss:$24 sps:$4 sm:$0xff]  }
 0x838   :  { %3075 = vmatprep.subr.bf16.mxu0 %v4010_v54 }
 0x83a   :  { %2935 = vmatpush1.bf16.msra.mxu1 %v6215_v48  ;;  %v4018_v48 = vld [vmem:[#allocation11 + $0x2a4] ss:$24 sps:$4 sm:$0xff]  }
 0x83b   :  { %2936 = vmatprep.subr.bf16.mxu1 %v6216_v18  ;;  %3076 = vmatpush1.bf16.msra.mxu0 %v4011_v49  ;;  %v6328_v18 = vld [vmem:[#allocation25_spill] sm:$0xff] }
 0x83c   :  { %3077 = vmatprep.subr.bf16.mxu0 %v4012_v40 }
 0x83e   :  { %2937 = vmatpush1.bf16.msra.mxu1 %v6274_v56  ;;  %v4026_v56 = vld [vmem:[#allocation11 + $0x38] ss:$24 sps:$4 sm:$0xff]  }
 0x83f   :  { %2938 = vmatprep.subr.bf16.mxu1 %v6275_v22  ;;  %3078 = vmatpush1.bf16.msra.mxu0 %v4013_v61  ;;  %v4027_v22 = vld [vmem:[#allocation11 + $0x6c] ss:$24 sps:$4 sm:$0xff]  }
 0x840   :  { %3079 = vmatprep.subr.bf16.mxu0 %v4014_v6 }
 0x842   :  { %2939 = vmatpush1.bf16.msra.mxu1 %v6278_v27  ;;  %v4028_v27 = vld [vmem:[#allocation11 + $0x68] ss:$24 sps:$4 sm:$0xff]  }
 0x843   :  { %2940 = vmatprep.subr.bf16.mxu1 %v6279_v30  ;;  %3080 = vmatpush1.bf16.msra.mxu0 %v4015_v31  ;;  %v4029_v30 = vld [vmem:[#allocation11 + $0x9c] ss:$24 sps:$4 sm:$0xff]  }
 0x844   :  { %3081 = vmatprep.subr.bf16.mxu0 %v4016_v52 }
 0x846   :  { %2941 = vmatpush1.bf16.msra.mxu1 %v6282_v62  ;;  %v4030_v62 = vld [vmem:[#allocation11 + $0x98] ss:$24 sps:$4 sm:$0xff]  }
 0x847   :  { %2942 = vmatprep.subr.bf16.mxu1 %v6327_v26  ;;  %3082 = vmatpush1.bf16.msra.mxu0 %v4017_v28 }
 0x848   :  { %3083 = vmatprep.subr.bf16.mxu0 %v4018_v48 }
 0x84a   :  { %2943 = vmatpush1.bf16.msra.mxu1 %v6328_v18 }
 0x84b   :  { %2944 = vmatprep.subr.bf16.mxu1 %v6329_v38  ;;  %3084 = vmatpush1.bf16.msra.mxu0 %v4019_v20  ;;  %v2817_v38 = vld [vmem:[#allocation3 + $0x6] ss:$8 sm:$0x30] }
 0x84c   :  { %3085 = vmatprep.subr.bf16.mxu0 %v4020_v8  ;;  %v2816_v8 = vld [vmem:[#allocation3 + $0x6] ss:$8 sm:$0xf] }
 0x84e   :  { %2945 = vmatpush1.bf16.msra.mxu1 %v6330_v13  ;;  %v2818_v13 = vor.u32 %v2817_v38, %v2816_v8  ;;  %v4049_v38 = vld [vmem:[#allocation11 + $0x1c0] ss:$24 sps:$4 sm:$0xff]   ;;  %v4051_v8 = vld [vmem:[#allocation11 + $0x1f0] ss:$24 sps:$4 sm:$0xff]  }
 0x84f   :  { %3096 = vmatprep.subr.bf16.mxu1 %v4021_v41  ;;  %3086 = vmatpush1.bf16.msra.mxu0 %v4022_v24 }
 0x850   :  { %3137 = vmatprep.subr.bf16.mxu0 %v4023_v46 }
 0x851   :  { %2947 = vmatmul.mubr.bf16.vlgmr.msra.gmra.mrb[44].mxu1 %v5591_v59  ;;  %v6349_v59 = vld [vmem:[#allocation73_spill] sm:$0xff] }
 0x852   :  { %3097 = vmatpush1.bf16.msra.mxu1 %v4024_v10 }
 0x853   :  { %3098 = vmatprep.subr.bf16.mxu1 %v4025_v39  ;;  %v2981_v39 = vrot.slane %v2818_v13, 2 }
 0x856   :  { %3099 = vmatpush1.bf16.msra.mxu1 %v4026_v56 }
 0x857   :  { %3100 = vmatprep.subr.bf16.mxu1 %v4027_v22 }
 0x85a   :  { %3101 = vmatpush1.bf16.msra.mxu1 %v4028_v27 }
 0x85b   :  { %3102 = vmatprep.subr.bf16.mxu1 %v4029_v30 }
 0x85e   :  { %3103 = vmatpush1.bf16.msra.mxu1 %v4030_v62 }
 0x85f   :  { %3104 = vmatprep.subr.bf16.mxu1 %v6331_v47 }
 0x862   :  { %3105 = vmatpush1.bf16.msra.mxu1 %v6332_v3 }
 0x863   :  { %3106 = vmatprep.subr.bf16.mxu1 %v6333_v16 }
 0x866   :  { %3107 = vmatpush1.bf16.msra.mxu1 %v6334_v63 }
 0x867   :  { %3108 = vmatprep.subr.bf16.mxu1 %v6335_v4 }
 0x86a   :  { %3109 = vmatpush1.bf16.msra.mxu1 %v6336_v25 }
 0x86b   :  { %3110 = vmatprep.subr.bf16.mxu1 %v6337_v0 }
 0x86e   :  { %3111 = vmatpush1.bf16.msra.mxu1 %v6338_v37 }
 0x86f   :  { %3112 = vmatprep.subr.bf16.mxu1 %v6339_v32 }
 0x872   :  { %3113 = vmatpush1.bf16.msra.mxu1 %v6340_v33 }
 0x873   :  { %3114 = vmatprep.subr.bf16.mxu1 %v6341_v51 }
 0x876   :  { %3115 = vmatpush1.bf16.msra.mxu1 %v6342_v36 }
 0x877   :  { %3116 = vmatprep.subr.bf16.mxu1 %v6343_v55  ;;  %v3027_v55 = vrot.slane %v2818_v13, 4 }
 0x87a   :  { %3117 = vmatpush1.bf16.msra.mxu1 %v6344_v53 }
 0x87b   :  { %3118 = vmatprep.subr.bf16.mxu1 %v6345_v5 }
 0x87e   :  { %3119 = vmatpush1.bf16.msra.mxu1 %v6346_v57 }
 0x87f   :  { %3120 = vmatprep.subr.bf16.mxu1 %v6347_v35 }
 0x882   :  { %3121 = vmatpush1.bf16.msra.mxu1 %v6348_v11 }
 0x883   :  { %3122 = vmatprep.subr.bf16.mxu1 %v6349_v59 }
 0x886   :  { %3123 = vmatpush1.bf16.msra.mxu1 %v6350_v7 }
 0x887   :  { %3124 = vmatprep.subr.bf16.mxu1 %v6351_v45 }
 0x88a   :  { %3125 = vmatpush1.bf16.msra.mxu1 %v6352_v21 }
 0x88b   :  { %3126 = vmatprep.subr.bf16.mxu1 %v6353_v23 }
 0x88e   :  { %3127 = vmatpush1.bf16.msra.mxu1 %v6354_v12 }
 0x8e4   :  { %v2866_v42 = vpop.f32.mrb[40].mxu1  ;;  %v2907_v58 = vpop.f32.mrb[44].mxu0 }
 0x8e5   :  { %v2867_v1 = vadd.f32 %v2866_v42, %v6355_v9  ;;  %v2908_v17 = vadd.f32 %v2907_v58, %v6356_v14  ;;  %v2868_v54 = vpop.f32.mrb[41].mxu1  ;;  %v2909_v49 = vpop.f32.mrb[45].mxu0  ;;  %v4032_v42 = vld [vmem:[#allocation11 + $0x44] ss:$24 sps:$4 sm:$0xff]   ;;  %v4033_v58 = vld [vmem:[#allocation11 + $0x40] ss:$24 sps:$4 sm:$0xff]  }
 0x8e6   :  { %v2869_v40 = vadd.f32 %v2868_v54, %v4734_v44  ;;  %v2910_v61 = vadd.f32 %v2909_v49, %v4747_v50  ;;  %v2870_v6 = vpop.f32.mrb[42].mxu1  ;;  %v2911_v31 = vpop.f32.mrb[46].mxu0  ;;  %v4038_v54 = vld [vmem:[#allocation11 + $0xd4] ss:$24 sps:$4 sm:$0xff]   ;;  %v4039_v49 = vld [vmem:[#allocation11 + $0xd0] ss:$24 sps:$4 sm:$0xff]  }
 0x8e7   :  { %v2871_v52 = vpop.f32.mrb[43].mxu1  ;;  %v2912_v26 = vpop.f32.mrb[47].mxu0  ;;  %v4042_v6 = vld [vmem:[#allocation11 + $0x134] ss:$24 sps:$4 sm:$0xff]   ;;  %v4043_v31 = vld [vmem:[#allocation11 + $0x130] ss:$24 sps:$4 sm:$0xff]  }
 0x8e8   :  { %v2957_v28 = vcombine.low %v2867_v1, %v2869_v40  ;;  %v2985_v48 = vcombine.low %v2908_v17, %v2910_v61  ;;  %v4035_v1 = vld [vmem:[#allocation11 + $0x70] ss:$24 sps:$4 sm:$0xff]   ;;  %v4037_v17 = vld [vmem:[#allocation11 + $0xa0] ss:$24 sps:$4 sm:$0xff]   ;;  %v4040_v40 = vld [vmem:[#allocation11 + $0x104] ss:$24 sps:$4 sm:$0xff]  }
 0x8e9   :  { %v4041_v61 = vld [vmem:[#allocation11 + $0x100] ss:$24 sps:$4 sm:$0xff]   ;;  %v4044_v52 = vld [vmem:[#allocation11 + $0x164] ss:$24 sps:$4 sm:$0xff]  }
 0x8ea   :  { %v2964_v18 = vrot.slane %v2957_v28, %v4739_v60  ;;  %v2992_v24 = vrot.slane %v2985_v48, %v4739_v60  ;;  %v4045_v26 = vld [vmem:[#allocation11 + $0x160] ss:$24 sps:$4 sm:$0xff]   ;;  %v4046_v28 = vld [vmem:[#allocation11 + $0x194] ss:$24 sps:$4 sm:$0xff]   ;;  %v4047_v48 = vld [vmem:[#allocation11 + $0x190] ss:$24 sps:$4 sm:$0xff]  }
 0x8ec   :  { %v2971_v20 = vrot.slane %v2964_v18, %v4739_v60  ;;  %v2999_v10 = vrot.slane %v2992_v24, %v4739_v60  ;;  %v4048_v18 = vld [vmem:[#allocation11 + $0x1c4] ss:$24 sps:$4 sm:$0xff]   ;;  %v4054_v24 = vld [vmem:[#allocation11 + $0x254] ss:$24 sps:$4 sm:$0xff]  }
 0x8ee   :  { %v2973_v41 = vadd.f32 %v2971_v20, %v2818_v13  ;;  %v3001_v56 = vadd.f32 %v2999_v10, %v2981_v39  ;;  %v4050_v20 = vld [vmem:[#allocation11 + $0x1f4] ss:$24 sps:$4 sm:$0xff]   ;;  %v4052_v13 = vld [vmem:[#allocation11 + $0x224] ss:$24 sps:$4 sm:$0xff]   ;;  %v4057_v39 = vld [vmem:[#allocation11 + $0x280] ss:$24 sps:$4 sm:$0xff]  }
 0x8ef   :  { %v4056_v10 = vld [vmem:[#allocation11 + $0x284] ss:$24 sps:$4 sm:$0xff]  }
 0x8f0   :  { %v3512_v46 = vmul.f32 -1.442695, %v2973_v41  ;;  %v3513_v22 = vmul.f32 -1.442695, %v3001_v56  ;;  %v4053_v41 = vld [vmem:[#allocation11 + $0x220] ss:$24 sps:$4 sm:$0xff]  }
 0x8f1   :  { %v4058_v56 = vld [vmem:[#allocation11 + $0x2b4] ss:$24 sps:$4 sm:$0xff]  }
 0x8f2   :  { %3874 = vpow2.f32 %v3512_v46  ;;  %v4055_v46 = vld [vmem:[#allocation11 + $0x250] ss:$24 sps:$4 sm:$0xff]  }
 0x8f3   :  { %3876 = vpow2.f32 %v3513_v22  ;;  %v4059_v22 = vld [vmem:[#allocation11 + $0x2b0] ss:$24 sps:$4 sm:$0xff]  }
 0x8fc   :  { %v3875_v27 = vpop.eup %3874 }
 0x8fd   :  { %v2977_v30 = vadd.f32 1.0, %v3875_v27  ;;  %v3877_v4 = vpop.eup %3876  ;;  %v4060_v27 = vld [vmem:[#allocation11 + $0x2e4] ss:$24 sps:$4 sm:$0xff]  }
 0x8fe   :  { %v3005_v37 = vadd.f32 1.0, %v3877_v4 }
 0x8ff   :  { %3878 = vrcp.f32 %v2977_v30  ;;  %v4061_v30 = vld [vmem:[#allocation11 + $0x2e0] ss:$24 sps:$4 sm:$0xff]  }
 0x900   :  { %3880 = vrcp.f32 %v3005_v37 }
 0x909   :  { %v3879_v51 = vpop.eup %3878 }
 0x90a   :  { %v3881_v5 = vpop.eup %3880 }
 0x90b   :  { %v3031_v57 = vsub.f32 1.0, %v3881_v5  ;;  %v3033_v59 = vmul.f32 %v3881_v5, %v5582_v29  ;;  %v4031_v29 = vld [vmem:[#allocation11 + $0x10] ss:$24 sps:$4 sm:$0xff]   ;;  %v3040_v5 = vld [vmem:[#allocation3 + $0x7] ss:$8 sm:$0x30] }
 0x924   :  { %v2948_v62 = vpop.f32.mrb[44].mxu1 }
 0x925   :  { %v2949_v47 = vadd.f32 %v2948_v62, %v6111_v15  ;;  %v2950_v3 = vpop.f32.mrb[45].mxu1 }
 0x926   :  { %v2951_v16 = vadd.f32 %v2950_v3, %v4749_v2  ;;  %v2952_v63 = vpop.f32.mrb[46].mxu1 }
 0x927   :  { %v2953_v25 = vpop.f32.mrb[47].mxu1 }
 0x928   :  { %v3010_v0 = vcombine.low %v2949_v47, %v2951_v16 }
 0x92a   :  { %v3017_v32 = vrot.slane %v3010_v0, %v4739_v60 }
 0x92c   :  { %v3024_v33 = vrot.slane %v3017_v32, %v4739_v60 }
 0x92e   :  { %v3026_v36 = vmul.f32 %v3879_v51, %v3024_v33 }
 0x930   :  { %v3029_v53 = vadd.f32 %v3027_v55, %v3026_v36 }
 0x932   :  { %3882 = vtanh.f32 %v3029_v53 }
 0x93c   :  { %v3883_v35 = vpop.eup %3882 }
 0x93d   :  { %v3032_v11 = vmul.f32 %v3883_v35, %v3031_v57 }
 0x93f   :  { %v5672_v7 = vadd.f32 %v3033_v59, %v3032_v11 }
 0x941   :  { %3036 = vst.msk [vmem:[#allocation12 + $0x6] ss:$8 sm:$0x3] %vm4295_vm0, %v5672_v7  ;;  %v3050_v45 = vrot.slane %v5672_v7, %v6050_v34  ;;  %v3046_v21 = vrot.slane %v5672_v7, %v6049_v19  ;;  %v4034_v34 = vld [vmem:[#allocation11 + $0x74] ss:$24 sps:$4 sm:$0xff]  }
 0x942   :  { %v4036_v19 = vld [vmem:[#allocation11 + $0xa4] ss:$24 sps:$4 sm:$0xff]  }
 0x943   :  { %v3054_v23 = vpack.c.bf16 %v3050_v45, %v3050_v45  ;;  %v5681_v12 = vpack.c.bf16 %v3046_v21, %v3046_v21 }
 0x945   :  { %3087 = vmatprep.mubr.bf16.mxu0 %v3054_v23  ;;  %3128 = vmatprep.mubr.bf16.mxu1 %v3054_v23 }
 0x946   :  { %3088 = vmatmul.mubr.bf16.vlgmr.msra.gmra.mrb[48].mxu0 %v5681_v12  ;;  %3129 = vmatmul.mubr.bf16.vlgmr.msra.gmra.mrb[48].mxu1 %v5681_v12 }
 0x947   :  { %3138 = vmatpush1.bf16.msra.mxu0 %v4031_v29  ;;  %3169 = vmatprep.mubr.bf16.mxu0 %v3054_v23 }
 0x948   :  { %3139 = vmatprep.subr.bf16.mxu0 %v4032_v42 }
 0x94b   :  { %3140 = vmatpush1.bf16.msra.mxu0 %v4033_v58 }
 0x94c   :  { %3141 = vmatprep.subr.bf16.mxu0 %v4034_v34 }
 0x94f   :  { %3142 = vmatpush1.bf16.msra.mxu0 %v4035_v1 }
 0x950   :  { %3143 = vmatprep.subr.bf16.mxu0 %v4036_v19 }
 0x953   :  { %3144 = vmatpush1.bf16.msra.mxu0 %v4037_v17 }
 0x954   :  { %3145 = vmatprep.subr.bf16.mxu0 %v4038_v54 }
 0x957   :  { %3146 = vmatpush1.bf16.msra.mxu0 %v4039_v49 }
 0x958   :  { %3147 = vmatprep.subr.bf16.mxu0 %v4040_v40 }
 0x95b   :  { %3148 = vmatpush1.bf16.msra.mxu0 %v4041_v61 }
 0x95c   :  { %3149 = vmatprep.subr.bf16.mxu0 %v4042_v6 }
 0x95f   :  { %3150 = vmatpush1.bf16.msra.mxu0 %v4043_v31 }
 0x960   :  { %3151 = vmatprep.subr.bf16.mxu0 %v4044_v52 }
 0x963   :  { %3152 = vmatpush1.bf16.msra.mxu0 %v4045_v26 }
 0x964   :  { %3153 = vmatprep.subr.bf16.mxu0 %v4046_v28 }
 0x967   :  { %3154 = vmatpush1.bf16.msra.mxu0 %v4047_v48 }
 0x968   :  { %3155 = vmatprep.subr.bf16.mxu0 %v4048_v18 }
 0x96b   :  { %3156 = vmatpush1.bf16.msra.mxu0 %v4049_v38 }
 0x96c   :  { %3157 = vmatprep.subr.bf16.mxu0 %v4050_v20 }
 0x96f   :  { %3158 = vmatpush1.bf16.msra.mxu0 %v4051_v8 }
 0x970   :  { %3159 = vmatprep.subr.bf16.mxu0 %v4052_v13 }
 0x973   :  { %3160 = vmatpush1.bf16.msra.mxu0 %v4053_v41 }
 0x974   :  { %3161 = vmatprep.subr.bf16.mxu0 %v4054_v24 }
 0x977   :  { %3162 = vmatpush1.bf16.msra.mxu0 %v4055_v46 }
 0x978   :  { %3163 = vmatprep.subr.bf16.mxu0 %v4056_v10 }
 0x97b   :  { %3164 = vmatpush1.bf16.msra.mxu0 %v4057_v39 }
 0x97c   :  { %3165 = vmatprep.subr.bf16.mxu0 %v4058_v56 }
 0x97f   :  { %3166 = vmatpush1.bf16.msra.mxu0 %v4059_v22 }
 0x980   :  { %3167 = vmatprep.subr.bf16.mxu0 %v4060_v27 }
 0x983   :  { %3168 = vmatpush1.bf16.msra.mxu0 %v4061_v30 }
 0x986   :  { %3170 = vmatmul.mubr.bf16.vlgmr.msra.gmra.mrb[52].mxu0 %v5681_v12 }
 0xa19   :  { %v3089_v62 = vpop.f32.mrb[48].mxu0  ;;  %v3130_v47 = vpop.f32.mrb[48].mxu1 }
 0xa1a   :  { %v3090_v3 = vadd.f32 %v3089_v62, %v6355_v9  ;;  %v3131_v16 = vadd.f32 %v3130_v47, %v6356_v14  ;;  %v3091_v63 = vpop.f32.mrb[49].mxu0  ;;  %v3132_v4 = vpop.f32.mrb[49].mxu1  ;;  %v3039_v9 = vld [vmem:[#allocation3 + $0x7] ss:$8 sm:$0xf] }
 0xa1b   :  { %v3092_v25 = vadd.f32 %v3091_v63, %v4734_v44  ;;  %v3133_v0 = vadd.f32 %v3132_v4, %v4747_v50  ;;  %v3093_v37 = vpop.f32.mrb[50].mxu0  ;;  %v3134_v32 = vpop.f32.mrb[50].mxu1  ;;  %v3041_v35 = vor.u32 %v3040_v5, %v3039_v9 }
 0xa1c   :  { %v3094_v33 = vpop.f32.mrb[51].mxu0  ;;  %v3135_v51 = vpop.f32.mrb[51].mxu1 }
 0xa1d   :  { %v3180_v36 = vcombine.low %v3090_v3, %v3092_v25  ;;  %v3208_v55 = vcombine.low %v3131_v16, %v3133_v0  ;;  %v3204_v50 = vrot.slane %v3041_v35, 2  ;;  %v3250_v52 = vrot.slane %v3041_v35, 4 }
 0xa1f   :  { %v3187_v53 = vrot.slane %v3180_v36, %v4739_v60  ;;  %v3215_v11 = vrot.slane %v3208_v55, %v4739_v60 }
 0xa21   :  { %v3194_v57 = vrot.slane %v3187_v53, %v4739_v60  ;;  %v3222_v44 = vrot.slane %v3215_v11, %v4739_v60 }
 0xa23   :  { %v3196_v14 = vadd.f32 %v3194_v57, %v3041_v35  ;;  %v3224_v45 = vadd.f32 %v3222_v44, %v3204_v50 }
 0xa25   :  { %v3514_v59 = vmul.f32 -1.442695, %v3196_v14  ;;  %v3515_v21 = vmul.f32 -1.442695, %v3224_v45 }
 0xa27   :  { %3884 = vpow2.f32 %v3514_v59 }
 0xa28   :  { %3886 = vpow2.f32 %v3515_v21 }
 0xa31   :  { %v3885_v23 = vpop.eup %3884 }
 0xa32   :  { %v3200_v12 = vadd.f32 1.0, %v3885_v23  ;;  %v3887_v19 = vpop.eup %3886 }
 0xa33   :  { %v3228_v49 = vadd.f32 1.0, %v3887_v19 }
 0xa34   :  { %3888 = vrcp.f32 %v3200_v12 }
 0xa35   :  { %3890 = vrcp.f32 %v3228_v49 }
 0xa3e   :  { %v3889_v6 = vpop.eup %3888 }
 0xa3f   :  { %v3891_v28 = vpop.eup %3890 }
 0xa59   :  { %v3171_v29 = vpop.f32.mrb[52].mxu0 }
 0xa5a   :  { %v3172_v42 = vadd.f32 %v3171_v29, %v6111_v15  ;;  %v3173_v58 = vpop.f32.mrb[53].mxu0  ;;  %v3254_v15 = vsub.f32 1.0, %v3891_v28 }
 0xa5b   :  { %v3174_v34 = vadd.f32 %v3173_v58, %v4749_v2  ;;  %v3175_v1 = vpop.f32.mrb[54].mxu0  ;;  %v3256_v2 = vmul.f32 %v3891_v28, %v5672_v7 }
 0xa5c   :  { %v3176_v17 = vpop.f32.mrb[55].mxu0 }
 0xa5d   :  { %v3233_v54 = vcombine.low %v3172_v42, %v3174_v34 }
 0xa5f   :  { %v3240_v40 = vrot.slane %v3233_v54, %v4739_v60 }
 0xa61   :  { %v3247_v61 = vrot.slane %v3240_v40, %v4739_v60 }
 0xa63   :  { %v3249_v31 = vmul.f32 %v3889_v6, %v3247_v61 }
 0xa65   :  { %v3252_v26 = vadd.f32 %v3250_v52, %v3249_v31 }
 0xa67   :  { %3892 = vtanh.f32 %v3252_v26 }
 0xa71   :  { %v3893_v48 = vpop.eup %3892 }
 0xa72   :  { %v3255_v18 = vmul.f32 %v3893_v48, %v3254_v15 }
 0xa74   :  { %v3257_v38 = vadd.f32 %v3256_v2, %v3255_v18 }
 0xa76   :  { %3259 = vst.msk [vmem:[#allocation12 + $0x7] ss:$8 sm:$0x3] %vm4295_vm0, %v3257_v38 }
 0xa77   :  { %4149 = shalt.err (!%p4146_p3)
}
 0xa78   :  { %s4150_s28 = scalar_lea.hbm %s5720_s7, 256 }
 0xa79   :  { %p4151_p4 = scmp.ne.s32.totalorder %s5720_s7, %s4150_s28  ;;  %p4154_p5 = scmp.lt.u32.totalorder %s4150_s28, %s5720_s7 }
 0xa7b   :  { %p4156_p6 = pnand %p4154_p5, %p4151_p4 }
 0xa7d   :  { %4159 = shalt.err (!%p4156_p6)
}
 0xa7e   :  { %3270 = dma.vmem_to_hbm [thread:$0]  %s3268_s20, 256, %s5720_s7, [#allocation8]  }
 0xa7f   :  { %4166 = dma.done.wait [#allocation8], 256  }
 0xa80   :  { %4167 = vsyncadd [#allocation8], 4294967040 }
 0xa81   :  { %3274 = vsyncpa [#allocation7], 1 }
 0xa82   :  { %3275 = vsyncpa [#allocation10], 1 }
 0xa83   :  { %3276 = vsyncpa [#allocation8], 1 }

</bundles_post_ra>
